<compile_context>
chip_gen: v7x
topology: tpu7x:2x2x1
jax: 0.10.0
libtpu: 0.0.40
codegen_flags: <defaults>
</compile_context>

<pallas_src>
import functools

import jax
import jax.numpy as jnp
from jax import lax
from jax.experimental import pallas as pl
from jax.experimental.pallas import tpu as pltpu

# ----------------------------- model config (small) -------------------------------
IMG = 32            # small image for the demo (real model: 224)
PATCH = 16          # patch size (vit_tiny_patch16)
IN_CHANS = 3
EMBED_DIM = 192     # vit_tiny width
DEPTH = 2           # real vit_tiny has depth=12; 2 blocks kept for a fast demo
NUM_HEADS = 3
MLP_RATIO = 4.0
EMBEDDING_DIM = 256  # projection head output (module default)

HEAD_DIM = EMBED_DIM // NUM_HEADS        # 64
DH_PAD = 128                             # head dim padded to a full lane tile
HIDDEN = int(EMBED_DIM * MLP_RATIO)      # 768
NUM_PATCHES = (IMG // PATCH) ** 2        # 4
SEQ = NUM_PATCHES + 1                    # 5
PATCH_DIM = IN_CHANS * PATCH * PATCH     # 768

_SQRT1_2 = 0.7071067811865476


def _pick_batch_tile(B, max_tile=8):
    """Largest divisor of B <= max_tile that keeps >=2 grid steps along batch
    (so v7x's two TensorCores both get work) while amortizing per-step overhead."""
    for t in range(min(max_tile, max(1, B // 2)), 0, -1):
        if B % t == 0:
            return t
    return 1


# --------------------- GELU (erf via A&S 7.1.26, poly err ~1.5e-7) -----------------
def _erf(x):
    a1, a2, a3, a4, a5, p = (0.254829592, -0.284496736, 1.421413741,
                             -1.453152027, 1.061405429, 0.3275911)
    s = jnp.where(x >= 0.0, 1.0, -1.0)
    z = jnp.abs(x)
    t = pl.reciprocal(1.0 + p * z, approx=True)   # EUP vrcp; below the poly's own error
    poly = ((((a5 * t + a4) * t + a3) * t + a2) * t + a1) * t
    return s * (1.0 - poly * jnp.exp(-z * z))


def _gelu(x):
    # close to torch.nn.GELU() (erf-based); ~1e-4 abs error, below bf16 matmul noise
    return 0.5 * x * (1.0 + _erf(x * _SQRT1_2))


def _ln(x, g, b, eps):
    """LayerNorm over the last axis, f32 math, biased variance (matches nn.LayerNorm)."""
    mean = jnp.mean(x, axis=-1, keepdims=True)
    xc = x - mean
    var = jnp.mean(xc * xc, axis=-1, keepdims=True)
    return xc * lax.rsqrt(var + eps) * g + b


# --------------------------------- Pallas kernels ----------------------------------
def _embed_kernel(p_ref, w_ref, b_ref, cls_ref, pos_ref, o_ref):
    # patch-embed matmul + cls token + positional embedding for one batch tile
    bt, n, din = p_ref.shape
    d = w_ref.shape[-1]
    patches = p_ref[...].reshape(bt * n, din).astype(jnp.bfloat16)
    tok = jnp.dot(patches, w_ref[...],
                  preferred_element_type=jnp.float32) + b_ref[...]        # (bt*n, D)
    tok = tok.reshape(bt, n, d)
    cls_row = cls_ref[...] + pos_ref[0:1, :]                              # (1, D)
    # direct sub-block stores instead of a sublane-axis concat
    o_ref[:, 0:1, :] = jnp.broadcast_to(cls_row[None], (bt, 1, d)).astype(o_ref.dtype)
    o_ref[:, 1:, :] = (tok + pos_ref[1:, :][None]).astype(o_ref.dtype)


def embed(patches, params, b_tile):
    B, N, Din = patches.shape
    S, D = SEQ, EMBED_DIM
    return pl.pallas_call(
        _embed_kernel,
        out_shape=jax.ShapeDtypeStruct((B, S, D), jnp.float32),
        grid=(B // b_tile,),
        in_specs=[
            pl.BlockSpec((b_tile, N, Din), lambda i: (i, 0, 0)),
            pl.BlockSpec((Din, D), lambda i: (0, 0)),
            pl.BlockSpec((1, D), lambda i: (0, 0)),
            pl.BlockSpec((1, D), lambda i: (0, 0)),
            pl.BlockSpec((S, D), lambda i: (0, 0)),
        ],
        out_specs=pl.BlockSpec((b_tile, S, D), lambda i: (i, 0, 0)),
        compiler_params=pltpu.CompilerParams(dimension_semantics=("parallel",)),
    )(patches, params["patch_w"], params["patch_b"],
      params["cls_token"], params["pos_embed"])


def _block_kernel(x_ref, ln1_g, ln1_b, qkv_w, qkv_b, proj_w, proj_b,
                  ln2_g, ln2_b, fc1_w, fc1_b, fc2_w, fc2_b,
                  o_ref, resid_ref, *, num_heads, eps):
    """All DEPTH pre-norm transformer blocks for one batch tile; grid axis 1 = depth.
    The residual stream stays in the resid VMEM scratch across depth iterations;
    per-depth weights stream in via the depth-indexed BlockSpecs."""
    d_idx = pl.program_id(1)

    @pl.when(d_idx == 0)
    def _():
        resid_ref[...] = x_ref[...].astype(jnp.float32)

    bt, s, dmodel = resid_ref.shape
    xf = resid_ref[...].reshape(bt * s, dmodel)                            # (bt*S, D) f32

    # ---- attention branch ----
    h = _ln(xf, ln1_g[0], ln1_b[0], eps)
    qkv = jnp.dot(h.astype(jnp.bfloat16), qkv_w[0],
                  preferred_element_type=jnp.float32) + qkv_b[0]           # (bt*S, 3*H*128)
    qkv3 = qkv.reshape(bt, s, 3 * num_heads * DH_PAD)

    attn_proj = jnp.zeros((bt * s, dmodel), jnp.float32)
    for hi in range(num_heads):                                            # static unrolled
        q = qkv3[:, :, hi * DH_PAD:(hi + 1) * DH_PAD].astype(jnp.bfloat16)             # pre-scaled
        k = qkv3[:, :, (num_heads + hi) * DH_PAD:(num_heads + hi + 1) * DH_PAD].astype(jnp.bfloat16)
        v = qkv3[:, :, (2 * num_heads + hi) * DH_PAD:(2 * num_heads + hi + 1) * DH_PAD].astype(jnp.bfloat16)
        sc = jnp.einsum('bqd,bkd->bqk', q, k,
                        preferred_element_type=jnp.float32)                # (bt, S, S)
        sc = sc - jnp.max(sc, axis=-1, keepdims=True)
        p = jnp.exp(sc)
        p = p * pl.reciprocal(jnp.sum(p, axis=-1, keepdims=True), approx=True)
        oh = jnp.einsum('bqk,bkd->bqd', p.astype(jnp.bfloat16), v,
                        preferred_element_type=jnp.float32)                # (bt, S, 128)
        # per-head out-proj accumulation against a 128-row (sublane-aligned) slice
        w_h = proj_w[0, hi * DH_PAD:(hi + 1) * DH_PAD, :]                  # (128, D) bf16
        attn_proj = attn_proj + jnp.dot(
            oh.reshape(bt * s, DH_PAD).astype(jnp.bfloat16), w_h,
            preferred_element_type=jnp.float32)
    xf = xf + attn_proj + proj_b[0]

    # ---- MLP branch ----
    h = _ln(xf, ln2_g[0], ln2_b[0], eps)
    m = jnp.dot(h.astype(jnp.bfloat16), fc1_w[0],
                preferred_element_type=jnp.float32) + fc1_b[0]             # (bt*S, HIDDEN)
    m = _gelu(m)
    xf = xf + jnp.dot(m.astype(jnp.bfloat16), fc2_w[0],
                      preferred_element_type=jnp.float32) + fc2_b[0]

    resid_ref[...] = xf.reshape(bt, s, dmodel)

    @pl.when(d_idx == pl.num_programs(1) - 1)
    def _():
        o_ref[...] = resid_ref[...].astype(o_ref.dtype)


def transformer_blocks(xs, params, b_tile):
    B, S, D = xs.shape
    blk = params["blocks"]
    kernel = functools.partial(_block_kernel, num_heads=NUM_HEADS, eps=1e-6)
    vec = lambda n: pl.BlockSpec((1, 1, n), lambda b, d: (d, 0, 0))        # depth-streamed vectors
    mat = lambda r, c: pl.BlockSpec((1, r, c), lambda b, d: (d, 0, 0))     # depth-streamed matrices
    return pl.pallas_call(
        kernel,
        out_shape=jax.ShapeDtypeStruct((B, S, D), jnp.float32),
        grid=(B // b_tile, DEPTH),
        in_specs=[
            pl.BlockSpec((b_tile, S, D), lambda b, d: (b, 0, 0)),
            vec(D), vec(D),                                    # ln1
            mat(D, 3 * NUM_HEADS * DH_PAD), vec(3 * NUM_HEADS * DH_PAD),   # qkv (padded, q-scaled)
            mat(NUM_HEADS * DH_PAD, D), vec(D),                # attn out-proj (padded rows)
            vec(D), vec(D),                                    # ln2
            mat(D, HIDDEN), vec(HIDDEN),                       # fc1
            mat(HIDDEN, D), vec(D),                            # fc2
        ],
        out_specs=pl.BlockSpec((b_tile, S, D), lambda b, d: (b, 0, 0)),
        scratch_shapes=[pltpu.VMEM((b_tile, S, D), jnp.float32)],
        compiler_params=pltpu.CompilerParams(
            dimension_semantics=("parallel", "arbitrary"),
            vmem_limit_bytes=32 * 1024 * 1024),
    )(xs,
      blk["ln1_g"], blk["ln1_b"],
      blk["qkv_w"], blk["qkv_b"],
      blk["proj_w"], blk["proj_b"],
      blk["ln2_g"], blk["ln2_b"],
      blk["fc1_w"], blk["fc1_b"],
      blk["fc2_w"], blk["fc2_b"])


def _head_kernel(x_ref, ng, nbias, pw, pb, hg, hb, o_ref, *, eps_bb, eps_head):
    # final backbone norm (cls token only — LN is per-token) -> Linear -> head LayerNorm,
    # whole batch in one grid step (cls row sliced in VMEM, no XLA slice / per-B steps)
    cls = x_ref[:, 0, :].astype(jnp.float32)                               # (B, D)
    f = _ln(cls, ng[...], nbias[...], eps_bb)
    e = jnp.dot(f.astype(jnp.bfloat16), pw[...],
                preferred_element_type=jnp.float32) + pb[...]              # (B, E)
    o_ref[...] = _ln(e, hg[...], hb[...], eps_head).astype(o_ref.dtype)


def projection_head(xs, params):
    B, S, D = xs.shape
    E = EMBEDDING_DIM
    kernel = functools.partial(_head_kernel, eps_bb=1e-6, eps_head=1e-5)
    return pl.pallas_call(
        kernel,
        out_shape=jax.ShapeDtypeStruct((B, E), jnp.float32),
        grid=(1,),
        in_specs=[
            pl.BlockSpec((B, S, D), lambda i: (0, 0, 0)),
            pl.BlockSpec((1, D), lambda i: (0, 0)),
            pl.BlockSpec((1, D), lambda i: (0, 0)),
            pl.BlockSpec((D, E), lambda i: (0, 0)),
            pl.BlockSpec((1, E), lambda i: (0, 0)),
            pl.BlockSpec((1, E), lambda i: (0, 0)),
            pl.BlockSpec((1, E), lambda i: (0, 0)),
        ],
        out_specs=pl.BlockSpec((B, E), lambda i: (0, 0)),
    )(xs, params["norm_g"], params["norm_b"],
      params["proj_w"], params["proj_b"],
      params["head_ln_g"], params["head_ln_b"])


# ----------------------------- parameter initialization ----------------------------
def _pack_qkv(w, b, num_heads, head_dim, dh_pad, scale):
    """(D, 3D) / (3D,) -> head-padded (D, 3*H*dh_pad) / (1, 3*H*dh_pad) with the
    attention scale folded into the Q columns/bias."""
    D = w.shape[0]
    w = w.reshape(D, 3, num_heads, head_dim)
    b = b.reshape(3, num_heads, head_dim)
    w = w.at[:, 0].multiply(scale)
    b = b.at[0].multiply(scale)
    wp = jnp.zeros((D, 3, num_heads, dh_pad), w.dtype).at[..., :head_dim].set(w)
    bp = jnp.zeros((3, num_heads, dh_pad), b.dtype).at[..., :head_dim].set(b)
    return (wp.reshape(D, 3 * num_heads * dh_pad),
            bp.reshape(1, 3 * num_heads * dh_pad))


def _pack_proj(w, num_heads, head_dim, dh_pad):
    """(H*dh, D) -> (H*dh_pad, D) with zero rows in the padded positions."""
    D = w.shape[1]
    w = w.reshape(num_heads, head_dim, D)
    wp = jnp.zeros((num_heads, dh_pad, D), w.dtype).at[:, :head_dim, :].set(w)
    return wp.reshape(num_heads * dh_pad, D)


def init_params(key):
    keys = iter(jax.random.split(key, 64))

    def rnd(shape, scale=0.02):
        return scale * jax.random.normal(next(keys), shape, dtype=jnp.float32)

    attn_scale = HEAD_DIM ** -0.5

    ln1_g, ln1_b, qkv_w, qkv_b = [], [], [], []
    proj_w, proj_b, ln2_g, ln2_b = [], [], [], []
    fc1_w, fc1_b, fc2_w, fc2_b = [], [], [], []
    for _ in range(DEPTH):
        ln1_g.append(jnp.ones((1, EMBED_DIM), jnp.float32))
        ln1_b.append(jnp.zeros((1, EMBED_DIM), jnp.float32))
        wq, bq = _pack_qkv(rnd((EMBED_DIM, 3 * EMBED_DIM)),
                           jnp.zeros((3 * EMBED_DIM,), jnp.float32),
                           NUM_HEADS, HEAD_DIM, DH_PAD, attn_scale)
        qkv_w.append(wq.astype(jnp.bfloat16))
        qkv_b.append(bq)
        proj_w.append(_pack_proj(rnd((EMBED_DIM, EMBED_DIM)),
                                 NUM_HEADS, HEAD_DIM, DH_PAD).astype(jnp.bfloat16))
        proj_b.append(jnp.zeros((1, EMBED_DIM), jnp.float32))
        ln2_g.append(jnp.ones((1, EMBED_DIM), jnp.float32))
        ln2_b.append(jnp.zeros((1, EMBED_DIM), jnp.float32))
        fc1_w.append(rnd((EMBED_DIM, HIDDEN)).astype(jnp.bfloat16))
        fc1_b.append(jnp.zeros((1, HIDDEN), jnp.float32))
        fc2_w.append(rnd((HIDDEN, EMBED_DIM)).astype(jnp.bfloat16))
        fc2_b.append(jnp.zeros((1, EMBED_DIM), jnp.float32))

    blocks = dict(
        ln1_g=jnp.stack(ln1_g), ln1_b=jnp.stack(ln1_b),
        qkv_w=jnp.stack(qkv_w), qkv_b=jnp.stack(qkv_b),
        proj_w=jnp.stack(proj_w), proj_b=jnp.stack(proj_b),
        ln2_g=jnp.stack(ln2_g), ln2_b=jnp.stack(ln2_b),
        fc1_w=jnp.stack(fc1_w), fc1_b=jnp.stack(fc1_b),
        fc2_w=jnp.stack(fc2_w), fc2_b=jnp.stack(fc2_b),
    )

    return dict(
        patch_w=rnd((PATCH_DIM, EMBED_DIM)).astype(jnp.bfloat16),  # Conv2d(3,192,16,16) as matmul
        patch_b=jnp.zeros((1, EMBED_DIM), jnp.float32),
        cls_token=rnd((1, EMBED_DIM)),
        pos_embed=rnd((SEQ, EMBED_DIM)),
        norm_g=jnp.ones((1, EMBED_DIM), jnp.float32),
        norm_b=jnp.zeros((1, EMBED_DIM), jnp.float32),
        proj_w=rnd((EMBED_DIM, EMBEDDING_DIM)).astype(jnp.bfloat16),   # projection head Linear
        proj_b=jnp.zeros((1, EMBEDDING_DIM), jnp.float32),
        head_ln_g=jnp.ones((1, EMBEDDING_DIM), jnp.float32),
        head_ln_b=jnp.zeros((1, EMBEDDING_DIM), jnp.float32),
        blocks=blocks,
    )


# ----------------------------------- forward pass ----------------------------------
def vit_image_encoder(params, x):
    """x: (B, 3, IMG, IMG) NCHW float32 -> (B, EMBEDDING_DIM)."""
    B, C, H, W = x.shape
    gh, gw = H // PATCH, W // PATCH

    # --- patch extraction (Conv2d k=16 s=16 becomes an in-kernel matmul) ---
    # TODO(synk): fold this NCHW->patch reorder into the embed BlockSpec / accept NHWC
    # to avoid the host-side relayout pass (negligible at these sizes).
    patches = x.reshape(B, C, gh, PATCH, gw, PATCH)
    patches = patches.transpose(0, 2, 4, 1, 3, 5).reshape(B, gh * gw, C * PATCH * PATCH)

    b_tile = _pick_batch_tile(B)

    # --- fused patch-embed + cls token + positional embedding (pos_drop = identity) ---
    xs = embed(patches, params, b_tile)                     # (B, S, D)

    # --- ALL transformer blocks in one pallas_call (depth grid axis, weights streamed) ---
    xs = transformer_blocks(xs, params, b_tile)             # (B, S, D)

    # --- cls pooling + final norm + projection Linear + head LayerNorm, one grid step ---
    # TODO(synk): nn.Dropout / attn_drop / proj_drop are identity in eval mode;
    # training-mode RNG masking not implemented.
    return projection_head(xs, params)                      # (B, EMBEDDING_DIM)


# ----------------------------------------- main -------------------------------------
if __name__ == "__main__":
    key = jax.random.PRNGKey(0)
    pkey, xkey = jax.random.split(key)
    params = init_params(pkey)
    x = jax.random.normal(xkey, (2, IN_CHANS, IMG, IMG), dtype=jnp.float32)

    fwd = jax.jit(lambda inp: vit_image_encoder(params, inp))
    out = jax.block_until_ready(fwd(x))

    assert out.shape == (2, EMBEDDING_DIM), out.shape
    assert out.dtype == jnp.float32
    assert bool(jnp.all(jnp.isfinite(out)))
    print("KERNEL_OK")
</pallas_src>

<mosaic_0001>
module attributes {stable_mosaic.version = 11 : i64} {
  func.func @_embed_kernel(%arg0: i32, %arg1: memref<1x4x768xf32, #tpu.memory_space<vmem>>, %arg2: memref<768x192xbf16, #tpu.memory_space<vmem>>, %arg3: memref<1x192xf32, #tpu.memory_space<vmem>>, %arg4: memref<1x192xf32, #tpu.memory_space<vmem>>, %arg5: memref<5x192xf32, #tpu.memory_space<vmem>>, %arg6: memref<1x5x192xf32, #tpu.memory_space<vmem>>) attributes {dimension_semantics = [#tpu.dimension_semantics<parallel>], iteration_bounds = array<i64: 2>, scalar_prefetch = 0 : i64, scratch_operands = 0 : i64, tpu.core_type = #tpu.core_type<tc>, window_params = [{transform_indices = @transform_0, window_bounds = array<i64: 1, 4, 768>}, {pipeline_mode = #tpu.pipeline_mode<synchronous>, transform_indices = @transform_1, window_bounds = array<i64: 768, 192>}, {pipeline_mode = #tpu.pipeline_mode<synchronous>, transform_indices = @transform_2, window_bounds = array<i64: 1, 192>}, {pipeline_mode = #tpu.pipeline_mode<synchronous>, transform_indices = @transform_3, window_bounds = array<i64: 1, 192>}, {pipeline_mode = #tpu.pipeline_mode<synchronous>, transform_indices = @transform_4, window_bounds = array<i64: 5, 192>}, {transform_indices = @transform_5, window_bounds = array<i64: 1, 5, 192>}]} {
    %c0 = arith.constant 0 : index
    %c0_0 = arith.constant 0 : index
    %c0_1 = arith.constant 0 : index
    %0 = vector.load %arg1[%c0, %c0_0, %c0_1] : memref<1x4x768xf32, #tpu.memory_space<vmem>>, vector<1x4x768xf32>
    %1 = vector.shape_cast %0 : vector<1x4x768xf32> to vector<4x768xf32>
    %2 = arith.truncf %1 : vector<4x768xf32> to vector<4x768xbf16>
    %c0_2 = arith.constant 0 : index
    %c0_3 = arith.constant 0 : index
    %3 = vector.load %arg2[%c0_2, %c0_3] : memref<768x192xbf16, #tpu.memory_space<vmem>>, vector<768x192xbf16>
    %cst = arith.constant dense<0.000000e+00> : vector<4x192xf32>
    %4 = tpu.matmul %2, %3, %cst {dimension_numbers = #tpu.dot_dimension_numbers<[1], [0], [0], [1], [0, 0, 1, 1], [], []>} : vector<4x768xbf16>, vector<768x192xbf16>, vector<4x192xf32> -> vector<4x192xf32>
    %c0_4 = arith.constant 0 : index
    %c0_5 = arith.constant 0 : index
    %5 = vector.load %arg3[%c0_4, %c0_5] : memref<1x192xf32, #tpu.memory_space<vmem>>, vector<1x192xf32>
    %6 = vector.broadcast %5 : vector<1x192xf32> to vector<4x192xf32>
    %7 = arith.addf %4, %6 : vector<4x192xf32>
    %8 = vector.shape_cast %7 : vector<4x192xf32> to vector<1x4x192xf32>
    %c0_6 = arith.constant 0 : index
    %c0_7 = arith.constant 0 : index
    %9 = vector.load %arg4[%c0_6, %c0_7] : memref<1x192xf32, #tpu.memory_space<vmem>>, vector<1x192xf32>
    %c0_8 = arith.constant 0 : index
    %c0_9 = arith.constant 0 : index
    %10 = vector.load %arg5[%c0_8, %c0_9] : memref<5x192xf32, #tpu.memory_space<vmem>>, vector<1x192xf32>
    %11 = arith.addf %9, %10 : vector<1x192xf32>
    %12 = vector.shape_cast %11 : vector<1x192xf32> to vector<1x1x192xf32>
    %c0_10 = arith.constant 0 : index
    %c0_11 = arith.constant 0 : index
    %c0_12 = arith.constant 0 : index
    %13 = vector.load %arg6[%c0_10, %c0_11, %c0_12] : memref<1x5x192xf32, #tpu.memory_space<vmem>>, vector<1x1x192xf32>
    tpu.vector_store %arg6[%c0_10, %c0_11, %c0_12], %12 {strides = array<i32>} : memref<1x5x192xf32, #tpu.memory_space<vmem>>, vector<1x1x192xf32>,
    %c1 = arith.constant 1 : index
    %c0_13 = arith.constant 0 : index
    %14 = vector.load %arg5[%c1, %c0_13] : memref<5x192xf32, #tpu.memory_space<vmem>>, vector<4x192xf32>
    %15 = vector.shape_cast %14 : vector<4x192xf32> to vector<1x4x192xf32>
    %16 = arith.addf %8, %15 : vector<1x4x192xf32>
    %c0_14 = arith.constant 0 : index
    %c1_15 = arith.constant 1 : index
    %c0_16 = arith.constant 0 : index
    %17 = vector.load %arg6[%c0_14, %c1_15, %c0_16] : memref<1x5x192xf32, #tpu.memory_space<vmem>>, vector<1x4x192xf32>
    tpu.vector_store %arg6[%c0_14, %c1_15, %c0_16], %16 {strides = array<i32>} : memref<1x5x192xf32, #tpu.memory_space<vmem>>, vector<1x4x192xf32>,
    return
  }
  func.func @transform_0(%arg0: i32) -> (i32, i32, i32) {
    %c0_i32 = arith.constant 0 : i32
    %c0_i32_0 = arith.constant 0 : i32
    %c0_i32_1 = arith.constant 0 : i32
    return %arg0, %c0_i32, %c0_i32_0 : i32, i32, i32
  }
  func.func @transform_1(%arg0: i32) -> (i32, i32) {
    %c0_i32 = arith.constant 0 : i32
    %c0_i32_0 = arith.constant 0 : i32
    %c0_i32_1 = arith.constant 0 : i32
    return %c0_i32, %c0_i32_0 : i32, i32
  }
  func.func @transform_2(%arg0: i32) -> (i32, i32) {
    %c0_i32 = arith.constant 0 : i32
    %c0_i32_0 = arith.constant 0 : i32
    %c0_i32_1 = arith.constant 0 : i32
    return %c0_i32, %c0_i32_0 : i32, i32
  }
  func.func @transform_3(%arg0: i32) -> (i32, i32) {
    %c0_i32 = arith.constant 0 : i32
    %c0_i32_0 = arith.constant 0 : i32
    %c0_i32_1 = arith.constant 0 : i32
    return %c0_i32, %c0_i32_0 : i32, i32
  }
  func.func @transform_4(%arg0: i32) -> (i32, i32) {
    %c0_i32 = arith.constant 0 : i32
    %c0_i32_0 = arith.constant 0 : i32
    %c0_i32_1 = arith.constant 0 : i32
    return %c0_i32, %c0_i32_0 : i32, i32
  }
  func.func @transform_5(%arg0: i32) -> (i32, i32, i32) {
    %c0_i32 = arith.constant 0 : i32
    %c0_i32_0 = arith.constant 0 : i32
    %c0_i32_1 = arith.constant 0 : i32
    return %arg0, %c0_i32, %c0_i32_0 : i32, i32, i32
  }
}

module attributes {stable_mosaic.version = 11 : i64} {
  func.func @_block_kernel(%arg0: i32, %arg1: i32, %arg2: memref<1x5x192xf32, #tpu.memory_space<vmem>>, %arg3: memref<1x1x192xf32, #tpu.memory_space<vmem>>, %arg4: memref<1x1x192xf32, #tpu.memory_space<vmem>>, %arg5: memref<1x192x1152xbf16, #tpu.memory_space<vmem>>, %arg6: memref<1x1x1152xf32, #tpu.memory_space<vmem>>, %arg7: memref<1x384x192xbf16, #tpu.memory_space<vmem>>, %arg8: memref<1x1x192xf32, #tpu.memory_space<vmem>>, %arg9: memref<1x1x192xf32, #tpu.memory_space<vmem>>, %arg10: memref<1x1x192xf32, #tpu.memory_space<vmem>>, %arg11: memref<1x192x768xbf16, #tpu.memory_space<vmem>>, %arg12: memref<1x1x768xf32, #tpu.memory_space<vmem>>, %arg13: memref<1x768x192xbf16, #tpu.memory_space<vmem>>, %arg14: memref<1x1x192xf32, #tpu.memory_space<vmem>>, %arg15: memref<1x5x192xf32, #tpu.memory_space<vmem>>, %arg16: memref<1x5x192xf32, #tpu.memory_space<vmem>>) attributes {dimension_semantics = [#tpu.dimension_semantics<parallel>, #tpu.dimension_semantics<arbitrary>], iteration_bounds = array<i64: 2, 2>, scalar_prefetch = 0 : i64, scratch_operands = 1 : i64, tpu.core_type = #tpu.core_type<tc>, window_params = [{transform_indices = @transform_0, window_bounds = array<i64: 1, 5, 192>}, {transform_indices = @transform_1, window_bounds = array<i64: 1, 1, 192>}, {transform_indices = @transform_2, window_bounds = array<i64: 1, 1, 192>}, {transform_indices = @transform_3, window_bounds = array<i64: 1, 192, 1152>}, {transform_indices = @transform_4, window_bounds = array<i64: 1, 1, 1152>}, {transform_indices = @transform_5, window_bounds = array<i64: 1, 384, 192>}, {transform_indices = @transform_6, window_bounds = array<i64: 1, 1, 192>}, {transform_indices = @transform_7, window_bounds = array<i64: 1, 1, 192>}, {transform_indices = @transform_8, window_bounds = array<i64: 1, 1, 192>}, {transform_indices = @transform_9, window_bounds = array<i64: 1, 192, 768>}, {transform_indices = @transform_10, window_bounds = array<i64: 1, 1, 768>}, {transform_indices = @transform_11, window_bounds = array<i64: 1, 768, 192>}, {transform_indices = @transform_12, window_bounds = array<i64: 1, 1, 192>}, {transform_indices = @transform_13, window_bounds = array<i64: 1, 5, 192>}]} {
    %c0_i32 = arith.constant 0 : i32
    %0 = arith.cmpi eq, %arg1, %c0_i32 : i32
    %1 = arith.extui %0 : i1 to i32
    %c0_i32_0 = arith.constant 0 : i32
    %2 = arith.cmpi ne, %1, %c0_i32_0 : i32
    scf.if %2 {
      %c0_90 = arith.constant 0 : index
      %c0_91 = arith.constant 0 : index
      %c0_92 = arith.constant 0 : index
      %205 = vector.load %arg2[%c0_90, %c0_91, %c0_92] : memref<1x5x192xf32, #tpu.memory_space<vmem>>, vector<1x5x192xf32>
      %c0_93 = arith.constant 0 : index
      %c0_94 = arith.constant 0 : index
      %c0_95 = arith.constant 0 : index
      %206 = vector.load %arg16[%c0_93, %c0_94, %c0_95] : memref<1x5x192xf32, #tpu.memory_space<vmem>>, vector<1x5x192xf32>
      tpu.vector_store %arg16[%c0_93, %c0_94, %c0_95], %205 {strides = array<i32>} : memref<1x5x192xf32, #tpu.memory_space<vmem>>, vector<1x5x192xf32>,
    } else {
    }
    %c0 = arith.constant 0 : index
    %c0_1 = arith.constant 0 : index
    %c0_2 = arith.constant 0 : index
    %3 = vector.load %arg16[%c0, %c0_1, %c0_2] : memref<1x5x192xf32, #tpu.memory_space<vmem>>, vector<1x5x192xf32>
    %4 = vector.shape_cast %3 : vector<1x5x192xf32> to vector<5x192xf32>
    %c0_3 = arith.constant 0 : index
    %c0_4 = arith.constant 0 : index
    %c0_5 = arith.constant 0 : index
    %5 = vector.load %arg3[%c0_3, %c0_4, %c0_5] : memref<1x1x192xf32, #tpu.memory_space<vmem>>, vector<1x1x192xf32>
    %6 = vector.shape_cast %5 : vector<1x1x192xf32> to vector<1x192xf32>
    %c0_6 = arith.constant 0 : index
    %c0_7 = arith.constant 0 : index
    %c0_8 = arith.constant 0 : index
    %7 = vector.load %arg4[%c0_6, %c0_7, %c0_8] : memref<1x1x192xf32, #tpu.memory_space<vmem>>, vector<1x1x192xf32>
    %8 = vector.shape_cast %7 : vector<1x1x192xf32> to vector<1x192xf32>
    %cst = arith.constant dense<0.000000e+00> : vector<5xf32>
    %9 = vector.multi_reduction <add>, %4, %cst [1] : vector<5x192xf32> to vector<5xf32>
    %10 = vector.shape_cast %9 : vector<5xf32> to vector<5x1xf32>
    %cst_9 = arith.constant 1.920000e+02 : f32
    %11 = vector.broadcast %cst_9 : f32 to vector<5x1xf32>
    %12 = arith.divf %10, %11 : vector<5x1xf32>
    %13 = vector.broadcast %12 : vector<5x1xf32> to vector<5x192xf32>
    %14 = arith.subf %4, %13 : vector<5x192xf32>
    %15 = arith.mulf %14, %14 : vector<5x192xf32>
    %cst_10 = arith.constant dense<0.000000e+00> : vector<5xf32>
    %16 = vector.multi_reduction <add>, %15, %cst_10 [1] : vector<5x192xf32> to vector<5xf32>
    %17 = vector.shape_cast %16 : vector<5xf32> to vector<5x1xf32>
    %cst_11 = arith.constant 1.920000e+02 : f32
    %18 = vector.broadcast %cst_11 : f32 to vector<5x1xf32>
    %19 = arith.divf %17, %18 : vector<5x1xf32>
    %cst_12 = arith.constant 9.99999997E-7 : f32
    %20 = vector.broadcast %cst_12 : f32 to vector<5x1xf32>
    %21 = arith.addf %19, %20 : vector<5x1xf32>
    %22 = math.rsqrt %21 : vector<5x1xf32>
    %23 = vector.broadcast %22 : vector<5x1xf32> to vector<5x192xf32>
    %24 = arith.mulf %14, %23 : vector<5x192xf32>
    %25 = vector.broadcast %6 : vector<1x192xf32> to vector<5x192xf32>
    %26 = arith.mulf %24, %25 : vector<5x192xf32>
    %27 = vector.broadcast %8 : vector<1x192xf32> to vector<5x192xf32>
    %28 = arith.addf %26, %27 : vector<5x192xf32>
    %29 = arith.truncf %28 : vector<5x192xf32> to vector<5x192xbf16>
    %c0_13 = arith.constant 0 : index
    %c0_14 = arith.constant 0 : index
    %c0_15 = arith.constant 0 : index
    %30 = vector.load %arg5[%c0_13, %c0_14, %c0_15] : memref<1x192x1152xbf16, #tpu.memory_space<vmem>>, vector<1x192x1152xbf16>
    %31 = vector.shape_cast %30 : vector<1x192x1152xbf16> to vector<192x1152xbf16>
    %cst_16 = arith.constant dense<0.000000e+00> : vector<5x1152xf32>
    %32 = tpu.matmul %29, %31, %cst_16 {dimension_numbers = #tpu.dot_dimension_numbers<[1], [0], [0], [1], [0, 0, 1, 1], [], []>} : vector<5x192xbf16>, vector<192x1152xbf16>, vector<5x1152xf32> -> vector<5x1152xf32>
    %c0_17 = arith.constant 0 : index
    %c0_18 = arith.constant 0 : index
    %c0_19 = arith.constant 0 : index
    %33 = vector.load %arg6[%c0_17, %c0_18, %c0_19] : memref<1x1x1152xf32, #tpu.memory_space<vmem>>, vector<1x1x1152xf32>
    %34 = vector.shape_cast %33 : vector<1x1x1152xf32> to vector<1x1152xf32>
    %35 = vector.broadcast %34 : vector<1x1152xf32> to vector<5x1152xf32>
    %36 = arith.addf %32, %35 : vector<5x1152xf32>
    %37 = vector.shape_cast %36 : vector<5x1152xf32> to vector<1x5x1152xf32>
    %cst_20 = arith.constant 0.000000e+00 : f32
    %38 = vector.broadcast %cst_20 : f32 to vector<5x192xf32>
    %39 = vector.extract_strided_slice %37 {offsets = [0, 0, 0], sizes = [1, 5, 128], strides = [1, 1, 1]} : vector<1x5x1152xf32> to vector<1x5x128xf32>
    %40 = arith.truncf %39 : vector<1x5x128xf32> to vector<1x5x128xbf16>
    %41 = vector.extract_strided_slice %37 {offsets = [0, 0, 384], sizes = [1, 5, 128], strides = [1, 1, 1]} : vector<1x5x1152xf32> to vector<1x5x128xf32>
    %42 = arith.truncf %41 : vector<1x5x128xf32> to vector<1x5x128xbf16>
    %43 = vector.extract_strided_slice %37 {offsets = [0, 0, 768], sizes = [1, 5, 128], strides = [1, 1, 1]} : vector<1x5x1152xf32> to vector<1x5x128xf32>
    %44 = arith.truncf %43 : vector<1x5x128xf32> to vector<1x5x128xbf16>
    "tpu.trace_start"() <{level = 10 : i32, message = "bqd,bkd->bqk"}> : () -> ()
    %cst_21 = arith.constant dense<0.000000e+00> : vector<1x5x5xf32>
    %45 = tpu.matmul %40, %42, %cst_21 {dimension_numbers = #tpu.dot_dimension_numbers<[2], [2], [1], [1], [0, 0, 0, 1, 1, 1], [0], [0]>} : vector<1x5x128xbf16>, vector<1x5x128xbf16>, vector<1x5x5xf32> -> vector<1x5x5xf32>
    "tpu.trace_stop"() : () -> ()
    %cst_22 = arith.constant dense<0xFF800000> : vector<1x5xf32>
    %46 = vector.multi_reduction <maximumf>, %45, %cst_22 [2] : vector<1x5x5xf32> to vector<1x5xf32>
    %47 = vector.shape_cast %46 : vector<1x5xf32> to vector<1x5x1xf32>
    %48 = vector.broadcast %47 : vector<1x5x1xf32> to vector<1x5x5xf32>
    %49 = arith.subf %45, %48 : vector<1x5x5xf32>
    %50 = math.exp %49 : vector<1x5x5xf32>
    %cst_23 = arith.constant dense<0.000000e+00> : vector<1x5xf32>
    %51 = vector.multi_reduction <add>, %50, %cst_23 [2] : vector<1x5x5xf32> to vector<1x5xf32>
    %52 = vector.shape_cast %51 : vector<1x5xf32> to vector<1x5x1xf32>
    %53 = tpu.reciprocal %52 {approx = true} : vector<1x5x1xf32> -> vector<1x5x1xf32>
    %54 = vector.broadcast %53 : vector<1x5x1xf32> to vector<1x5x5xf32>
    %55 = arith.mulf %50, %54 : vector<1x5x5xf32>
    %56 = arith.truncf %55 : vector<1x5x5xf32> to vector<1x5x5xbf16>
    "tpu.trace_start"() <{level = 10 : i32, message = "bqk,bkd->bqd"}> : () -> ()
    %cst_24 = arith.constant dense<0.000000e+00> : vector<1x5x128xf32>
    %57 = tpu.matmul %56, %44, %cst_24 {dimension_numbers = #tpu.dot_dimension_numbers<[2], [1], [1], [2], [0, 0, 0, 1, 1, 2], [0], [0]>} : vector<1x5x5xbf16>, vector<1x5x128xbf16>, vector<1x5x128xf32> -> vector<1x5x128xf32>
    "tpu.trace_stop"() : () -> ()
    %c0_25 = arith.constant 0 : index
    %c0_26 = arith.constant 0 : index
    %c0_27 = arith.constant 0 : index
    %58 = vector.load %arg7[%c0_25, %c0_26, %c0_27] : memref<1x384x192xbf16, #tpu.memory_space<vmem>>, vector<1x128x192xbf16>
    %59 = vector.shape_cast %58 : vector<1x128x192xbf16> to vector<128x192xbf16>
    %60 = vector.shape_cast %57 : vector<1x5x128xf32> to vector<5x128xf32>
    %61 = arith.truncf %60 : vector<5x128xf32> to vector<5x128xbf16>
    %cst_28 = arith.constant dense<0.000000e+00> : vector<5x192xf32>
    %62 = tpu.matmul %61, %59, %cst_28 {dimension_numbers = #tpu.dot_dimension_numbers<[1], [0], [0], [1], [0, 0, 1, 1], [], []>} : vector<5x128xbf16>, vector<128x192xbf16>, vector<5x192xf32> -> vector<5x192xf32>
    %63 = arith.addf %38, %62 : vector<5x192xf32>
    %64 = vector.extract_strided_slice %37 {offsets = [0, 0, 128], sizes = [1, 5, 128], strides = [1, 1, 1]} : vector<1x5x1152xf32> to vector<1x5x128xf32>
    %65 = arith.truncf %64 : vector<1x5x128xf32> to vector<1x5x128xbf16>
    %66 = vector.extract_strided_slice %37 {offsets = [0, 0, 512], sizes = [1, 5, 128], strides = [1, 1, 1]} : vector<1x5x1152xf32> to vector<1x5x128xf32>
    %67 = arith.truncf %66 : vector<1x5x128xf32> to vector<1x5x128xbf16>
    %68 = vector.extract_strided_slice %37 {offsets = [0, 0, 896], sizes = [1, 5, 128], strides = [1, 1, 1]} : vector<1x5x1152xf32> to vector<1x5x128xf32>
    %69 = arith.truncf %68 : vector<1x5x128xf32> to vector<1x5x128xbf16>
    "tpu.trace_start"() <{level = 10 : i32, message = "bqd,bkd->bqk"}> : () -> ()
    %cst_29 = arith.constant dense<0.000000e+00> : vector<1x5x5xf32>
    %70 = tpu.matmul %65, %67, %cst_29 {dimension_numbers = #tpu.dot_dimension_numbers<[2], [2], [1], [1], [0, 0, 0, 1, 1, 1], [0], [0]>} : vector<1x5x128xbf16>, vector<1x5x128xbf16>, vector<1x5x5xf32> -> vector<1x5x5xf32>
    "tpu.trace_stop"() : () -> ()
    %cst_30 = arith.constant dense<0xFF800000> : vector<1x5xf32>
    %71 = vector.multi_reduction <maximumf>, %70, %cst_30 [2] : vector<1x5x5xf32> to vector<1x5xf32>
    %72 = vector.shape_cast %71 : vector<1x5xf32> to vector<1x5x1xf32>
    %73 = vector.broadcast %72 : vector<1x5x1xf32> to vector<1x5x5xf32>
    %74 = arith.subf %70, %73 : vector<1x5x5xf32>
    %75 = math.exp %74 : vector<1x5x5xf32>
    %cst_31 = arith.constant dense<0.000000e+00> : vector<1x5xf32>
    %76 = vector.multi_reduction <add>, %75, %cst_31 [2] : vector<1x5x5xf32> to vector<1x5xf32>
    %77 = vector.shape_cast %76 : vector<1x5xf32> to vector<1x5x1xf32>
    %78 = tpu.reciprocal %77 {approx = true} : vector<1x5x1xf32> -> vector<1x5x1xf32>
    %79 = vector.broadcast %78 : vector<1x5x1xf32> to vector<1x5x5xf32>
    %80 = arith.mulf %75, %79 : vector<1x5x5xf32>
    %81 = arith.truncf %80 : vector<1x5x5xf32> to vector<1x5x5xbf16>
    "tpu.trace_start"() <{level = 10 : i32, message = "bqk,bkd->bqd"}> : () -> ()
    %cst_32 = arith.constant dense<0.000000e+00> : vector<1x5x128xf32>
    %82 = tpu.matmul %81, %69, %cst_32 {dimension_numbers = #tpu.dot_dimension_numbers<[2], [1], [1], [2], [0, 0, 0, 1, 1, 2], [0], [0]>} : vector<1x5x5xbf16>, vector<1x5x128xbf16>, vector<1x5x128xf32> -> vector<1x5x128xf32>
    "tpu.trace_stop"() : () -> ()
    %c0_33 = arith.constant 0 : index
    %c128 = arith.constant 128 : index
    %c0_34 = arith.constant 0 : index
    %83 = vector.load %arg7[%c0_33, %c128, %c0_34] : memref<1x384x192xbf16, #tpu.memory_space<vmem>>, vector<1x128x192xbf16>
    %84 = vector.shape_cast %83 : vector<1x128x192xbf16> to vector<128x192xbf16>
    %85 = vector.shape_cast %82 : vector<1x5x128xf32> to vector<5x128xf32>
    %86 = arith.truncf %85 : vector<5x128xf32> to vector<5x128xbf16>
    %cst_35 = arith.constant dense<0.000000e+00> : vector<5x192xf32>
    %87 = tpu.matmul %86, %84, %cst_35 {dimension_numbers = #tpu.dot_dimension_numbers<[1], [0], [0], [1], [0, 0, 1, 1], [], []>} : vector<5x128xbf16>, vector<128x192xbf16>, vector<5x192xf32> -> vector<5x192xf32>
    %88 = arith.addf %63, %87 : vector<5x192xf32>
    %89 = vector.extract_strided_slice %37 {offsets = [0, 0, 256], sizes = [1, 5, 128], strides = [1, 1, 1]} : vector<1x5x1152xf32> to vector<1x5x128xf32>
    %90 = arith.truncf %89 : vector<1x5x128xf32> to vector<1x5x128xbf16>
    %91 = vector.extract_strided_slice %37 {offsets = [0, 0, 640], sizes = [1, 5, 128], strides = [1, 1, 1]} : vector<1x5x1152xf32> to vector<1x5x128xf32>
    %92 = arith.truncf %91 : vector<1x5x128xf32> to vector<1x5x128xbf16>
    %93 = vector.extract_strided_slice %37 {offsets = [0, 0, 1024], sizes = [1, 5, 128], strides = [1, 1, 1]} : vector<1x5x1152xf32> to vector<1x5x128xf32>
    %94 = arith.truncf %93 : vector<1x5x128xf32> to vector<1x5x128xbf16>
    "tpu.trace_start"() <{level = 10 : i32, message = "bqd,bkd->bqk"}> : () -> ()
    %cst_36 = arith.constant dense<0.000000e+00> : vector<1x5x5xf32>
    %95 = tpu.matmul %90, %92, %cst_36 {dimension_numbers = #tpu.dot_dimension_numbers<[2], [2], [1], [1], [0, 0, 0, 1, 1, 1], [0], [0]>} : vector<1x5x128xbf16>, vector<1x5x128xbf16>, vector<1x5x5xf32> -> vector<1x5x5xf32>
    "tpu.trace_stop"() : () -> ()
    %cst_37 = arith.constant dense<0xFF800000> : vector<1x5xf32>
    %96 = vector.multi_reduction <maximumf>, %95, %cst_37 [2] : vector<1x5x5xf32> to vector<1x5xf32>
    %97 = vector.shape_cast %96 : vector<1x5xf32> to vector<1x5x1xf32>
    %98 = vector.broadcast %97 : vector<1x5x1xf32> to vector<1x5x5xf32>
    %99 = arith.subf %95, %98 : vector<1x5x5xf32>
    %100 = math.exp %99 : vector<1x5x5xf32>
    %cst_38 = arith.constant dense<0.000000e+00> : vector<1x5xf32>
    %101 = vector.multi_reduction <add>, %100, %cst_38 [2] : vector<1x5x5xf32> to vector<1x5xf32>
    %102 = vector.shape_cast %101 : vector<1x5xf32> to vector<1x5x1xf32>
    %103 = tpu.reciprocal %102 {approx = true} : vector<1x5x1xf32> -> vector<1x5x1xf32>
    %104 = vector.broadcast %103 : vector<1x5x1xf32> to vector<1x5x5xf32>
    %105 = arith.mulf %100, %104 : vector<1x5x5xf32>
    %106 = arith.truncf %105 : vector<1x5x5xf32> to vector<1x5x5xbf16>
    "tpu.trace_start"() <{level = 10 : i32, message = "bqk,bkd->bqd"}> : () -> ()
    %cst_39 = arith.constant dense<0.000000e+00> : vector<1x5x128xf32>
    %107 = tpu.matmul %106, %94, %cst_39 {dimension_numbers = #tpu.dot_dimension_numbers<[2], [1], [1], [2], [0, 0, 0, 1, 1, 2], [0], [0]>} : vector<1x5x5xbf16>, vector<1x5x128xbf16>, vector<1x5x128xf32> -> vector<1x5x128xf32>
    "tpu.trace_stop"() : () -> ()
    %c0_40 = arith.constant 0 : index
    %c256 = arith.constant 256 : index
    %c0_41 = arith.constant 0 : index
    %108 = vector.load %arg7[%c0_40, %c256, %c0_41] : memref<1x384x192xbf16, #tpu.memory_space<vmem>>, vector<1x128x192xbf16>
    %109 = vector.shape_cast %108 : vector<1x128x192xbf16> to vector<128x192xbf16>
    %110 = vector.shape_cast %107 : vector<1x5x128xf32> to vector<5x128xf32>
    %111 = arith.truncf %110 : vector<5x128xf32> to vector<5x128xbf16>
    %cst_42 = arith.constant dense<0.000000e+00> : vector<5x192xf32>
    %112 = tpu.matmul %111, %109, %cst_42 {dimension_numbers = #tpu.dot_dimension_numbers<[1], [0], [0], [1], [0, 0, 1, 1], [], []>} : vector<5x128xbf16>, vector<128x192xbf16>, vector<5x192xf32> -> vector<5x192xf32>
    %113 = arith.addf %88, %112 : vector<5x192xf32>
    %114 = arith.addf %4, %113 : vector<5x192xf32>
    %c0_43 = arith.constant 0 : index
    %c0_44 = arith.constant 0 : index
    %c0_45 = arith.constant 0 : index
    %115 = vector.load %arg8[%c0_43, %c0_44, %c0_45] : memref<1x1x192xf32, #tpu.memory_space<vmem>>, vector<1x1x192xf32>
    %116 = vector.shape_cast %115 : vector<1x1x192xf32> to vector<1x192xf32>
    %117 = vector.broadcast %116 : vector<1x192xf32> to vector<5x192xf32>
    %118 = arith.addf %114, %117 : vector<5x192xf32>
    %c0_46 = arith.constant 0 : index
    %c0_47 = arith.constant 0 : index
    %c0_48 = arith.constant 0 : index
    %119 = vector.load %arg9[%c0_46, %c0_47, %c0_48] : memref<1x1x192xf32, #tpu.memory_space<vmem>>, vector<1x1x192xf32>
    %120 = vector.shape_cast %119 : vector<1x1x192xf32> to vector<1x192xf32>
    %c0_49 = arith.constant 0 : index
    %c0_50 = arith.constant 0 : index
    %c0_51 = arith.constant 0 : index
    %121 = vector.load %arg10[%c0_49, %c0_50, %c0_51] : memref<1x1x192xf32, #tpu.memory_space<vmem>>, vector<1x1x192xf32>
    %122 = vector.shape_cast %121 : vector<1x1x192xf32> to vector<1x192xf32>
    %cst_52 = arith.constant dense<0.000000e+00> : vector<5xf32>
    %123 = vector.multi_reduction <add>, %118, %cst_52 [1] : vector<5x192xf32> to vector<5xf32>
    %124 = vector.shape_cast %123 : vector<5xf32> to vector<5x1xf32>
    %cst_53 = arith.constant 1.920000e+02 : f32
    %125 = vector.broadcast %cst_53 : f32 to vector<5x1xf32>
    %126 = arith.divf %124, %125 : vector<5x1xf32>
    %127 = vector.broadcast %126 : vector<5x1xf32> to vector<5x192xf32>
    %128 = arith.subf %118, %127 : vector<5x192xf32>
    %129 = arith.mulf %128, %128 : vector<5x192xf32>
    %cst_54 = arith.constant dense<0.000000e+00> : vector<5xf32>
    %130 = vector.multi_reduction <add>, %129, %cst_54 [1] : vector<5x192xf32> to vector<5xf32>
    %131 = vector.shape_cast %130 : vector<5xf32> to vector<5x1xf32>
    %cst_55 = arith.constant 1.920000e+02 : f32
    %132 = vector.broadcast %cst_55 : f32 to vector<5x1xf32>
    %133 = arith.divf %131, %132 : vector<5x1xf32>
    %cst_56 = arith.constant 9.99999997E-7 : f32
    %134 = vector.broadcast %cst_56 : f32 to vector<5x1xf32>
    %135 = arith.addf %133, %134 : vector<5x1xf32>
    %136 = math.rsqrt %135 : vector<5x1xf32>
    %137 = vector.broadcast %136 : vector<5x1xf32> to vector<5x192xf32>
    %138 = arith.mulf %128, %137 : vector<5x192xf32>
    %139 = vector.broadcast %120 : vector<1x192xf32> to vector<5x192xf32>
    %140 = arith.mulf %138, %139 : vector<5x192xf32>
    %141 = vector.broadcast %122 : vector<1x192xf32> to vector<5x192xf32>
    %142 = arith.addf %140, %141 : vector<5x192xf32>
    %143 = arith.truncf %142 : vector<5x192xf32> to vector<5x192xbf16>
    %c0_57 = arith.constant 0 : index
    %c0_58 = arith.constant 0 : index
    %c0_59 = arith.constant 0 : index
    %144 = vector.load %arg11[%c0_57, %c0_58, %c0_59] : memref<1x192x768xbf16, #tpu.memory_space<vmem>>, vector<1x192x768xbf16>
    %145 = vector.shape_cast %144 : vector<1x192x768xbf16> to vector<192x768xbf16>
    %cst_60 = arith.constant dense<0.000000e+00> : vector<5x768xf32>
    %146 = tpu.matmul %143, %145, %cst_60 {dimension_numbers = #tpu.dot_dimension_numbers<[1], [0], [0], [1], [0, 0, 1, 1], [], []>} : vector<5x192xbf16>, vector<192x768xbf16>, vector<5x768xf32> -> vector<5x768xf32>
    %c0_61 = arith.constant 0 : index
    %c0_62 = arith.constant 0 : index
    %c0_63 = arith.constant 0 : index
    %147 = vector.load %arg12[%c0_61, %c0_62, %c0_63] : memref<1x1x768xf32, #tpu.memory_space<vmem>>, vector<1x1x768xf32>
    %148 = vector.shape_cast %147 : vector<1x1x768xf32> to vector<1x768xf32>
    %149 = vector.broadcast %148 : vector<1x768xf32> to vector<5x768xf32>
    %150 = arith.addf %146, %149 : vector<5x768xf32>
    %cst_64 = arith.constant 5.000000e-01 : f32
    %151 = vector.broadcast %cst_64 : f32 to vector<5x768xf32>
    %152 = arith.mulf %151, %150 : vector<5x768xf32>
    %cst_65 = arith.constant 0.707106769 : f32
    %153 = vector.broadcast %cst_65 : f32 to vector<5x768xf32>
    %154 = arith.mulf %150, %153 : vector<5x768xf32>
    %cst_66 = arith.constant 0.000000e+00 : f32
    %155 = vector.broadcast %cst_66 : f32 to vector<5x768xf32>
    %156 = arith.cmpf oge, %154, %155 : vector<5x768xf32>
    %cst_67 = arith.constant 1.000000e+00 : f32
    %cst_68 = arith.constant -1.000000e+00 : f32
    %157 = vector.broadcast %cst_67 : f32 to vector<5x768xf32>
    %158 = vector.broadcast %cst_68 : f32 to vector<5x768xf32>
    %159 = arith.select %156, %157, %158 : vector<5x768xi1>, vector<5x768xf32>
    %160 = math.absf %154 : vector<5x768xf32>
    %cst_69 = arith.constant 0.327591091 : f32
    %161 = vector.broadcast %cst_69 : f32 to vector<5x768xf32>
    %162 = arith.mulf %161, %160 : vector<5x768xf32>
    %cst_70 = arith.constant 1.000000e+00 : f32
    %163 = vector.broadcast %cst_70 : f32 to vector<5x768xf32>
    %164 = arith.addf %163, %162 : vector<5x768xf32>
    %165 = tpu.reciprocal %164 {approx = true} : vector<5x768xf32> -> vector<5x768xf32>
    %cst_71 = arith.constant 1.06140542 : f32
    %166 = vector.broadcast %cst_71 : f32 to vector<5x768xf32>
    %167 = arith.mulf %166, %165 : vector<5x768xf32>
    %cst_72 = arith.constant -1.45315206 : f32
    %168 = vector.broadcast %cst_72 : f32 to vector<5x768xf32>
    %169 = arith.addf %167, %168 : vector<5x768xf32>
    %170 = arith.mulf %169, %165 : vector<5x768xf32>
    %cst_73 = arith.constant 1.42141378 : f32
    %171 = vector.broadcast %cst_73 : f32 to vector<5x768xf32>
    %172 = arith.addf %170, %171 : vector<5x768xf32>
    %173 = arith.mulf %172, %165 : vector<5x768xf32>
    %cst_74 = arith.constant -0.284496725 : f32
    %174 = vector.broadcast %cst_74 : f32 to vector<5x768xf32>
    %175 = arith.addf %173, %174 : vector<5x768xf32>
    %176 = arith.mulf %175, %165 : vector<5x768xf32>
    %cst_75 = arith.constant 0.254829586 : f32
    %177 = vector.broadcast %cst_75 : f32 to vector<5x768xf32>
    %178 = arith.addf %176, %177 : vector<5x768xf32>
    %179 = arith.mulf %178, %165 : vector<5x768xf32>
    %cst_76 = arith.constant 0.000000e+00 : f32
    %180 = vector.broadcast %cst_76 : f32 to vector<5x768xf32>
    %181 = arith.subf %180, %160 : vector<5x768xf32>
    %182 = arith.mulf %181, %160 : vector<5x768xf32>
    %183 = math.exp %182 : vector<5x768xf32>
    %184 = arith.mulf %179, %183 : vector<5x768xf32>
    %cst_77 = arith.constant 1.000000e+00 : f32
    %185 = vector.broadcast %cst_77 : f32 to vector<5x768xf32>
    %186 = arith.subf %185, %184 : vector<5x768xf32>
    %187 = arith.mulf %159, %186 : vector<5x768xf32>
    %cst_78 = arith.constant 1.000000e+00 : f32
    %188 = vector.broadcast %cst_78 : f32 to vector<5x768xf32>
    %189 = arith.addf %188, %187 : vector<5x768xf32>
    %190 = arith.mulf %152, %189 : vector<5x768xf32>
    %191 = arith.truncf %190 : vector<5x768xf32> to vector<5x768xbf16>
    %c0_79 = arith.constant 0 : index
    %c0_80 = arith.constant 0 : index
    %c0_81 = arith.constant 0 : index
    %192 = vector.load %arg13[%c0_79, %c0_80, %c0_81] : memref<1x768x192xbf16, #tpu.memory_space<vmem>>, vector<1x768x192xbf16>
    %193 = vector.shape_cast %192 : vector<1x768x192xbf16> to vector<768x192xbf16>
    %cst_82 = arith.constant dense<0.000000e+00> : vector<5x192xf32>
    %194 = tpu.matmul %191, %193, %cst_82 {dimension_numbers = #tpu.dot_dimension_numbers<[1], [0], [0], [1], [0, 0, 1, 1], [], []>} : vector<5x768xbf16>, vector<768x192xbf16>, vector<5x192xf32> -> vector<5x192xf32>
    %195 = arith.addf %118, %194 : vector<5x192xf32>
    %c0_83 = arith.constant 0 : index
    %c0_84 = arith.constant 0 : index
    %c0_85 = arith.constant 0 : index
    %196 = vector.load %arg14[%c0_83, %c0_84, %c0_85] : memref<1x1x192xf32, #tpu.memory_space<vmem>>, vector<1x1x192xf32>
    %197 = vector.shape_cast %196 : vector<1x1x192xf32> to vector<1x192xf32>
    %198 = vector.broadcast %197 : vector<1x192xf32> to vector<5x192xf32>
    %199 = arith.addf %195, %198 : vector<5x192xf32>
    %200 = vector.shape_cast %199 : vector<5x192xf32> to vector<1x5x192xf32>
    %c0_86 = arith.constant 0 : index
    %c0_87 = arith.constant 0 : index
    %c0_88 = arith.constant 0 : index
    %201 = vector.load %arg16[%c0_86, %c0_87, %c0_88] : memref<1x5x192xf32, #tpu.memory_space<vmem>>, vector<1x5x192xf32>
    tpu.vector_store %arg16[%c0_86, %c0_87, %c0_88], %200 {strides = array<i32>} : memref<1x5x192xf32, #tpu.memory_space<vmem>>, vector<1x5x192xf32>,
    %c1_i32 = arith.constant 1 : i32
    %202 = arith.cmpi eq, %arg1, %c1_i32 : i32
    %203 = arith.extui %202 : i1 to i32
    %c0_i32_89 = arith.constant 0 : i32
    %204 = arith.cmpi ne, %203, %c0_i32_89 : i32
    scf.if %204 {
      %c0_90 = arith.constant 0 : index
      %c0_91 = arith.constant 0 : index
      %c0_92 = arith.constant 0 : index
      %205 = vector.load %arg16[%c0_90, %c0_91, %c0_92] : memref<1x5x192xf32, #tpu.memory_space<vmem>>, vector<1x5x192xf32>
      %c0_93 = arith.constant 0 : index
      %c0_94 = arith.constant 0 : index
      %c0_95 = arith.constant 0 : index
      %206 = vector.load %arg15[%c0_93, %c0_94, %c0_95] : memref<1x5x192xf32, #tpu.memory_space<vmem>>, vector<1x5x192xf32>
      tpu.vector_store %arg15[%c0_93, %c0_94, %c0_95], %205 {strides = array<i32>} : memref<1x5x192xf32, #tpu.memory_space<vmem>>, vector<1x5x192xf32>,
    } else {
    }
    return
  }
  func.func @transform_0(%arg0: i32, %arg1: i32) -> (i32, i32, i32) {
    %c0_i32 = arith.constant 0 : i32
    %c0_i32_0 = arith.constant 0 : i32
    %c0_i32_1 = arith.constant 0 : i32
    return %arg0, %c0_i32, %c0_i32_0 : i32, i32, i32
  }
  func.func @transform_1(%arg0: i32, %arg1: i32) -> (i32, i32, i32) {
    %c0_i32 = arith.constant 0 : i32
    %c0_i32_0 = arith.constant 0 : i32
    %c0_i32_1 = arith.constant 0 : i32
    return %arg1, %c0_i32, %c0_i32_0 : i32, i32, i32
  }
  func.func @transform_2(%arg0: i32, %arg1: i32) -> (i32, i32, i32) {
    %c0_i32 = arith.constant 0 : i32
    %c0_i32_0 = arith.constant 0 : i32
    %c0_i32_1 = arith.constant 0 : i32
    return %arg1, %c0_i32, %c0_i32_0 : i32, i32, i32
  }
  func.func @transform_3(%arg0: i32, %arg1: i32) -> (i32, i32, i32) {
    %c0_i32 = arith.constant 0 : i32
    %c0_i32_0 = arith.constant 0 : i32
    %c0_i32_1 = arith.constant 0 : i32
    return %arg1, %c0_i32, %c0_i32_0 : i32, i32, i32
  }
  func.func @transform_4(%arg0: i32, %arg1: i32) -> (i32, i32, i32) {
    %c0_i32 = arith.constant 0 : i32
    %c0_i32_0 = arith.constant 0 : i32
    %c0_i32_1 = arith.constant 0 : i32
    return %arg1, %c0_i32, %c0_i32_0 : i32, i32, i32
  }
  func.func @transform_5(%arg0: i32, %arg1: i32) -> (i32, i32, i32) {
    %c0_i32 = arith.constant 0 : i32
    %c0_i32_0 = arith.constant 0 : i32
    %c0_i32_1 = arith.constant 0 : i32
    return %arg1, %c0_i32, %c0_i32_0 : i32, i32, i32
  }
  func.func @transform_6(%arg0: i32, %arg1: i32) -> (i32, i32, i32) {
    %c0_i32 = arith.constant 0 : i32
    %c0_i32_0 = arith.constant 0 : i32
    %c0_i32_1 = arith.constant 0 : i32
    return %arg1, %c0_i32, %c0_i32_0 : i32, i32, i32
  }
  func.func @transform_7(%arg0: i32, %arg1: i32) -> (i32, i32, i32) {
    %c0_i32 = arith.constant 0 : i32
    %c0_i32_0 = arith.constant 0 : i32
    %c0_i32_1 = arith.constant 0 : i32
    return %arg1, %c0_i32, %c0_i32_0 : i32, i32, i32
  }
  func.func @transform_8(%arg0: i32, %arg1: i32) -> (i32, i32, i32) {
    %c0_i32 = arith.constant 0 : i32
    %c0_i32_0 = arith.constant 0 : i32
    %c0_i32_1 = arith.constant 0 : i32
    return %arg1, %c0_i32, %c0_i32_0 : i32, i32, i32
  }
  func.func @transform_9(%arg0: i32, %arg1: i32) -> (i32, i32, i32) {
    %c0_i32 = arith.constant 0 : i32
    %c0_i32_0 = arith.constant 0 : i32
    %c0_i32_1 = arith.constant 0 : i32
    return %arg1, %c0_i32, %c0_i32_0 : i32, i32, i32
  }
  func.func @transform_10(%arg0: i32, %arg1: i32) -> (i32, i32, i32) {
    %c0_i32 = arith.constant 0 : i32
    %c0_i32_0 = arith.constant 0 : i32
    %c0_i32_1 = arith.constant 0 : i32
    return %arg1, %c0_i32, %c0_i32_0 : i32, i32, i32
  }
  func.func @transform_11(%arg0: i32, %arg1: i32) -> (i32, i32, i32) {
    %c0_i32 = arith.constant 0 : i32
    %c0_i32_0 = arith.constant 0 : i32
    %c0_i32_1 = arith.constant 0 : i32
    return %arg1, %c0_i32, %c0_i32_0 : i32, i32, i32
  }
  func.func @transform_12(%arg0: i32, %arg1: i32) -> (i32, i32, i32) {
    %c0_i32 = arith.constant 0 : i32
    %c0_i32_0 = arith.constant 0 : i32
    %c0_i32_1 = arith.constant 0 : i32
    return %arg1, %c0_i32, %c0_i32_0 : i32, i32, i32
  }
  func.func @transform_13(%arg0: i32, %arg1: i32) -> (i32, i32, i32) {
    %c0_i32 = arith.constant 0 : i32
    %c0_i32_0 = arith.constant 0 : i32
    %c0_i32_1 = arith.constant 0 : i32
    return %arg0, %c0_i32, %c0_i32_0 : i32, i32, i32
  }
}

module attributes {stable_mosaic.version = 11 : i64} {
  func.func @_head_kernel(%arg0: i32, %arg1: memref<2x5x192xf32, #tpu.memory_space<vmem>>, %arg2: memref<1x192xf32, #tpu.memory_space<vmem>>, %arg3: memref<1x192xf32, #tpu.memory_space<vmem>>, %arg4: memref<192x256xbf16, #tpu.memory_space<vmem>>, %arg5: memref<1x256xf32, #tpu.memory_space<vmem>>, %arg6: memref<1x256xf32, #tpu.memory_space<vmem>>, %arg7: memref<1x256xf32, #tpu.memory_space<vmem>>, %arg8: memref<2x256xf32, #tpu.memory_space<vmem>>) attributes {dimension_semantics = [#tpu.dimension_semantics<arbitrary>], iteration_bounds = array<i64: 1>, scalar_prefetch = 0 : i64, scratch_operands = 0 : i64, tpu.core_type = #tpu.core_type<tc>, window_params = [{pipeline_mode = #tpu.pipeline_mode<synchronous>, transform_indices = @transform_0, window_bounds = array<i64: 2, 5, 192>}, {pipeline_mode = #tpu.pipeline_mode<synchronous>, transform_indices = @transform_1, window_bounds = array<i64: 1, 192>}, {pipeline_mode = #tpu.pipeline_mode<synchronous>, transform_indices = @transform_2, window_bounds = array<i64: 1, 192>}, {pipeline_mode = #tpu.pipeline_mode<synchronous>, transform_indices = @transform_3, window_bounds = array<i64: 192, 256>}, {pipeline_mode = #tpu.pipeline_mode<synchronous>, transform_indices = @transform_4, window_bounds = array<i64: 1, 256>}, {pipeline_mode = #tpu.pipeline_mode<synchronous>, transform_indices = @transform_5, window_bounds = array<i64: 1, 256>}, {pipeline_mode = #tpu.pipeline_mode<synchronous>, transform_indices = @transform_6, window_bounds = array<i64: 1, 256>}, {pipeline_mode = #tpu.pipeline_mode<synchronous>, transform_indices = @transform_7, window_bounds = array<i64: 2, 256>}]} {
    %c0 = arith.constant 0 : index
    %c0_0 = arith.constant 0 : index
    %c0_1 = arith.constant 0 : index
    %0 = vector.load %arg1[%c0, %c0_0, %c0_1] : memref<2x5x192xf32, #tpu.memory_space<vmem>>, vector<2x1x192xf32>
    %1 = vector.shape_cast %0 : vector<2x1x192xf32> to vector<2x192xf32>
    %c0_2 = arith.constant 0 : index
    %c0_3 = arith.constant 0 : index
    %2 = vector.load %arg2[%c0_2, %c0_3] : memref<1x192xf32, #tpu.memory_space<vmem>>, vector<1x192xf32>
    %c0_4 = arith.constant 0 : index
    %c0_5 = arith.constant 0 : index
    %3 = vector.load %arg3[%c0_4, %c0_5] : memref<1x192xf32, #tpu.memory_space<vmem>>, vector<1x192xf32>
    %cst = arith.constant dense<0.000000e+00> : vector<2xf32>
    %4 = vector.multi_reduction <add>, %1, %cst [1] : vector<2x192xf32> to vector<2xf32>
    %5 = vector.shape_cast %4 : vector<2xf32> to vector<2x1xf32>
    %cst_6 = arith.constant 1.920000e+02 : f32
    %6 = vector.broadcast %cst_6 : f32 to vector<2x1xf32>
    %7 = arith.divf %5, %6 : vector<2x1xf32>
    %8 = vector.broadcast %7 : vector<2x1xf32> to vector<2x192xf32>
    %9 = arith.subf %1, %8 : vector<2x192xf32>
    %10 = arith.mulf %9, %9 : vector<2x192xf32>
    %cst_7 = arith.constant dense<0.000000e+00> : vector<2xf32>
    %11 = vector.multi_reduction <add>, %10, %cst_7 [1] : vector<2x192xf32> to vector<2xf32>
    %12 = vector.shape_cast %11 : vector<2xf32> to vector<2x1xf32>
    %cst_8 = arith.constant 1.920000e+02 : f32
    %13 = vector.broadcast %cst_8 : f32 to vector<2x1xf32>
    %14 = arith.divf %12, %13 : vector<2x1xf32>
    %cst_9 = arith.constant 9.99999997E-7 : f32
    %15 = vector.broadcast %cst_9 : f32 to vector<2x1xf32>
    %16 = arith.addf %14, %15 : vector<2x1xf32>
    %17 = math.rsqrt %16 : vector<2x1xf32>
    %18 = vector.broadcast %17 : vector<2x1xf32> to vector<2x192xf32>
    %19 = arith.mulf %9, %18 : vector<2x192xf32>
    %20 = vector.broadcast %2 : vector<1x192xf32> to vector<2x192xf32>
    %21 = arith.mulf %19, %20 : vector<2x192xf32>
    %22 = vector.broadcast %3 : vector<1x192xf32> to vector<2x192xf32>
    %23 = arith.addf %21, %22 : vector<2x192xf32>
    %24 = arith.truncf %23 : vector<2x192xf32> to vector<2x192xbf16>
    %c0_10 = arith.constant 0 : index
    %c0_11 = arith.constant 0 : index
    %25 = vector.load %arg4[%c0_10, %c0_11] : memref<192x256xbf16, #tpu.memory_space<vmem>>, vector<192x256xbf16>
    %cst_12 = arith.constant dense<0.000000e+00> : vector<2x256xf32>
    %26 = tpu.matmul %24, %25, %cst_12 {dimension_numbers = #tpu.dot_dimension_numbers<[1], [0], [0], [1], [0, 0, 1, 1], [], []>} : vector<2x192xbf16>, vector<192x256xbf16>, vector<2x256xf32> -> vector<2x256xf32>
    %c0_13 = arith.constant 0 : index
    %c0_14 = arith.constant 0 : index
    %27 = vector.load %arg5[%c0_13, %c0_14] : memref<1x256xf32, #tpu.memory_space<vmem>>, vector<1x256xf32>
    %28 = vector.broadcast %27 : vector<1x256xf32> to vector<2x256xf32>
    %29 = arith.addf %26, %28 : vector<2x256xf32>
    %c0_15 = arith.constant 0 : index
    %c0_16 = arith.constant 0 : index
    %30 = vector.load %arg6[%c0_15, %c0_16] : memref<1x256xf32, #tpu.memory_space<vmem>>, vector<1x256xf32>
    %c0_17 = arith.constant 0 : index
    %c0_18 = arith.constant 0 : index
    %31 = vector.load %arg7[%c0_17, %c0_18] : memref<1x256xf32, #tpu.memory_space<vmem>>, vector<1x256xf32>
    %cst_19 = arith.constant dense<0.000000e+00> : vector<2xf32>
    %32 = vector.multi_reduction <add>, %29, %cst_19 [1] : vector<2x256xf32> to vector<2xf32>
    %33 = vector.shape_cast %32 : vector<2xf32> to vector<2x1xf32>
    %cst_20 = arith.constant 2.560000e+02 : f32
    %34 = vector.broadcast %cst_20 : f32 to vector<2x1xf32>
    %35 = arith.divf %33, %34 : vector<2x1xf32>
    %36 = vector.broadcast %35 : vector<2x1xf32> to vector<2x256xf32>
    %37 = arith.subf %29, %36 : vector<2x256xf32>
    %38 = arith.mulf %37, %37 : vector<2x256xf32>
    %cst_21 = arith.constant dense<0.000000e+00> : vector<2xf32>
    %39 = vector.multi_reduction <add>, %38, %cst_21 [1] : vector<2x256xf32> to vector<2xf32>
    %40 = vector.shape_cast %39 : vector<2xf32> to vector<2x1xf32>
    %cst_22 = arith.constant 2.560000e+02 : f32
    %41 = vector.broadcast %cst_22 : f32 to vector<2x1xf32>
    %42 = arith.divf %40, %41 : vector<2x1xf32>
    %cst_23 = arith.constant 9.99999974E-6 : f32
    %43 = vector.broadcast %cst_23 : f32 to vector<2x1xf32>
    %44 = arith.addf %42, %43 : vector<2x1xf32>
    %45 = math.rsqrt %44 : vector<2x1xf32>
    %46 = vector.broadcast %45 : vector<2x1xf32> to vector<2x256xf32>
    %47 = arith.mulf %37, %46 : vector<2x256xf32>
    %48 = vector.broadcast %30 : vector<1x256xf32> to vector<2x256xf32>
    %49 = arith.mulf %47, %48 : vector<2x256xf32>
    %50 = vector.broadcast %31 : vector<1x256xf32> to vector<2x256xf32>
    %51 = arith.addf %49, %50 : vector<2x256xf32>
    %c0_24 = arith.constant 0 : index
    %c0_25 = arith.constant 0 : index
    %52 = vector.load %arg8[%c0_24, %c0_25] : memref<2x256xf32, #tpu.memory_space<vmem>>, vector<2x256xf32>
    tpu.vector_store %arg8[%c0_24, %c0_25], %51 {strides = array<i32>} : memref<2x256xf32, #tpu.memory_space<vmem>>, vector<2x256xf32>,
    return
  }
  func.func @transform_0(%arg0: i32) -> (i32, i32, i32) {
    %c0_i32 = arith.constant 0 : i32
    %c0_i32_0 = arith.constant 0 : i32
    %c0_i32_1 = arith.constant 0 : i32
    %c0_i32_2 = arith.constant 0 : i32
    return %c0_i32, %c0_i32_0, %c0_i32_1 : i32, i32, i32
  }
  func.func @transform_1(%arg0: i32) -> (i32, i32) {
    %c0_i32 = arith.constant 0 : i32
    %c0_i32_0 = arith.constant 0 : i32
    %c0_i32_1 = arith.constant 0 : i32
    return %c0_i32, %c0_i32_0 : i32, i32
  }
  func.func @transform_2(%arg0: i32) -> (i32, i32) {
    %c0_i32 = arith.constant 0 : i32
    %c0_i32_0 = arith.constant 0 : i32
    %c0_i32_1 = arith.constant 0 : i32
    return %c0_i32, %c0_i32_0 : i32, i32
  }
  func.func @transform_3(%arg0: i32) -> (i32, i32) {
    %c0_i32 = arith.constant 0 : i32
    %c0_i32_0 = arith.constant 0 : i32
    %c0_i32_1 = arith.constant 0 : i32
    return %c0_i32, %c0_i32_0 : i32, i32
  }
  func.func @transform_4(%arg0: i32) -> (i32, i32) {
    %c0_i32 = arith.constant 0 : i32
    %c0_i32_0 = arith.constant 0 : i32
    %c0_i32_1 = arith.constant 0 : i32
    return %c0_i32, %c0_i32_0 : i32, i32
  }
  func.func @transform_5(%arg0: i32) -> (i32, i32) {
    %c0_i32 = arith.constant 0 : i32
    %c0_i32_0 = arith.constant 0 : i32
    %c0_i32_1 = arith.constant 0 : i32
    return %c0_i32, %c0_i32_0 : i32, i32
  }
  func.func @transform_6(%arg0: i32) -> (i32, i32) {
    %c0_i32 = arith.constant 0 : i32
    %c0_i32_0 = arith.constant 0 : i32
    %c0_i32_1 = arith.constant 0 : i32
    return %c0_i32, %c0_i32_0 : i32, i32
  }
  func.func @transform_7(%arg0: i32) -> (i32, i32) {
    %c0_i32 = arith.constant 0 : i32
    %c0_i32_0 = arith.constant 0 : i32
    %c0_i32_1 = arith.constant 0 : i32
    return %c0_i32, %c0_i32_0 : i32, i32
  }
}

</mosaic_0001>

<bundles_post_ra>
// kernel: _lambda_.3
= control target key start
LH: loop header
LB: loop body
LE: loop exit
PB: predicated region body
PF: predicated region fallthrough
CT: control target
= control target key end

     0   :  { %s1338_s18 = smov 0   ;;  %s1682_s0 = inlined_call_operand.vmem [shape: f32[2,4,768], index: 0, kind: input, shape index: {}]   ;;  %s1683_s1 = inlined_call_operand.vmem [shape: bf16[768,192], index: 1, kind: input, shape index: {}]   ;;  %s1684_s2 = inlined_call_operand.vmem [shape: f32[1,192], index: 2, kind: input, shape index: {}]   ;;  %s1685_s3 = inlined_call_operand.vmem [shape: f32[1,192], index: 3, kind: input, shape index: {}]   ;;  %s1686_s4 = inlined_call_operand.vmem [shape: f32[5,192], index: 4, kind: input, shape index: {}]   ;;  %s1687_s5 = inlined_call_operand.vmem [shape: f32[2,5,192], index: 5, kind: output, shape index: {}]  }
   0x1 LB: > { %s1037_s19 = sadd.s32 4294967295, %s1306_s18   ;;  %p1041_p0 = scmp.ge.s32.totalorder %s1306_s18, 1  ;;  %s1306_s18 = sphi %s1338_s18, %s15_s18  }
   0x2   : > { %p187_p1 = scmp.lt.s32.totalorder %s1306_s18, 3 }
   0x4   : > { %p188_p2 = pnand %p1041_p0, %p187_p1 }
   0x5   : > { %v1153_v0 = vld [vmem:[%s1683_s1 + $0x4] ss:$8 sps:$4 sm:$0xff] (!%p188_p2)   ;;  %v1155_v1 = vld [vmem:[%s1683_s1] ss:$8 sps:$4 sm:$0xff] (!%p188_p2)   ;;  %v1159_v4 = vld [vmem:[%s1683_s1 + $0x14] ss:$8 sps:$4 sm:$0xff] (!%p188_p2)  }
   0x6   : > { %191 = sbr.rel (%p188_p2) target bundleno = 354 (0x162), region = 40  ;;  %831 = vmatprep.subr.bf16.mxu0 (!%p188_p2), %v1153_v0  ;;  %v1156_v2 = vld [vmem:[%s1683_s1 + $0x104] ss:$8 sps:$4 sm:$0xff] (!%p188_p2)   ;;  %v1158_v3 = vld [vmem:[%s1683_s1 + $0x100] ss:$8 sps:$4 sm:$0xff] (!%p188_p2)   ;;  %p215_p3 = scmp.lt.s32.totalorder (!%p188_p2), %s1037_s19, 1 }
   0x7   : > { %832 = vmatpush1.bf16.msra.mxu0 (!%p188_p2), %v1155_v1  ;;  %v1161_v5 = vld [vmem:[%s1683_s1 + $0x10] ss:$8 sps:$4 sm:$0xff] (!%p188_p2)   ;;  %872 = vmatprep.subr.bf16.mxu1 (!%p188_p2), %v1156_v2  ;;  %v1162_v6 = vld [vmem:[%s1683_s1 + $0x114] ss:$8 sps:$4 sm:$0xff] (!%p188_p2)   ;;  %v1165_v8 = vld [vmem:[%s1683_s1 + $0x24] ss:$8 sps:$4 sm:$0xff] (!%p188_p2)  }
   0x8   : > { %873 = vmatpush1.bf16.msra.mxu1 (!%p188_p2), %v1158_v3  ;;  %833 = vmatprep.subr.bf16.mxu0 (!%p188_p2), %v1159_v4  ;;  %v1164_v7 = vld [vmem:[%s1683_s1 + $0x110] ss:$8 sps:$4 sm:$0xff] (!%p188_p2)   ;;  %v1167_v9 = vld [vmem:[%s1683_s1 + $0x20] ss:$8 sps:$4 sm:$0xff] (!%p188_p2)   ;;  %v1168_v10 = vld [vmem:[%s1683_s1 + $0x124] ss:$8 sps:$4 sm:$0xff] (!%p188_p2)  }
   0x9   : > { %874 = vmatprep.subr.bf16.mxu1 (!%p188_p2), %v1162_v6  ;;  %v1171_v11 = vld [vmem:[%s1683_s1 + $0x34] ss:$8 sps:$4 sm:$0xff] (!%p188_p2)   ;;  %v1170_v12 = vld [vmem:[%s1683_s1 + $0x120] ss:$8 sps:$4 sm:$0xff] (!%p188_p2)   ;;  %v1173_v14 = vld [vmem:[%s1683_s1 + $0x30] ss:$8 sps:$4 sm:$0xff] (!%p188_p2)  }
   0xa   : > { %v1174_v13 = vld [vmem:[%s1683_s1 + $0x134] ss:$8 sps:$4 sm:$0xff] (!%p188_p2)   ;;  %v1177_v15 = vld [vmem:[%s1683_s1 + $0x44] ss:$8 sps:$4 sm:$0xff] (!%p188_p2)   ;;  %v1176_v16 = vld [vmem:[%s1683_s1 + $0x130] ss:$8 sps:$4 sm:$0xff] (!%p188_p2)  }
   0xb   : > { %834 = vmatpush1.bf16.msra.mxu0 (!%p188_p2), %v1161_v5  ;;  %v1180_v17 = vld [vmem:[%s1683_s1 + $0x144] ss:$8 sps:$4 sm:$0xff] (!%p188_p2)   ;;  %v1179_v18 = vld [vmem:[%s1683_s1 + $0x40] ss:$8 sps:$4 sm:$0xff] (!%p188_p2)   ;;  %v1183_v19 = vld [vmem:[%s1683_s1 + $0x54] ss:$8 sps:$4 sm:$0xff] (!%p188_p2)  }
   0xc   : > { %835 = vmatprep.subr.bf16.mxu0 (!%p188_p2), %v1165_v8  ;;  %875 = vmatpush1.bf16.msra.mxu1 (!%p188_p2), %v1164_v7  ;;  %v1182_v20 = vld [vmem:[%s1683_s1 + $0x140] ss:$8 sps:$4 sm:$0xff] (!%p188_p2)   ;;  %v1186_v21 = vld [vmem:[%s1683_s1 + $0x154] ss:$8 sps:$4 sm:$0xff] (!%p188_p2)   ;;  %v1185_v22 = vld [vmem:[%s1683_s1 + $0x50] ss:$8 sps:$4 sm:$0xff] (!%p188_p2)  }
   0xd   : > { %876 = vmatprep.subr.bf16.mxu1 %v1168_v10  ;;  %v1189_v23 = vld [vmem:[%s1683_s1 + $0x64] ss:$8 sps:$4 sm:$0xff]   ;;  %v1188_v24 = vld [vmem:[%s1683_s1 + $0x150] ss:$8 sps:$4 sm:$0xff]   ;;  %v1191_v26 = vld [vmem:[%s1683_s1 + $0x60] ss:$8 sps:$4 sm:$0xff]  }
   0xe   : > { %v1192_v25 = vld [vmem:[%s1683_s1 + $0x164] ss:$8 sps:$4 sm:$0xff]   ;;  %v1195_v27 = vld [vmem:[%s1683_s1 + $0x74] ss:$8 sps:$4 sm:$0xff]   ;;  %v1194_v28 = vld [vmem:[%s1683_s1 + $0x160] ss:$8 sps:$4 sm:$0xff]  }
   0xf   : > { %836 = vmatpush1.bf16.msra.mxu0 %v1167_v9  ;;  %v1198_v29 = vld [vmem:[%s1683_s1 + $0x174] ss:$8 sps:$4 sm:$0xff]   ;;  %v1197_v30 = vld [vmem:[%s1683_s1 + $0x70] ss:$8 sps:$4 sm:$0xff]   ;;  %v1201_v31 = vld [vmem:[%s1683_s1 + $0x84] ss:$8 sps:$4 sm:$0xff]  }
  0x10   : > { %837 = vmatprep.subr.bf16.mxu0 %v1171_v11  ;;  %877 = vmatpush1.bf16.msra.mxu1 %v1170_v12  ;;  %v1200_v32 = vld [vmem:[%s1683_s1 + $0x170] ss:$8 sps:$4 sm:$0xff]   ;;  %v1204_v33 = vld [vmem:[%s1683_s1 + $0x184] ss:$8 sps:$4 sm:$0xff]   ;;  %v1203_v34 = vld [vmem:[%s1683_s1 + $0x80] ss:$8 sps:$4 sm:$0xff]  }
  0x11   : > { %878 = vmatprep.subr.bf16.mxu1 %v1174_v13  ;;  %s1689_s19 = smov (!%p215_p3, %s1037_s19), 1  ;;  %v1207_v35 = vld [vmem:[%s1683_s1 + $0x94] ss:$8 sps:$4 sm:$0xff]   ;;  %v1206_v36 = vld [vmem:[%s1683_s1 + $0x180] ss:$8 sps:$4 sm:$0xff]   ;;  %vm980_vm1 = vcmask 520193  }
  0x12   : > { %v1210_v37 = vld [vmem:[%s1683_s1 + $0x194] ss:$8 sps:$4 sm:$0xff]   ;;  %v1209_v38 = vld [vmem:[%s1683_s1 + $0x90] ss:$8 sps:$4 sm:$0xff]   ;;  %s1144_s29 = smul.u32 24, %s1689_s19  ;;  %s1143_s8 = sshll.u32 %s1689_s19, 4 }
  0x13   : > { %838 = vmatpush1.bf16.msra.mxu0 %v1173_v14  ;;  %v1213_v39 = vld [vmem:[%s1683_s1 + $0xa4] ss:$8 sps:$4 sm:$0xff]   ;;  %v1212_v40 = vld [vmem:[%s1683_s1 + $0x190] ss:$8 sps:$4 sm:$0xff]   ;;  %v1215_v42 = vld [vmem:[%s1683_s1 + $0xa0] ss:$8 sps:$4 sm:$0xff]   ;;  %s1659_s11 = scalar_lea.vmem %s1687_s5, %s1143_s8 }
  0x14   : > { %839 = vmatprep.subr.bf16.mxu0 %v1177_v15  ;;  %879 = vmatpush1.bf16.msra.mxu1 %v1176_v16  ;;  %v1216_v41 = vld [vmem:[%s1683_s1 + $0x1a4] ss:$8 sps:$4 sm:$0xff]   ;;  %s1485_s15 = scalar_lea.vmem %s1682_s0, %s1144_s29  ;;  %v1219_v43 = vld [vmem:[%s1683_s1 + $0xb4] ss:$8 sps:$4 sm:$0xff]   ;;  %v1218_v44 = vld [vmem:[%s1683_s1 + $0x1a0] ss:$8 sps:$4 sm:$0xff]  }
  0x15   : > { %880 = vmatprep.subr.bf16.mxu1 %v1180_v17  ;;  %v1222_v45 = vld [vmem:[%s1683_s1 + $0x1b4] ss:$8 sps:$4 sm:$0xff]   ;;  %v225_v46 = vld [vmem:[%s1485_s15] sm:$0xff]  ;;  %v1221_v47 = vld [vmem:[%s1683_s1 + $0xb0] ss:$8 sps:$4 sm:$0xff]  }
  0x16   : > { %v231_v48 = vcombine.high %v225_v46, %v225_v46  ;;  %v1225_v49 = vld [vmem:[%s1683_s1 + $0xc4] ss:$8 sps:$4 sm:$0xff]   ;;  %v1224_v51 = vld [vmem:[%s1683_s1 + $0x1b0] ss:$8 sps:$4 sm:$0xff]   ;;  %v1227_v55 = vld [vmem:[%s1683_s1 + $0xc0] ss:$8 sps:$4 sm:$0xff]   ;;  %v237_v7 = vpack.c.bf16 %v225_v46, %v225_v46 }
  0x17   : > { %840 = vmatpush1.bf16.msra.mxu0 %v1179_v18  ;;  %v226_v50 = vld [vmem:[%s1485_s15 + $0x8] sm:$0xff]  ;;  %v1231_v57 = vld [vmem:[%s1683_s1 + $0xd4] ss:$8 sps:$4 sm:$0xff]   ;;  %v1233_v60 = vld [vmem:[%s1683_s1 + $0xd0] ss:$8 sps:$4 sm:$0xff]  }
  0x18   : > { %841 = vmatprep.subr.bf16.mxu0 %v1183_v19  ;;  %881 = vmatpush1.bf16.msra.mxu1 %v1182_v20  ;;  %v238_v52 = vpack.c.bf16 %v231_v48, %v231_v48  ;;  %v232_v53 = vcombine.high %v226_v50, %v226_v50  ;;  %v1228_v54 = vld [vmem:[%s1683_s1 + $0x1c4] ss:$8 sps:$4 sm:$0xff]   ;;  %v1230_v58 = vld [vmem:[%s1683_s1 + $0x1c0] ss:$8 sps:$4 sm:$0xff]   ;;  %v1234_v59 = vld [vmem:[%s1683_s1 + $0x1d4] ss:$8 sps:$4 sm:$0xff]   ;;  %v239_v9 = vpack.c.bf16 %v226_v50, %v226_v50 }
  0x19   : > { %882 = vmatprep.subr.bf16.mxu1 %v1186_v21  ;;  %v1237_v61 = vld [vmem:[%s1683_s1 + $0xe4] ss:$8 sps:$4 sm:$0xff]   ;;  %v1236_v62 = vld [vmem:[%s1683_s1 + $0x1d0] ss:$8 sps:$4 sm:$0xff]   ;;  %v1239_v0 = vld [vmem:[%s1683_s1 + $0xe0] ss:$8 sps:$4 sm:$0xff]  }
  0x1a   : > { %863 = vmatprep.mubr.bf16.mxu0 %v238_v52  ;;  %v240_v56 = vpack.c.bf16 %v232_v53, %v232_v53  ;;  %v1240_v63 = vld [vmem:[%s1683_s1 + $0x1e4] ss:$8 sps:$4 sm:$0xff]   ;;  %v1243_v1 = vld [vmem:[%s1683_s1 + $0xf4] ss:$8 sps:$4 sm:$0xff]   ;;  %v1242_v2 = vld [vmem:[%s1683_s1 + $0x1e0] ss:$8 sps:$4 sm:$0xff]  }
  0x1b   : > { %842 = vmatpush1.bf16.msra.mxu0 %v1185_v22  ;;  %v1246_v3 = vld [vmem:[%s1683_s1 + $0x1f4] ss:$8 sps:$4 sm:$0xff]   ;;  %v1245_v4 = vld [vmem:[%s1683_s1 + $0xf0] ss:$8 sps:$4 sm:$0xff]   ;;  %v1252_v5 = vld [vmem:[%s1683_s1 + $0x204] ss:$8 sps:$4 sm:$0xff]  }
  0x1c   : > { %843 = vmatprep.subr.bf16.mxu0 %v1189_v23  ;;  %883 = vmatpush1.bf16.msra.mxu1 %v1188_v24  ;;  %v1249_v6 = vld [vmem:[%s1683_s1 + $0x1f0] ss:$8 sps:$4 sm:$0xff]   ;;  %v1250_v8 = vld [vmem:[%s1683_s1 + $0x200] ss:$8 sps:$4 sm:$0xff]   ;;  %v1256_v10 = vld [vmem:[%s1683_s1 + $0x214] ss:$8 sps:$4 sm:$0xff]  }
  0x1d   : > { %884 = vmatprep.subr.bf16.mxu1 %v1192_v25  ;;  %904 = vmatprep.mubr.bf16.mxu1 %v240_v56  ;;  %v1562_v11 = vld [vmem:[%s1485_s15 + $0x10] sm:$0xff]  ;;  %v1259_v15 = vld [vmem:[%s1683_s1 + $0x224] ss:$8 sps:$4 sm:$0xff]   ;;  %v1257_v16 = vld [vmem:[%s1683_s1 + $0x220] ss:$8 sps:$4 sm:$0xff]  }
  0x1e   : > { %v233_v12 = vcombine.high %v1562_v11, %v1562_v11  ;;  %v1254_v13 = vld [vmem:[%s1683_s1 + $0x210] ss:$8 sps:$4 sm:$0xff]   ;;  %v1262_v17 = vld [vmem:[%s1683_s1 + $0x234] ss:$8 sps:$4 sm:$0xff]   ;;  %v1265_v19 = vld [vmem:[%s1683_s1 + $0x244] ss:$8 sps:$4 sm:$0xff]  }
  0x1f   : > { %844 = vmatpush1.bf16.msra.mxu0 %v1191_v26  ;;  %v1260_v18 = vld [vmem:[%s1683_s1 + $0x230] ss:$8 sps:$4 sm:$0xff]   ;;  %v1263_v20 = vld [vmem:[%s1683_s1 + $0x240] ss:$8 sps:$4 sm:$0xff]   ;;  %v1268_v21 = vld [vmem:[%s1683_s1 + $0x254] ss:$8 sps:$4 sm:$0xff]  }
  0x20   : > { %845 = vmatprep.subr.bf16.mxu0 %v1195_v27  ;;  %885 = vmatpush1.bf16.msra.mxu1 %v1194_v28  ;;  %v242_v14 = vpack.c.bf16 %v233_v12, %v233_v12  ;;  %v1266_v22 = vld [vmem:[%s1683_s1 + $0x250] ss:$8 sps:$4 sm:$0xff]   ;;  %v1271_v23 = vld [vmem:[%s1683_s1 + $0x264] ss:$8 sps:$4 sm:$0xff]   ;;  %v1269_v24 = vld [vmem:[%s1683_s1 + $0x260] ss:$8 sps:$4 sm:$0xff]  }
  0x21   : > { %886 = vmatprep.subr.bf16.mxu1 %v1198_v29  ;;  %v1274_v25 = vld [vmem:[%s1683_s1 + $0x274] ss:$8 sps:$4 sm:$0xff]   ;;  %v1272_v26 = vld [vmem:[%s1683_s1 + $0x270] ss:$8 sps:$4 sm:$0xff]   ;;  %v1277_v27 = vld [vmem:[%s1683_s1 + $0x284] ss:$8 sps:$4 sm:$0xff]  }
  0x22   : > { %v1275_v28 = vld [vmem:[%s1683_s1 + $0x280] ss:$8 sps:$4 sm:$0xff]   ;;  %v1280_v29 = vld [vmem:[%s1683_s1 + $0x294] ss:$8 sps:$4 sm:$0xff]  }
  0x23   : > { %846 = vmatpush1.bf16.msra.mxu0 %v1197_v30  ;;  %v1278_v30 = vld [vmem:[%s1683_s1 + $0x290] ss:$8 sps:$4 sm:$0xff]   ;;  %v955_v46 = vld [vmem:[%s1686_s4] ss:$8 sm:$0x3] }
  0x24   : > { %847 = vmatprep.subr.bf16.mxu0 %v1201_v31  ;;  %887 = vmatpush1.bf16.msra.mxu1 %v1200_v32  ;;  %v1283_v31 = vld [vmem:[%s1683_s1 + $0x2a4] ss:$8 sps:$4 sm:$0xff]   ;;  %v1281_v32 = vld [vmem:[%s1683_s1 + $0x2a0] ss:$8 sps:$4 sm:$0xff]  }
  0x25   : > { %888 = vmatprep.subr.bf16.mxu1 %v1204_v33  ;;  %v1286_v33 = vld [vmem:[%s1683_s1 + $0x2b4] ss:$8 sps:$4 sm:$0xff]   ;;  %v339_v50 = vld [vmem:[%s1684_s2] sm:$0x3] }
  0x27   : > { %848 = vmatpush1.bf16.msra.mxu0 %v1203_v34  ;;  %v1284_v34 = vld [vmem:[%s1683_s1 + $0x2b0] ss:$8 sps:$4 sm:$0xff]  }
  0x28   : > { %849 = vmatprep.subr.bf16.mxu0 %v1207_v35  ;;  %889 = vmatpush1.bf16.msra.mxu1 %v1206_v36  ;;  %v1289_v35 = vld [vmem:[%s1683_s1 + $0x2c4] ss:$8 sps:$4 sm:$0xff]   ;;  %v1287_v36 = vld [vmem:[%s1683_s1 + $0x2c0] ss:$8 sps:$4 sm:$0xff]  }
  0x29   : > { %890 = vmatprep.subr.bf16.mxu1 %v1210_v37  ;;  %v1292_v37 = vld [vmem:[%s1683_s1 + $0x2d4] ss:$8 sps:$4 sm:$0xff]  }
  0x2b   : > { %850 = vmatpush1.bf16.msra.mxu0 %v1209_v38  ;;  %v1290_v38 = vld [vmem:[%s1683_s1 + $0x2d0] ss:$8 sps:$4 sm:$0xff]  }
  0x2c   : > { %851 = vmatprep.subr.bf16.mxu0 %v1213_v39  ;;  %891 = vmatpush1.bf16.msra.mxu1 %v1212_v40  ;;  %v1295_v39 = vld [vmem:[%s1683_s1 + $0x2e4] ss:$8 sps:$4 sm:$0xff]   ;;  %v1293_v40 = vld [vmem:[%s1683_s1 + $0x2e0] ss:$8 sps:$4 sm:$0xff]  }
  0x2d   : > { %892 = vmatprep.subr.bf16.mxu1 %v1216_v41  ;;  %v1298_v41 = vld [vmem:[%s1683_s1 + $0x2f4] ss:$8 sps:$4 sm:$0xff]  }
  0x2f   : > { %852 = vmatpush1.bf16.msra.mxu0 %v1215_v42  ;;  %v1296_v42 = vld [vmem:[%s1683_s1 + $0x2f0] ss:$8 sps:$4 sm:$0xff]  }
  0x30   : > { %853 = vmatprep.subr.bf16.mxu0 %v1219_v43  ;;  %893 = vmatpush1.bf16.msra.mxu1 %v1218_v44  ;;  %v241_v43 = vpack.c.bf16 %v1562_v11, %v1562_v11  ;;  %v341_v44 = vlaneseq }
  0x31   : > { %894 = vmatprep.subr.bf16.mxu1 %v1222_v45  ;;  %v954_v45 = vld [vmem:[%s1685_s3] sm:$0x3] }
  0x32   : > { %vm959_vm0 = vcmp.lt.s32.totalorder %v341_v44, 192  ;;  %v342_v48 = vshrl.u32 %v341_v44, 7 }
  0x33   : > { %854 = vmatpush1.bf16.msra.mxu0 %v1221_v47  ;;  %v956_v47 = vadd.f32 %v955_v46, %v954_v45 }
  0x34   : > { %855 = vmatprep.subr.bf16.mxu0 %v1225_v49  ;;  %895 = vmatpush1.bf16.msra.mxu1 %v1224_v51  ;;  %v343_v49 = vsub.s32 0, %v342_v48  ;;  %v347_v51 = vsub.s32 1, %v342_v48 }
  0x35   : > { %896 = vmatprep.subr.bf16.mxu1 %v1228_v54  ;;  %961 = vst.msk [vmem:[%s1659_s11] ss:$8 sm:$0x3] %vm959_vm0, %v956_v47 }
  0x36   : > { %v344_v52 = vrot.slane %v339_v50, %v343_v49  ;;  %v348_v53 = vrot.slane %v339_v50, %v347_v51 }
  0x37   : > { %856 = vmatpush1.bf16.msra.mxu0 %v1227_v55 }
  0x38   : > { %857 = vmatprep.subr.bf16.mxu0 %v1231_v57  ;;  %897 = vmatpush1.bf16.msra.mxu1 %v1230_v58 }
  0x39   : > { %898 = vmatprep.subr.bf16.mxu1 %v1234_v59 }
  0x3b   : > { %858 = vmatpush1.bf16.msra.mxu0 %v1233_v60 }
  0x3c   : > { %859 = vmatprep.subr.bf16.mxu0 %v1237_v61  ;;  %899 = vmatpush1.bf16.msra.mxu1 %v1236_v62 }
  0x3d   : > { %900 = vmatprep.subr.bf16.mxu1 %v1240_v63 }
  0x3f   : > { %860 = vmatpush1.bf16.msra.mxu0 %v1239_v0 }
  0x40   : > { %861 = vmatprep.subr.bf16.mxu0 %v1243_v1  ;;  %901 = vmatpush1.bf16.msra.mxu1 %v1242_v2  ;;  %v963_v2 = vld [vmem:[%s1686_s4] sm:$0x1e] }
  0x41   : > { %902 = vmatprep.subr.bf16.mxu1 %v1246_v3  ;;  %v964_v3 = vld [vmem:[%s1686_s4 + $0x8] sm:$0x1e] }
  0x43   : > { %862 = vmatpush1.bf16.msra.mxu0 %v1245_v4  ;;  %v967_v4 = vrot.slane %v963_v2, 1 }
  0x44   : > { %913 = vmatprep.subr.bf16.mxu0 %v1252_v5  ;;  %903 = vmatpush1.bf16.msra.mxu1 %v1249_v6  ;;  %v968_v6 = vrot.slane %v964_v3, 1 }
  0x46   : > { %864 = vmatmul.mubr.bf16.vlgmr.msra.gmra.mrb[0].mxu0 %v237_v7 }
  0x47   : > { %914 = vmatpush1.bf16.msra.mxu0 %v1250_v8  ;;  %905 = vmatmul.mubr.bf16.vlgmr.msra.gmra.mrb[0].mxu1 %v239_v9 }
  0x48   : > { %915 = vmatprep.subr.bf16.mxu0 %v1256_v10  ;;  %945 = vmatprep.mubr.bf16.mxu0 %v242_v14 }
  0x4b   : > { %916 = vmatpush1.bf16.msra.mxu0 %v1254_v13 }
  0x4c   : > { %917 = vmatprep.subr.bf16.mxu0 %v1259_v15 }
  0x4f   : > { %918 = vmatpush1.bf16.msra.mxu0 %v1257_v16 }
  0x50   : > { %919 = vmatprep.subr.bf16.mxu0 %v1262_v17 }
  0x53   : > { %920 = vmatpush1.bf16.msra.mxu0 %v1260_v18 }
  0x54   : > { %921 = vmatprep.subr.bf16.mxu0 %v1265_v19 }
  0x57   : > { %922 = vmatpush1.bf16.msra.mxu0 %v1263_v20 }
  0x58   : > { %923 = vmatprep.subr.bf16.mxu0 %v1268_v21 }
  0x5b   : > { %924 = vmatpush1.bf16.msra.mxu0 %v1266_v22 }
  0x5c   : > { %925 = vmatprep.subr.bf16.mxu0 %v1271_v23 }
  0x5f   : > { %926 = vmatpush1.bf16.msra.mxu0 %v1269_v24 }
  0x60   : > { %927 = vmatprep.subr.bf16.mxu0 %v1274_v25 }
  0x63   : > { %928 = vmatpush1.bf16.msra.mxu0 %v1272_v26 }
  0x64   : > { %929 = vmatprep.subr.bf16.mxu0 %v1277_v27 }
  0x67   : > { %930 = vmatpush1.bf16.msra.mxu0 %v1275_v28 }
  0x68   : > { %931 = vmatprep.subr.bf16.mxu0 %v1280_v29 }
  0x6b   : > { %932 = vmatpush1.bf16.msra.mxu0 %v1278_v30 }
  0x6c   : > { %933 = vmatprep.subr.bf16.mxu0 %v1283_v31 }
  0x6f   : > { %934 = vmatpush1.bf16.msra.mxu0 %v1281_v32 }
  0x70   : > { %935 = vmatprep.subr.bf16.mxu0 %v1286_v33 }
  0x73   : > { %936 = vmatpush1.bf16.msra.mxu0 %v1284_v34 }
  0x74   : > { %937 = vmatprep.subr.bf16.mxu0 %v1289_v35 }
  0x77   : > { %938 = vmatpush1.bf16.msra.mxu0 %v1287_v36 }
  0x78   : > { %939 = vmatprep.subr.bf16.mxu0 %v1292_v37 }
  0x7b   : > { %940 = vmatpush1.bf16.msra.mxu0 %v1290_v38 }
  0x7c   : > { %941 = vmatprep.subr.bf16.mxu0 %v1295_v39 }
  0x7f   : > { %942 = vmatpush1.bf16.msra.mxu0 %v1293_v40 }
  0x80   : > { %943 = vmatprep.subr.bf16.mxu0 %v1298_v41 }
  0x83   : > { %944 = vmatpush1.bf16.msra.mxu0 %v1296_v42 }
  0x86   : > { %946 = vmatmul.mubr.bf16.vlgmr.msra.gmra.mrb[4].mxu0 %v241_v43 }
 0x119   : > { %v865_v54 = vpop.f32.mrb[0].mxu0 }
 0x11a   : > { %v866_v55 = vadd.f32 %v865_v54, %v344_v52  ;;  %v867_v56 = vpop.f32.mrb[1].mxu0  ;;  %v906_v59 = vpop.f32.mrb[0].mxu1 }
 0x11b   : > { %v868_v57 = vadd.f32 %v867_v56, %v348_v53  ;;  %v869_v58 = vpop.f32.mrb[2].mxu0  ;;  %v908_v62 = vpop.f32.mrb[1].mxu1 }
 0x11c   : > { %v907_v60 = vadd.f32 %v906_v59, %v866_v55  ;;  %v870_v61 = vpop.f32.mrb[3].mxu0  ;;  %v910_v0 = vpop.f32.mrb[2].mxu1 }
 0x11d   : > { %v909_v63 = vadd.f32 %v908_v62, %v868_v57  ;;  %v911_v1 = vpop.f32.mrb[3].mxu1 }
 0x159   : > { %v947_v5 = vpop.f32.mrb[4].mxu0 }
 0x15a   : > { %v948_v7 = vadd.f32 %v947_v5, %v907_v60  ;;  %v949_v8 = vpop.f32.mrb[5].mxu0 }
 0x15b   : > { %v950_v9 = vadd.f32 %v949_v8, %v909_v63  ;;  %v951_v10 = vpop.f32.mrb[6].mxu0 }
 0x15c   : > { %v971_v11 = vadd.f32 %v967_v4, %v948_v7  ;;  %v952_v12 = vpop.f32.mrb[7].mxu0 }
 0x15d   : > { %v972_v13 = vadd.f32 %v968_v6, %v950_v9 }
 0x15e   : > { %v975_v14 = vrot.slane %v971_v11, 7 }
 0x15f   : > { %v976_v15 = vrot.slane %v972_v13, 7 }
 0x160   : > { %979 = vst [vmem:[%s1659_s11] sm:$0x1e] %v975_v14 }
 0x161   : > { %981 = vst.msk [vmem:[%s1659_s11 + $0x8] sm:$0x1e] %vm980_vm1, %v976_v15 }
 0x162 PF: > { %s15_s18 = sadd.s32 1, %s1306_s18  }
 0x163   : > { %p12_p4 = scmp.ge.s32.totalorder %s15_s18, 4  }
 0x165   :  { %14 = sbr.rel (!%p12_p4) target bundleno = 1 (0x1), region = 70 }

// kernel: _lambda_.5
= control target key start
LH: loop header
LB: loop body
LE: loop exit
PB: predicated region body
PF: predicated region fallthrough
CT: control target
= control target key end

     0   :  { %v39_v2 = vlaneseq  ;;  %v615_v3 = vmov 1966171168   ;;  %vm60_vm0 = vcmask 1041408   ;;  %s816_s0 = inlined_call_operand.vmem [shape: f32[2,5,192], index: 0, kind: input, shape index: {}]   ;;  %s817_s1 = inlined_call_operand.vmem [shape: f32[1,192], index: 1, kind: input, shape index: {}]   ;;  %s818_s2 = inlined_call_operand.vmem [shape: f32[1,192], index: 2, kind: input, shape index: {}]   ;;  %s819_s3 = inlined_call_operand.vmem [shape: bf16[192,256], index: 3, kind: input, shape index: {}]   ;;  %s820_s4 = inlined_call_operand.vmem [shape: f32[1,256], index: 4, kind: input, shape index: {}, may-alias: {4,6}]   ;;  %s821_s5 = inlined_call_operand.vmem [shape: f32[1,256], index: 5, kind: input, shape index: {}]   ;;  %s822_s6 = inlined_call_operand.vmem [shape: f32[1,256], index: 6, kind: input, shape index: {}, may-alias: {4,6}]   ;;  %s823_s7 = inlined_call_operand.hbm [shape: f32[2,256], index: 7, kind: output, shape index: {}]  }
   0x1   :  { %v28_v0 = vld [vmem:[%s816_s0] ss:$8 sm:$0x3]  ;;  %v522_v1 = vld [vmem:[%s816_s0 + $0x10] ss:$8 sm:$0x3]  ;;  %v37_v4 = vunpack.c.l.s4 %v615_v3 }
   0x2   :  { %v40_v5 = vshrl.u32 %v39_v2, 7  ;;  %v35_v6 = vcombine.low %v28_v0, %v522_v1 }
   0x3   :  { %v38_v7 = vunpack.c.0.s8 %v37_v4 }
   0x5   :  { %v663_v8 = vsub.s32 %v38_v7, %v40_v5 }
   0x7   :  { %v42_v9 = vrot.slane %v35_v6, %v663_v8 }
   0x8   :  { %12 = vsyncpa [#allocation3], 0  ;;  %vm62_vm1 = vcmask 517120   ;;  %v551_v16 = vld [vmem:[%s819_s3 + $0x4] ss:$8 sps:$4 sm:$0xff]   ;;  %v691_v23 = vsub.s32 0, %v40_v5 }
   0x9   :  { %v43_v10 = vcombine.high %v42_v9, %v42_v9  ;;  %v50_v11 = vrot.slane %v42_v9, %v663_v8  ;;  %v553_v17 = vld [vmem:[%s819_s3] ss:$8 sps:$4 sm:$0xff]   ;;  %v554_v18 = vld [vmem:[%s819_s3 + $0x14] ss:$8 sps:$4 sm:$0xff]   ;;  %406 = vmatprep.subr.bf16.mxu0 %v551_v16  ;;  %v556_v19 = vld [vmem:[%s819_s3 + $0x10] ss:$8 sps:$4 sm:$0xff]  }
   0xa   :  { %407 = vmatpush1.bf16.msra.mxu0 %v553_v17  ;;  %v557_v20 = vld [vmem:[%s819_s3 + $0x24] ss:$8 sps:$4 sm:$0xff]   ;;  %v559_v21 = vld [vmem:[%s819_s3 + $0x20] ss:$8 sps:$4 sm:$0xff]   ;;  %v560_v22 = vld [vmem:[%s819_s3 + $0x34] ss:$8 sps:$4 sm:$0xff]  }
   0xb   :  { %v57_v12 = vrot.slane %v43_v10, %v663_v8  ;;  %v61_v13 = vsel %vm60_vm0, %v50_v11, 0.0  ;;  %408 = vmatprep.subr.bf16.mxu0 %v554_v18  ;;  %v693_v24 = vsub.s32 1, %v40_v5  ;;  %v562_v41 = vld [vmem:[%s819_s3 + $0x30] ss:$8 sps:$4 sm:$0xff]   ;;  %v563_v42 = vld [vmem:[%s819_s3 + $0x44] ss:$8 sps:$4 sm:$0xff]  }
   0xc   :  { %v565_v43 = vld [vmem:[%s819_s3 + $0x40] ss:$8 sps:$4 sm:$0xff]   ;;  %v566_v44 = vld [vmem:[%s819_s3 + $0x54] ss:$8 sps:$4 sm:$0xff]   ;;  %v568_v45 = vld [vmem:[%s819_s3 + $0x50] ss:$8 sps:$4 sm:$0xff]  }
   0xd   :  { %v63_v14 = vsel %vm62_vm1, %v57_v12, 0.0  ;;  %v569_v46 = vld [vmem:[%s819_s3 + $0x64] ss:$8 sps:$4 sm:$0xff]   ;;  %v571_v47 = vld [vmem:[%s819_s3 + $0x60] ss:$8 sps:$4 sm:$0xff]   ;;  %vm275_vm2 = vcmask 1041409  }
   0xe   :  { %v64_v15 = vadd.f32 %v63_v14, %v61_v13  ;;  %409 = vmatpush1.bf16.msra.mxu0 %v556_v19  ;;  %v572_v48 = vld [vmem:[%s819_s3 + $0x74] ss:$8 sps:$4 sm:$0xff]   ;;  %v574_v49 = vld [vmem:[%s819_s3 + $0x70] ss:$8 sps:$4 sm:$0xff]   ;;  %v575_v50 = vld [vmem:[%s819_s3 + $0x84] ss:$8 sps:$4 sm:$0xff]  }
   0xf   :  { %410 = vmatprep.subr.bf16.mxu0 %v557_v20  ;;  %v577_v51 = vld [vmem:[%s819_s3 + $0x80] ss:$8 sps:$4 sm:$0xff]   ;;  %v578_v52 = vld [vmem:[%s819_s3 + $0x94] ss:$8 sps:$4 sm:$0xff]   ;;  %v580_v53 = vld [vmem:[%s819_s3 + $0x90] ss:$8 sps:$4 sm:$0xff]  }
  0x10   :  { %65 = vadd.xlane.f32.xlu0 %v64_v15  ;;  %v581_v54 = vld [vmem:[%s819_s3 + $0xa4] ss:$8 sps:$4 sm:$0xff]   ;;  %v583_v55 = vld [vmem:[%s819_s3 + $0xa0] ss:$8 sps:$4 sm:$0xff]   ;;  %v584_v56 = vld [vmem:[%s819_s3 + $0xb4] ss:$8 sps:$4 sm:$0xff]  }
  0x11   :  { %v586_v57 = vld [vmem:[%s819_s3 + $0xb0] ss:$8 sps:$4 sm:$0xff]   ;;  %v31_v58 = vld [vmem:[%s817_s1] sm:$0x3]  ;;  %vm402_vm3 = vcmask 523264   ;;  %s616_s10 = smov [#allocation2]  }
  0x12   :  { %411 = vmatpush1.bf16.msra.mxu0 %v559_v21  ;;  %v32_v59 = vld [vmem:[%s818_s2] sm:$0x3]  ;;  %v136_v61 = vrot.slane %v31_v58, %v691_v23  ;;  %v140_v62 = vrot.slane %v31_v58, %v693_v24  ;;  %s514_s11 = sshll.u32 %s616_s10, 4  ;;  %s515_s11 = int_to_ptr.vmem [resolvable:$true] %s514_s11 }
  0x13   :  { %412 = vmatprep.subr.bf16.mxu0 %v560_v22  ;;  %p596_p1 = scmp.lt.s32.totalorder %s515_s11, %s515_s11 }
  0x14   :  { %v141_v3 = vcombine.low %v136_v61, %v140_v62 }
  0x16   :  { %413 = vmatpush1.bf16.msra.mxu0 %v562_v41  ;;  %v148_v5 = vrot.slane %v141_v3, %v663_v8  ;;  %v448_v3 = vld [vmem:[%s822_s6] sm:$0x3] }
  0x17   :  { %414 = vmatprep.subr.bf16.mxu0 %v563_v42  ;;  %v254_v42 = vld [vmem:[%s820_s4] sm:$0x3] }
  0x18   :  { %v149_v7 = vcombine.high %v148_v5, %v148_v5  ;;  %v156_v13 = vrot.slane %v148_v5, %v663_v8 }
  0x1a   :  { %415 = vmatpush1.bf16.msra.mxu0 %v565_v43  ;;  %v163_v14 = vrot.slane %v149_v7, %v663_v8  ;;  %v259_v43 = vrot.slane %v254_v42, %v691_v23 }
  0x1b   :  { %416 = vmatprep.subr.bf16.mxu0 %v566_v44  ;;  %v263_v44 = vrot.slane %v254_v42, %v693_v24 }
  0x1e   :  { %417 = vmatpush1.bf16.msra.mxu0 %v568_v45 }
  0x1f   :  { %418 = vmatprep.subr.bf16.mxu0 %v569_v46 }
  0x22   :  { %419 = vmatpush1.bf16.msra.mxu0 %v571_v47 }
  0x23   :  { %420 = vmatprep.subr.bf16.mxu0 %v572_v48 }
  0x26   :  { %421 = vmatpush1.bf16.msra.mxu0 %v574_v49 }
  0x27   :  { %422 = vmatprep.subr.bf16.mxu0 %v575_v50 }
  0x2a   :  { %423 = vmatpush1.bf16.msra.mxu0 %v577_v51 }
  0x2b   :  { %424 = vmatprep.subr.bf16.mxu0 %v578_v52 }
  0x2e   :  { %425 = vmatpush1.bf16.msra.mxu0 %v580_v53 }
  0x2f   :  { %426 = vmatprep.subr.bf16.mxu0 %v581_v54 }
  0x32   :  { %427 = vmatpush1.bf16.msra.mxu0 %v583_v55 }
  0x33   :  { %428 = vmatprep.subr.bf16.mxu0 %v584_v56 }
  0x36   :  { %429 = vmatpush1.bf16.msra.mxu0 %v586_v57 }
  0x9d   :  { %v66_v25 = vpop.xlane.xlu0 %65 }
  0x9e   :  { %v68_v26 = vmul.f32 0.0052083335, %v66_v25 }
  0xa0   :  { %v73_v27 = vrot.slane %v68_v26, %v691_v23  ;;  %v77_v28 = vrot.slane %v68_v26, %v693_v24 }
  0xa2   :  { %v697_v29 = vsub.f32 %v28_v0, %v73_v27  ;;  %v699_v30 = vsub.f32 %v522_v1, %v77_v28  ;;  %v172_v0 = vrot.slane %v32_v59, %v691_v23  ;;  %v176_v1 = vrot.slane %v32_v59, %v693_v24 }
  0xa4   :  { %v82_v31 = vmul.f32 %v697_v29, %v697_v29  ;;  %v83_v32 = vmul.f32 %v699_v30, %v699_v30  ;;  %v177_v4 = vcombine.low %v172_v0, %v176_v1 }
  0xa6   :  { %v86_v33 = vcombine.low %v82_v31, %v83_v32  ;;  %v184_v6 = vrot.slane %v177_v4, %v663_v8 }
  0xa8   :  { %v93_v34 = vrot.slane %v86_v33, %v663_v8  ;;  %v185_v9 = vcombine.high %v184_v6, %v184_v6  ;;  %v192_v17 = vrot.slane %v184_v6, %v663_v8 }
  0xaa   :  { %v94_v35 = vcombine.high %v93_v34, %v93_v34  ;;  %v101_v36 = vrot.slane %v93_v34, %v663_v8  ;;  %v199_v18 = vrot.slane %v185_v9, %v663_v8 }
  0xac   :  { %v108_v37 = vrot.slane %v94_v35, %v663_v8  ;;  %v111_v38 = vsel %vm60_vm0, %v101_v36, 0.0 }
  0xae   :  { %v112_v39 = vsel %vm62_vm1, %v108_v37, 0.0 }
  0xaf   :  { %v113_v40 = vadd.f32 %v112_v39, %v111_v38 }
  0xb1   :  { %114 = vadd.xlane.f32.xlu0 %v113_v40 }
 0x13e   :  { %v115_v60 = vpop.xlane.xlu0 %114 }
 0x13f   :  { %v116_v63 = vmul.f32 0.0052083335, %v115_v60 }
 0x141   :  { %v117_v2 = vadd.f32 1e-06, %v116_v63 }
 0x143   :  { %587 = vrsqrt.f32 %v117_v2  ;;  %v447_v2 = vld [vmem:[%s821_s5] sm:$0x3]  ;;  %s591_s5 = scalar_lea.vmem %s515_s11, 64 }
 0x144   :  { %v474_v4 = vrot.slane %v447_v2, %v691_v23  ;;  %v478_v5 = vrot.slane %v447_v2, %v693_v24  ;;  %p592_p0 = scmp.ne.s32.totalorder %s515_s11, %s591_s5  ;;  %p597_p2 = scmp.lt.s32.totalorder %s591_s5, %s591_s5 }
 0x146   :  { %p598_p3 = por %p597_p2, %p596_p1 }
 0x148   :  { %p599_p4 = pnand %p598_p3, %p592_p0 }
 0x14d   :  { %v588_v10 = vpop.eup %587 }
 0x14e   :  { %v123_v11 = vrot.slane %v588_v10, %v691_v23  ;;  %v127_v12 = vrot.slane %v588_v10, %v693_v24  ;;  %v487_v10 = vrot.slane %v448_v3, %v691_v23 }
 0x150   :  { %v130_v15 = vmul.f32 %v123_v11, %v697_v29  ;;  %v131_v16 = vmul.f32 %v127_v12, %v699_v30  ;;  %v491_v11 = vrot.slane %v448_v3, %v693_v24 }
 0x152   :  { %v166_v19 = vmul.f32 %v156_v13, %v130_v15  ;;  %v167_v20 = vmul.f32 %v163_v14, %v131_v16 }
 0x154   :  { %v202_v21 = vadd.f32 %v192_v17, %v166_v19  ;;  %v203_v22 = vadd.f32 %v199_v18, %v167_v20 }
 0x156   :  { %v213_v25 = vrot.slane %v202_v21, %v693_v24  ;;  %v221_v26 = vrot.slane %v203_v22, %v693_v24  ;;  %v209_v27 = vrot.slane %v202_v21, %v691_v23  ;;  %v217_v28 = vrot.slane %v203_v22, %v691_v23 }
 0x158   :  { %v227_v31 = vpack.c.bf16 %v213_v25, %v213_v25  ;;  %v229_v29 = vpack.c.bf16 %v221_v26, %v221_v26  ;;  %v226_v32 = vpack.c.bf16 %v209_v27, %v209_v27  ;;  %v228_v30 = vpack.c.bf16 %v217_v28, %v217_v28 }
 0x15a   :  { %v273_v33 = vunpack.c.l.b16 %v229_v29  ;;  %v272_v34 = vunpack.c.l.b16 %v228_v30  ;;  %v271_v8 = vunpack.c.l.b16 %v227_v31  ;;  %v270_v36 = vunpack.c.l.b16 %v226_v32 }
 0x15c   :  { %v277_v35 = vrot.slane %v273_v33, 7  ;;  %v274_v37 = vrot.slane %v272_v34, 7 }
 0x15e   :  { %v278_v38 = vsel %vm275_vm2, %v277_v35, %v271_v8  ;;  %v276_v39 = vsel %vm275_vm2, %v274_v37, %v270_v36 }
 0x15f   :  { %v280_v40 = vpack.c.b16 %v278_v38, %v278_v38  ;;  %v279_v41 = vpack.c.b16 %v276_v39, %v276_v39 }
 0x161   :  { %547 = vmatprep.mubr.msk.bf16.mxu0 %vm402_vm3, %v280_v40 }
 0x162   :  { %439 = vmatmul.mubr.bf16.vlgmr.msra.gmra.mrb[0].mxu0 %v279_v41 }
 0x235   :  { %v440_v45 = vpop.f32.mrb[0].mxu0 }
 0x236   :  { %v441_v46 = vadd.f32 %v440_v45, %v259_v43  ;;  %v442_v47 = vpop.f32.mrb[1].mxu0 }
 0x237   :  { %v443_v48 = vadd.f32 %v442_v47, %v263_v44  ;;  %v444_v49 = vpop.f32.mrb[2].mxu0 }
 0x238   :  { %v445_v50 = vpop.f32.mrb[3].mxu0  ;;  %v449_v51 = vsel %vm60_vm0, %v441_v46, 0.0 }
 0x239   :  { %v450_v52 = vsel %vm60_vm0, %v443_v48, 0.0 }
 0x23a   :  { %v451_v53 = vadd.f32 %v450_v52, %v449_v51 }
 0x23c   :  { %452 = vadd.xlane.f32.xlu1 %v451_v53 }
 0x2c9   :  { %v453_v54 = vpop.xlane.xlu1 %452 }
 0x2ca   :  { %v455_v55 = vmul.f32 0.00390625, %v453_v54 }
 0x2cc   :  { %v456_v56 = vsub.f32 %v441_v46, %v455_v55  ;;  %v457_v57 = vsub.f32 %v443_v48, %v455_v55 }
 0x2ce   :  { %v458_v58 = vmul.f32 %v456_v56, %v456_v56  ;;  %v459_v59 = vmul.f32 %v457_v57, %v457_v57 }
 0x2d0   :  { %v460_v60 = vsel %vm60_vm0, %v458_v58, 0.0  ;;  %v461_v61 = vsel %vm60_vm0, %v459_v59, 0.0 }
 0x2d1   :  { %v462_v62 = vadd.f32 %v461_v61, %v460_v60 }
 0x2d3   :  { %463 = vadd.xlane.f32.xlu1 %v462_v62 }
 0x360   :  { %v464_v63 = vpop.xlane.xlu1 %463 }
 0x361   :  { %v465_v0 = vmul.f32 0.00390625, %v464_v63 }
 0x363   :  { %v466_v1 = vadd.f32 1e-05, %v465_v0 }
 0x365   :  { %589 = vrsqrt.f32 %v466_v1 }
 0x36f   :  { %v590_v6 = vpop.eup %589 }
 0x370   :  { %v468_v7 = vmul.f32 %v590_v6, %v456_v56  ;;  %v469_v9 = vmul.f32 %v590_v6, %v457_v57 }
 0x372   :  { %v481_v12 = vmul.f32 %v474_v4, %v468_v7  ;;  %v482_v13 = vmul.f32 %v478_v5, %v469_v9 }
 0x374   :  { %v494_v14 = vadd.f32 %v487_v10, %v481_v12  ;;  %v495_v15 = vadd.f32 %v491_v11, %v482_v13 }
 0x376   :  { %v498_v16 = vcombine.low %v494_v14, %v495_v15 }
 0x378   :  { %548 = vst.sshfl [vmem:[#allocation2] sm:$0x33 pattern:$0x76325410] %v498_v16 }
 0x379   :  { %602 = shalt.err (!%p599_p4)
}
 0x37a   :  { %s603_s13 = scalar_lea.hbm %s823_s7, 64 }
 0x37b   :  { %p604_p5 = scmp.ne.s32.totalorder %s823_s7, %s603_s13  ;;  %p607_p6 = scmp.lt.u32.totalorder %s603_s13, %s823_s7 }
 0x37d   :  { %p609_p7 = pnand %p607_p6, %p604_p5 }
 0x37f   :  { %612 = shalt.err (!%p609_p7)
}
 0x380   :  { %517 = dma.vmem_to_hbm [thread:$0]  %s515_s11, 64, %s823_s7, [#allocation3]  }
 0x381   :  { %613 = dma.done.wait [#allocation3], 64  }
 0x382   :  { %614 = vsyncadd [#allocation3], 4294967232 }
 0x383   :  { %521 = vsyncpa [#allocation3], 1 }

// kernel: _lambda_.4
= control target key start
LH: loop header
LB: loop body
LE: loop exit
PB: predicated region body
PF: predicated region fallthrough
CT: control target
= control target key end

     0   :  { %s5238_s25 = smov 0   ;;  %s5240_s26 = smov 0   ;;  %s5960_s0 = inlined_call_operand.vmem [shape: f32[2,5,192], index: 0, kind: input, shape index: {}]   ;;  %s5961_s1 = inlined_call_operand.vmem [shape: f32[2,1,192], index: 1, kind: input, shape index: {}, may-alias: {1,7}]   ;;  %s5962_s2 = inlined_call_operand.vmem [shape: f32[2,1,192], index: 2, kind: input, shape index: {}, may-alias: {2,6,8,12}]   ;;  %s5963_s3 = inlined_call_operand.vmem [shape: bf16[2,192,1152], index: 3, kind: input, shape index: {}]   ;;  %s5964_s4 = inlined_call_operand.vmem [shape: f32[2,1,1152], index: 4, kind: input, shape index: {}]   ;;  %s5965_s5 = inlined_call_operand.vmem [shape: bf16[2,384,192], index: 5, kind: input, shape index: {}]   ;;  %s5966_s6 = inlined_call_operand.vmem [shape: f32[2,1,192], index: 6, kind: input, shape index: {}, may-alias: {2,6,8,12}]   ;;  %s5967_s7 = inlined_call_operand.vmem [shape: f32[2,1,192], index: 7, kind: input, shape index: {}, may-alias: {1,7}]   ;;  %s5968_s8 = inlined_call_operand.vmem [shape: f32[2,1,192], index: 8, kind: input, shape index: {}, may-alias: {2,6,8,12}]   ;;  %s5969_s9 = inlined_call_operand.vmem [shape: bf16[2,192,768], index: 9, kind: input, shape index: {}]   ;;  %s5970_s10 = inlined_call_operand.vmem [shape: f32[2,1,768], index: 10, kind: input, shape index: {}]   ;;  %s5971_s11 = inlined_call_operand.vmem [shape: bf16[2,768,192], index: 11, kind: input, shape index: {}]   ;;  %s5972_s12 = inlined_call_operand.vmem [shape: f32[2,1,192], index: 12, kind: input, shape index: {}, may-alias: {2,6,8,12}]   ;;  %s5973_s13 = inlined_call_operand.vmem [shape: f32[2,5,192], index: 13, kind: output, shape index: {}]  }
   0x1   :  { %5978 = sst [smem:[#allocation9_spill]] %s5960_s0  ;;  %s5242_s27 = smov 0  }
   0x2   :  { %5979 = sst [smem:[#allocation10_spill]] %s5961_s1  ;;  %s5244_s28 = smov 0  }
   0x3   :  { %5980 = sst [smem:[#allocation11_spill]] %s5963_s3  ;;  %s5246_s29 = smov 0  }
   0x4   :  { %5981 = sst [smem:[#allocation12_spill]] %s5964_s4 }
   0x5   :  { %5982 = sst [smem:[#allocation13_spill]] %s5965_s5 }
   0x6   :  { %5983 = sst [smem:[#allocation14_spill]] %s5967_s7 }
   0x7   :  { %5984 = sst [smem:[#allocation15_spill]] %s5971_s11 }
   0x8   :  { %5985 = sst [smem:[#allocation16_spill]] %s5973_s13 }
   0x9 LB: > { %5986 = sst [smem:[#allocation3_spill]] %s5145_s25  ;;  %s32_s30 = sadd.s32 1, %s5153_s27  ;;  %s5161_s29 = sphi %s5246_s29, %s23_s29   ;;  %s5157_s28 = sphi %s5244_s28, %s6014_s28   ;;  %s5153_s27 = sphi %s5242_s27, %s6013_s27   ;;  %s5149_s26 = sphi %s5240_s26, %s6012_s26   ;;  %s5145_s25 = sphi %s5238_s25, %s6011_s25  }
   0xa   : > { %5987 = sst [smem:[#allocation4_spill]] %s5153_s27  ;;  %s35_s14 = sadd.s32 1, %s5157_s28 }
   0xb   : > { %5988 = sst [smem:[#allocation5_spill]] %s5157_s28  ;;  %p33_p0 = scmp.ge.s32.totalorder %s32_s30, 2 }
   0xc   : > { %5989 = sst [smem:[#allocation6_spill]] %s5161_s29  ;;  %p4145_p1 = scmp.ge.s32.totalorder %s5161_s29, 1 }
   0xd   : > { %p511_p2 = scmp.lt.s32.totalorder %s5161_s29, 5  ;;  %s6016_s30 = smov (%p33_p0, %s32_s30), 0 }
   0xe   : > { %5990 = sst [smem:[#allocation7_spill]] %s6016_s30  ;;  %s6018_s14 = smov (!%p33_p0, %s35_s14), %s5157_s28 }
   0xf   : > { %p512_p3 = pnand %p4145_p1, %p511_p2  ;;  %p37_p4 = scmp.ge.s32.totalorder %s6018_s14, 2 }
  0x10   : > { %p607_p5 = scmp.lt.s32.totalorder (!%p512_p3), %s5149_s26, 1  ;;  %p612_p6 = scmp.lt.s32.totalorder (!%p512_p3), %s5145_s25, 1 }
  0x11   : > { %s6020_s14 = smov (%p37_p4, %s6018_s14), 0  ;;  %515 = sbr.rel (%p512_p3) target bundleno = 3748 (0xea4), region = 72 }
  0x12   : > { %5991 = sst [smem:[#allocation8_spill]] %s6020_s14  ;;  %s5992_s0 = sld [smem:[#allocation9_spill]] (!%p512_p3) }
  0x13   : > { %s5995_s3 = sld [smem:[#allocation11_spill]] (!%p512_p3)  ;;  %s5996_s4 = sld [smem:[#allocation12_spill]] (!%p512_p3) }
  0x14   : > { %s5997_s5 = sld [smem:[#allocation13_spill]] (!%p512_p3)  ;;  %s5998_s17 = sld [smem:[#allocation16_spill]] (!%p512_p3) }
  0x15   : > { %s6000_s22 = sld [smem:[#allocation3_spill]] (!%p512_p3) }
  0x18   : > { %s6022_s26 = smov (!%p607_p5, %s5149_s26), 1 }
  0x19   : > { %s613_s15 = scalar_select %p612_p6, %s5145_s25, 1 }
  0x1a   : > { %s4500_s16 = sshll.u32 %s6022_s26, 4  ;;  %s5999_s25 = sld [smem:[#allocation15_spill]] }
  0x1b   : > { %s611_s19 = scalar_lea.vmem %s5992_s0, %s4500_s16  ;;  %s5275_s20 = sshll.u32 %s613_s15, 1 }
  0x1c   : > { %s4550_s30 = smul.u32 864, %s613_s15  ;;  %s5329_s28 = scalar_lea.vmem %s5998_s17, %s4500_s16 }
  0x1d   : > { %s4551_s0 = smul.u32 9, %s613_s15  ;;  %p4160_p7 = scmp.ne.s32.totalorder %s6000_s22, 0 }
  0x1e   : > { %s5296_s11 = scalar_lea.vmem %s5995_s3, %s4550_s30  ;;  %s4552_s23 = smul.u32 384, %s613_s15  ;;  %v674_v0 = vld [vmem:[%s611_s19] sm:$0x1f] (!%p4160_p7)  ;;  %v675_v1 = vld [vmem:[%s611_s19 + $0x8] sm:$0x1f] (!%p4160_p7)  ;;  %vm677_vm0 = vcmask (!%p4160_p7), 520192  }
  0x1f   : > { %s5301_s14 = scalar_lea.vmem %s5996_s4, %s4551_s0  ;;  %s4553_s29 = smul.u32 576, %s613_s15  ;;  %676 = vst [vmem:[#allocation2] sm:$0x1f] (!%p4160_p7), %v674_v0  ;;  %678 = vst.msk [vmem:[#allocation2 + $0x8] sm:$0x1f] (!%p4160_p7), %vm677_vm0, %v675_v1 }
  0x20   : > { %s5310_s27 = scalar_lea.vmem %s5997_s5, %s4552_s23  ;;  %s4554_s21 = smul.u32 6, %s613_s15 }
  0x21   : > { %s5319_s0 = scalar_lea.vmem %s5969_s9, %s4553_s29  ;;  %s4555_s1 = smul.u32 768, %s613_s15 }
  0x22   : > { %s5324_s24 = scalar_lea.vmem %s5970_s10, %s4554_s21  ;;  %673 = sbr.rel (%p4160_p7) target bundleno = 41 (0x29), region = 76 }
  0x23   : > { %s5334_s30 = scalar_lea.vmem %s5999_s25, %s4555_s1 }
  0x29 PF: > { %v679_v2 = vld [vmem:[#allocation2] sm:$0x1f]  ;;  %v680_v3 = vld [vmem:[#allocation2 + $0x8] sm:$0x1f]  ;;  %vm683_vm1 = vcmask 1044480   ;;  %vm685_vm2 = vcmask 520192   ;;  %s6003_s19 = scalar_lea.vmem %s5962_s2, %s5275_s20  ;;  %s6007_s18 = scalar_lea.vmem %s5968_s8, %s5275_s20 }
  0x2a   : > { %v684_v4 = vsel %vm683_vm1, %v679_v2, 0.0  ;;  %v686_v5 = vsel %vm685_vm2, %v680_v3, 0.0  ;;  %v4601_v7 = vld [vmem:[%s5296_s11 + $0x4] ss:$36 sps:$4 sm:$0xff]   ;;  %v4603_v8 = vld [vmem:[%s5296_s11 + $0xc] ss:$36 sps:$4 sm:$0xff]   ;;  %s6008_s23 = scalar_lea.vmem %s5972_s12, %s5275_s20 }
  0x2b   : > { %v687_v6 = vadd.f32 %v686_v5, %v684_v4  ;;  %v4605_v9 = vld [vmem:[%s5296_s11] ss:$36 sps:$4 sm:$0xff]   ;;  %v4606_v10 = vld [vmem:[%s5296_s11 + $0x8] ss:$36 sps:$4 sm:$0xff]   ;;  %v4609_v12 = vld [vmem:[%s5296_s11 + $0x54] ss:$36 sps:$4 sm:$0xff]   ;;  %1459 = vmatprep.subr.bf16.mxu0 %v4601_v7  ;;  %1500 = vmatprep.subr.bf16.mxu1 %v4603_v8  ;;  %v707_v4 = vlaneseq }
  0x2c   : > { %v4607_v11 = vld [vmem:[%s5296_s11 + $0x4c] ss:$36 sps:$4 sm:$0xff]   ;;  %1460 = vmatpush1.bf16.msra.mxu0 %v4605_v9  ;;  %1501 = vmatpush1.bf16.msra.mxu1 %v4606_v10  ;;  %v4613_v15 = vld [vmem:[%s5296_s11 + $0x94] ss:$36 sps:$4 sm:$0xff]   ;;  %v4615_v16 = vld [vmem:[%s5296_s11 + $0x9c] ss:$36 sps:$4 sm:$0xff]  }
  0x2d   : > { %688 = vadd.xlane.f32.xlu0 %v687_v6  ;;  %v4611_v13 = vld [vmem:[%s5296_s11 + $0x48] ss:$36 sps:$4 sm:$0xff]   ;;  %v4612_v14 = vld [vmem:[%s5296_s11 + $0x50] ss:$36 sps:$4 sm:$0xff]   ;;  %1461 = vmatprep.subr.bf16.mxu0 %v4607_v11  ;;  %v4618_v18 = vld [vmem:[%s5296_s11 + $0x98] ss:$36 sps:$4 sm:$0xff]  }
  0x2e   : > { %1502 = vmatprep.subr.bf16.mxu1 %v4609_v12  ;;  %v4617_v17 = vld [vmem:[%s5296_s11 + $0x90] ss:$36 sps:$4 sm:$0xff]   ;;  %v4619_v19 = vld [vmem:[%s5296_s11 + $0xdc] ss:$36 sps:$4 sm:$0xff]   ;;  %v4621_v20 = vld [vmem:[%s5296_s11 + $0xe4] ss:$36 sps:$4 sm:$0xff]  }
  0x2f   : > { %v4623_v21 = vld [vmem:[%s5296_s11 + $0xd8] ss:$36 sps:$4 sm:$0xff]   ;;  %v4624_v22 = vld [vmem:[%s5296_s11 + $0xe0] ss:$36 sps:$4 sm:$0xff]   ;;  %v4627_v24 = vld [vmem:[%s5296_s11 + $0x12c] ss:$36 sps:$4 sm:$0xff]  }
  0x30   : > { %1462 = vmatpush1.bf16.msra.mxu0 %v4611_v13  ;;  %1503 = vmatpush1.bf16.msra.mxu1 %v4612_v14  ;;  %v4625_v23 = vld [vmem:[%s5296_s11 + $0x124] ss:$36 sps:$4 sm:$0xff]   ;;  %v4631_v27 = vld [vmem:[%s5296_s11 + $0x16c] ss:$36 sps:$4 sm:$0xff]   ;;  %v4633_v28 = vld [vmem:[%s5296_s11 + $0x174] ss:$36 sps:$4 sm:$0xff]  }
  0x31   : > { %1463 = vmatprep.subr.bf16.mxu0 %v4613_v15  ;;  %1504 = vmatprep.subr.bf16.mxu1 %v4615_v16  ;;  %v4629_v25 = vld [vmem:[%s5296_s11 + $0x120] ss:$36 sps:$4 sm:$0xff]   ;;  %v4630_v26 = vld [vmem:[%s5296_s11 + $0x128] ss:$36 sps:$4 sm:$0xff]   ;;  %v4636_v30 = vld [vmem:[%s5296_s11 + $0x170] ss:$36 sps:$4 sm:$0xff]  }
  0x32   : > { %v4635_v29 = vld [vmem:[%s5296_s11 + $0x168] ss:$36 sps:$4 sm:$0xff]   ;;  %v4637_v31 = vld [vmem:[%s5296_s11 + $0x1b4] ss:$36 sps:$4 sm:$0xff]   ;;  %v4639_v32 = vld [vmem:[%s5296_s11 + $0x1bc] ss:$36 sps:$4 sm:$0xff]  }
  0x33   : > { %v4641_v42 = vld [vmem:[%s5296_s11 + $0x1b0] ss:$36 sps:$4 sm:$0xff]   ;;  %v4642_v43 = vld [vmem:[%s5296_s11 + $0x1b8] ss:$36 sps:$4 sm:$0xff]   ;;  %v4645_v45 = vld [vmem:[%s5296_s11 + $0x204] ss:$36 sps:$4 sm:$0xff]  }
  0x34   : > { %1464 = vmatpush1.bf16.msra.mxu0 %v4617_v17  ;;  %1505 = vmatpush1.bf16.msra.mxu1 %v4618_v18  ;;  %v4643_v44 = vld [vmem:[%s5296_s11 + $0x1fc] ss:$36 sps:$4 sm:$0xff]   ;;  %v4649_v48 = vld [vmem:[%s5296_s11 + $0x244] ss:$36 sps:$4 sm:$0xff]   ;;  %v4651_v49 = vld [vmem:[%s5296_s11 + $0x24c] ss:$36 sps:$4 sm:$0xff]  }
  0x35   : > { %1465 = vmatprep.subr.bf16.mxu0 %v4619_v19  ;;  %1506 = vmatprep.subr.bf16.mxu1 %v4621_v20  ;;  %v4647_v46 = vld [vmem:[%s5296_s11 + $0x1f8] ss:$36 sps:$4 sm:$0xff]   ;;  %v4648_v47 = vld [vmem:[%s5296_s11 + $0x200] ss:$36 sps:$4 sm:$0xff]   ;;  %v4654_v51 = vld [vmem:[%s5296_s11 + $0x248] ss:$36 sps:$4 sm:$0xff]  }
  0x36   : > { %v4653_v50 = vld [vmem:[%s5296_s11 + $0x240] ss:$36 sps:$4 sm:$0xff]   ;;  %v4655_v52 = vld [vmem:[%s5296_s11 + $0x28c] ss:$36 sps:$4 sm:$0xff]   ;;  %v4657_v53 = vld [vmem:[%s5296_s11 + $0x294] ss:$36 sps:$4 sm:$0xff]  }
  0x37   : > { %v4659_v54 = vld [vmem:[%s5296_s11 + $0x288] ss:$36 sps:$4 sm:$0xff]   ;;  %v4660_v55 = vld [vmem:[%s5296_s11 + $0x290] ss:$36 sps:$4 sm:$0xff]   ;;  %v4663_v57 = vld [vmem:[%s5296_s11 + $0x2dc] ss:$36 sps:$4 sm:$0xff]  }
  0x38   : > { %1466 = vmatpush1.bf16.msra.mxu0 %v4623_v21  ;;  %1507 = vmatpush1.bf16.msra.mxu1 %v4624_v22  ;;  %v4661_v56 = vld [vmem:[%s5296_s11 + $0x2d4] ss:$36 sps:$4 sm:$0xff]   ;;  %v4667_v60 = vld [vmem:[%s5296_s11 + $0x31c] ss:$36 sps:$4 sm:$0xff]   ;;  %v4669_v61 = vld [vmem:[%s5296_s11 + $0x324] ss:$36 sps:$4 sm:$0xff]  }
  0x39   : > { %1467 = vmatprep.subr.bf16.mxu0 %v4625_v23  ;;  %1508 = vmatprep.subr.bf16.mxu1 %v4627_v24  ;;  %v4665_v58 = vld [vmem:[%s5296_s11 + $0x2d0] ss:$36 sps:$4 sm:$0xff]   ;;  %v4666_v59 = vld [vmem:[%s5296_s11 + $0x2d8] ss:$36 sps:$4 sm:$0xff]   ;;  %v4672_v63 = vld [vmem:[%s5296_s11 + $0x320] ss:$36 sps:$4 sm:$0xff]  }
  0x3a   : > { %v4671_v62 = vld [vmem:[%s5296_s11 + $0x318] ss:$36 sps:$4 sm:$0xff]   ;;  %v5399_v6 = vshrl.u32 %v707_v4, 7  ;;  %s6001_s5 = sld [smem:[#allocation10_spill]]  ;;  %v682_v10 = vld [vmem:[%s6003_s19] sm:$0x3] }
  0x3b   : > { %v4675_v0 = vld [vmem:[%s5296_s11 + $0x14] ss:$36 sps:$4 sm:$0xff]   ;;  %v4678_v1 = vld [vmem:[%s5296_s11 + $0x1c] ss:$36 sps:$4 sm:$0xff]   ;;  %vm1455_vm3 = vcmask 523264   ;;  %vm5165_vm4 = vmmov 0  }
  0x3c   : > { %1468 = vmatpush1.bf16.msra.mxu0 %v4629_v25  ;;  %1509 = vmatpush1.bf16.msra.mxu1 %v4630_v26  ;;  %v5402_v7 = vsub.s32 1, %v5399_v6  ;;  %v5405_v8 = vsub.s32 0, %v5399_v6  ;;  %v4673_v23 = vld [vmem:[%s5296_s11 + $0x10] ss:$36 sps:$4 sm:$0xff]   ;;  %v4676_v24 = vld [vmem:[%s5296_s11 + $0x18] ss:$36 sps:$4 sm:$0xff]  }
  0x3d   : > { %1469 = vmatprep.subr.bf16.mxu0 %v4631_v27  ;;  %1510 = vmatprep.subr.bf16.mxu1 %v4633_v28  ;;  %v4681_v26 = vld [vmem:[%s5296_s11 + $0x5c] ss:$36 sps:$4 sm:$0xff]   ;;  %v4684_v27 = vld [vmem:[%s5296_s11 + $0x64] ss:$36 sps:$4 sm:$0xff]   ;;  %vm1723_vm5 = vcmask 1041408   ;;  %vm1724_vm6 = vcmask 1042432  }
  0x3e   : > { %v727_v16 = vrot.slane %v682_v10, %v5402_v7  ;;  %v723_v17 = vrot.slane %v682_v10, %v5405_v8  ;;  %v4679_v28 = vld [vmem:[%s5296_s11 + $0x58] ss:$36 sps:$4 sm:$0xff]   ;;  %v4739_v4 = vld [vmem:[%s5296_s11 + $0x328] ss:$36 sps:$4 sm:$0xff]   ;;  %v5163_v10 = vmov 0   ;;  %vm1706_vm7 = vcmask 36864  }
  0x3f   : > { %vm1719_vm8 = vcmask 39936   ;;  %s6005_s22 = sld [smem:[#allocation14_spill]] }
  0x40   : > { %1470 = vmatpush1.bf16.msra.mxu0 %v4635_v29  ;;  %1511 = vmatpush1.bf16.msra.mxu1 %v4636_v30  ;;  %s6002_s7 = scalar_lea.vmem %s6001_s5, %s5275_s20  ;;  %v4682_v29 = vld [vmem:[%s5296_s11 + $0x60] ss:$36 sps:$4 sm:$0xff]  }
  0x41   : > { %1471 = vmatprep.subr.bf16.mxu0 %v4637_v31  ;;  %1512 = vmatprep.subr.bf16.mxu1 %v4639_v32  ;;  %v681_v9 = vld [vmem:[%s6002_s7] sm:$0x3]  ;;  %v4687_v30 = vld [vmem:[%s5296_s11 + $0xa4] ss:$36 sps:$4 sm:$0xff]   ;;  %v4690_v31 = vld [vmem:[%s5296_s11 + $0xac] ss:$36 sps:$4 sm:$0xff]  }
  0x42   : > { %v714_v11 = vrot.slane %v681_v9, %v5402_v7  ;;  %v710_v12 = vrot.slane %v681_v9, %v5405_v8  ;;  %v4685_v32 = vld [vmem:[%s5296_s11 + $0xa0] ss:$36 sps:$4 sm:$0xff]  }
  0x43   : > { %v4745_v9 = vld [vmem:[%s5296_s11 + $0x20] ss:$36 sps:$4 sm:$0xff]  }
  0x44   : > { %1472 = vmatpush1.bf16.msra.mxu0 %v4641_v42  ;;  %1513 = vmatpush1.bf16.msra.mxu1 %v4642_v43  ;;  %v4705_v42 = vld [vmem:[%s5296_s11 + $0x17c] ss:$36 sps:$4 sm:$0xff]   ;;  %v4708_v43 = vld [vmem:[%s5296_s11 + $0x184] ss:$36 sps:$4 sm:$0xff]  }
  0x45   : > { %1473 = vmatprep.subr.bf16.mxu0 %v4643_v44  ;;  %1514 = vmatprep.subr.bf16.mxu1 %v4645_v45  ;;  %v4703_v44 = vld [vmem:[%s5296_s11 + $0x178] ss:$36 sps:$4 sm:$0xff]   ;;  %v4706_v45 = vld [vmem:[%s5296_s11 + $0x180] ss:$36 sps:$4 sm:$0xff]   ;;  %s6006_s1 = scalar_lea.vmem %s6005_s22, %s5275_s20 }
  0x48   : > { %1474 = vmatpush1.bf16.msra.mxu0 %v4647_v46  ;;  %1515 = vmatpush1.bf16.msra.mxu1 %v4648_v47  ;;  %v4711_v46 = vld [vmem:[%s5296_s11 + $0x1c4] ss:$36 sps:$4 sm:$0xff]   ;;  %v4714_v47 = vld [vmem:[%s5296_s11 + $0x1cc] ss:$36 sps:$4 sm:$0xff]  }
  0x49   : > { %1475 = vmatprep.subr.bf16.mxu0 %v4649_v48  ;;  %1516 = vmatprep.subr.bf16.mxu1 %v4651_v49  ;;  %v4709_v48 = vld [vmem:[%s5296_s11 + $0x1c0] ss:$36 sps:$4 sm:$0xff]   ;;  %v4712_v49 = vld [vmem:[%s5296_s11 + $0x1c8] ss:$36 sps:$4 sm:$0xff]  }
  0x4c   : > { %1476 = vmatpush1.bf16.msra.mxu0 %v4653_v50  ;;  %1517 = vmatpush1.bf16.msra.mxu1 %v4654_v51  ;;  %v4717_v50 = vld [vmem:[%s5296_s11 + $0x20c] ss:$36 sps:$4 sm:$0xff]   ;;  %v4720_v51 = vld [vmem:[%s5296_s11 + $0x214] ss:$36 sps:$4 sm:$0xff]  }
  0x4d   : > { %1477 = vmatprep.subr.bf16.mxu0 %v4655_v52  ;;  %1518 = vmatprep.subr.bf16.mxu1 %v4657_v53  ;;  %v4715_v52 = vld [vmem:[%s5296_s11 + $0x208] ss:$36 sps:$4 sm:$0xff]   ;;  %v4718_v53 = vld [vmem:[%s5296_s11 + $0x210] ss:$36 sps:$4 sm:$0xff]  }
  0x50   : > { %1478 = vmatpush1.bf16.msra.mxu0 %v4659_v54  ;;  %1519 = vmatpush1.bf16.msra.mxu1 %v4660_v55  ;;  %v4723_v54 = vld [vmem:[%s5296_s11 + $0x254] ss:$36 sps:$4 sm:$0xff]   ;;  %v4726_v55 = vld [vmem:[%s5296_s11 + $0x25c] ss:$36 sps:$4 sm:$0xff]  }
  0x51   : > { %1479 = vmatprep.subr.bf16.mxu0 %v4661_v56  ;;  %1520 = vmatprep.subr.bf16.mxu1 %v4663_v57  ;;  %v4721_v56 = vld [vmem:[%s5296_s11 + $0x250] ss:$36 sps:$4 sm:$0xff]   ;;  %v4724_v57 = vld [vmem:[%s5296_s11 + $0x258] ss:$36 sps:$4 sm:$0xff]  }
  0x54   : > { %1480 = vmatpush1.bf16.msra.mxu0 %v4665_v58  ;;  %1521 = vmatpush1.bf16.msra.mxu1 %v4666_v59  ;;  %v4729_v58 = vld [vmem:[%s5296_s11 + $0x29c] ss:$36 sps:$4 sm:$0xff]   ;;  %v4732_v59 = vld [vmem:[%s5296_s11 + $0x2a4] ss:$36 sps:$4 sm:$0xff]  }
  0x55   : > { %1481 = vmatprep.subr.bf16.mxu0 %v4667_v60  ;;  %1522 = vmatprep.subr.bf16.mxu1 %v4669_v61  ;;  %v4727_v60 = vld [vmem:[%s5296_s11 + $0x298] ss:$36 sps:$4 sm:$0xff]   ;;  %v4730_v61 = vld [vmem:[%s5296_s11 + $0x2a0] ss:$36 sps:$4 sm:$0xff]  }
  0x58   : > { %1482 = vmatpush1.bf16.msra.mxu0 %v4671_v62  ;;  %1523 = vmatpush1.bf16.msra.mxu1 %v4672_v63  ;;  %v4735_v62 = vld [vmem:[%s5296_s11 + $0x2e4] ss:$36 sps:$4 sm:$0xff]   ;;  %v4738_v63 = vld [vmem:[%s5296_s11 + $0x2ec] ss:$36 sps:$4 sm:$0xff]  }
  0x59   : > { %1541 = vmatprep.subr.bf16.mxu0 %v4675_v0  ;;  %1582 = vmatprep.subr.bf16.mxu1 %v4678_v1  ;;  %v4733_v0 = vld [vmem:[%s5296_s11 + $0x2e0] ss:$36 sps:$4 sm:$0xff]   ;;  %v4736_v1 = vld [vmem:[%s5296_s11 + $0x2e8] ss:$36 sps:$4 sm:$0xff]  }
  0xba   : > { %v689_v33 = vpop.xlane.xlu0 %688 }
  0xbb   : > { %v691_v34 = vmul.f32 0.0052083335, %v689_v33  ;;  %v4688_v33 = vld [vmem:[%s5296_s11 + $0xa8] ss:$36 sps:$4 sm:$0xff]  }
  0xbd   : > { %v5365_v35 = vsub.f32 %v679_v2, %v691_v34  ;;  %v5367_v36 = vsub.f32 %v680_v3, %v691_v34  ;;  %v4693_v34 = vld [vmem:[%s5296_s11 + $0xec] ss:$36 sps:$4 sm:$0xff]  }
  0xbf   : > { %v694_v37 = vmul.f32 %v5365_v35, %v5365_v35  ;;  %v695_v38 = vmul.f32 %v5367_v36, %v5367_v36 }
  0xc1   : > { %v696_v39 = vsel %vm683_vm1, %v694_v37, 0.0  ;;  %v697_v40 = vsel %vm685_vm2, %v695_v38, 0.0  ;;  %v4694_v37 = vld [vmem:[%s5296_s11 + $0xf0] ss:$36 sps:$4 sm:$0xff]  }
  0xc2   : > { %v698_v41 = vadd.f32 %v697_v40, %v696_v39  ;;  %v4699_v38 = vld [vmem:[%s5296_s11 + $0x134] ss:$36 sps:$4 sm:$0xff]   ;;  %v4702_v39 = vld [vmem:[%s5296_s11 + $0x13c] ss:$36 sps:$4 sm:$0xff]  }
  0xc3   : > { %v4697_v40 = vld [vmem:[%s5296_s11 + $0x130] ss:$36 sps:$4 sm:$0xff]  }
  0xc4   : > { %699 = vadd.xlane.f32.xlu0 %v698_v41  ;;  %v4700_v41 = vld [vmem:[%s5296_s11 + $0x138] ss:$36 sps:$4 sm:$0xff]  }
 0x151   : > { %v700_v2 = vpop.xlane.xlu0 %699 }
 0x152   : > { %v701_v3 = vmul.f32 0.0052083335, %v700_v2  ;;  %v4741_v2 = vld [vmem:[%s5296_s11 + $0x32c] ss:$36 sps:$4 sm:$0xff]  }
 0x154   : > { %v702_v5 = vadd.f32 1e-06, %v701_v3  ;;  %v4744_v3 = vld [vmem:[%s5296_s11 + $0x334] ss:$36 sps:$4 sm:$0xff]  }
 0x156   : > { %5081 = vrsqrt.f32 %v702_v5  ;;  %v4742_v5 = vld [vmem:[%s5296_s11 + $0x330] ss:$36 sps:$4 sm:$0xff]  }
 0x160   : > { %v5082_v13 = vpop.eup %5081 }
 0x161   : > { %v704_v14 = vmul.f32 %v5082_v13, %v5365_v35  ;;  %v705_v15 = vmul.f32 %v5082_v13, %v5367_v36  ;;  %v4696_v35 = vld [vmem:[%s5296_s11 + $0xf4] ss:$36 sps:$4 sm:$0xff]   ;;  %v4691_v36 = vld [vmem:[%s5296_s11 + $0xe8] ss:$36 sps:$4 sm:$0xff]  }
 0x162   : > { %v4748_v13 = vld [vmem:[%s5296_s11 + $0xf8] ss:$36 sps:$4 sm:$0xff]  }
 0x163   : > { %v718_v18 = vmul.f32 %v714_v11, %v705_v15  ;;  %v717_v19 = vmul.f32 %v710_v12, %v704_v14  ;;  %v4746_v11 = vld [vmem:[%s5296_s11 + $0x68] ss:$36 sps:$4 sm:$0xff]   ;;  %v4747_v12 = vld [vmem:[%s5296_s11 + $0xb0] ss:$36 sps:$4 sm:$0xff]   ;;  %v4749_v14 = vld [vmem:[%s5296_s11 + $0x140] ss:$36 sps:$4 sm:$0xff]  }
 0x164   : > { %v4750_v15 = vld [vmem:[%s5296_s11 + $0x188] ss:$36 sps:$4 sm:$0xff]  }
 0x165   : > { %v731_v20 = vadd.f32 %v727_v16, %v718_v18  ;;  %v730_v21 = vadd.f32 %v723_v17, %v717_v19  ;;  %v4751_v16 = vld [vmem:[%s5296_s11 + $0x1d0] ss:$36 sps:$4 sm:$0xff]   ;;  %v4752_v17 = vld [vmem:[%s5296_s11 + $0x218] ss:$36 sps:$4 sm:$0xff]   ;;  %v4753_v18 = vld [vmem:[%s5296_s11 + $0x260] ss:$36 sps:$4 sm:$0xff]  }
 0x166   : > { %v4754_v19 = vld [vmem:[%s5296_s11 + $0x2a8] ss:$36 sps:$4 sm:$0xff]  }
 0x167   : > { %v5423_v22 = vpack.c.bf16 %v731_v20, %v731_v20  ;;  %v5427_v25 = vpack.c.bf16 %v730_v21, %v730_v21  ;;  %v4755_v20 = vld [vmem:[%s5296_s11 + $0x2f0] ss:$36 sps:$4 sm:$0xff]   ;;  %v5164_v21 = vmov 0.0  }
 0x169   : > { %4270 = vmatprep.mubr.msk.bf16.mxu0 %vm1455_vm3, %v5423_v22  ;;  %4271 = vmatprep.mubr.msk.bf16.mxu1 %vm1455_vm3, %v5423_v22 }
 0x16a   : > { %1492 = vmatmul.mubr.bf16.vlgmr.msra.gmra.mrb[0].mxu0 %v5427_v25  ;;  %1533 = vmatmul.mubr.bf16.vlgmr.msra.gmra.mrb[0].mxu1 %v5427_v25 }
 0x16b   : > { %1542 = vmatpush1.bf16.msra.mxu0 %v4673_v23  ;;  %1583 = vmatpush1.bf16.msra.mxu1 %v4676_v24  ;;  %v872_v23 = vsub.s32 3, %v5399_v6  ;;  %v5520_v24 = vld [vmem:[%s5301_s14] sm:$0xff] }
 0x16c   : > { %4272 = vmatprep.mubr.msk.bf16.mxu0 %vm1455_vm3, %v5423_v22  ;;  %4273 = vmatprep.mubr.msk.bf16.mxu1 %vm1455_vm3, %v5423_v22 }
 0x16d   : > { %1543 = vmatprep.subr.bf16.mxu0 %v4681_v26  ;;  %1584 = vmatprep.subr.bf16.mxu1 %v4684_v27  ;;  %v873_v26 = vrot.slane %v5520_v24, %v872_v23 }
 0x16f   : > { %1544 = vmatpush1.bf16.msra.mxu0 %v4679_v28  ;;  %1585 = vmatpush1.bf16.msra.mxu1 %v4682_v29 }
 0x170   : > { %1545 = vmatprep.subr.bf16.mxu0 %v4687_v30  ;;  %1586 = vmatprep.subr.bf16.mxu1 %v4690_v31 }
 0x173   : > { %1546 = vmatpush1.bf16.msra.mxu0 %v4685_v32  ;;  %1587 = vmatpush1.bf16.msra.mxu1 %v4688_v33  ;;  %v861_v33 = vrot.slane %v5520_v24, %v5405_v8 }
 0x174   : > { %1547 = vmatprep.subr.bf16.mxu0 %v4693_v34  ;;  %1588 = vmatprep.subr.bf16.mxu1 %v4696_v35 }
 0x177   : > { %1548 = vmatpush1.bf16.msra.mxu0 %v4691_v36  ;;  %1589 = vmatpush1.bf16.msra.mxu1 %v4694_v37 }
 0x178   : > { %1549 = vmatprep.subr.bf16.mxu0 %v4699_v38  ;;  %1590 = vmatprep.subr.bf16.mxu1 %v4702_v39  ;;  %v884_v39 = vsub.s32 6, %v5399_v6 }
 0x17b   : > { %1550 = vmatpush1.bf16.msra.mxu0 %v4697_v40  ;;  %1591 = vmatpush1.bf16.msra.mxu1 %v4700_v41  ;;  %v888_v40 = vsub.s32 7, %v5399_v6  ;;  %v885_v41 = vrot.slane %v5520_v24, %v884_v39 }
 0x17c   : > { %1551 = vmatprep.subr.bf16.mxu0 %v4705_v42  ;;  %1592 = vmatprep.subr.bf16.mxu1 %v4708_v43  ;;  %v5166_v43 = vmov 65535  }
 0x17d   : > { %v889_v42 = vrot.slane %v5520_v24, %v888_v40 }
 0x17f   : > { %1552 = vmatpush1.bf16.msra.mxu0 %v4703_v44  ;;  %1593 = vmatpush1.bf16.msra.mxu1 %v4706_v45  ;;  %v1725_v44 = vsel %vm1723_vm5, 4294967295, %v5166_v43 }
 0x180   : > { %1553 = vmatprep.subr.bf16.mxu0 %v4711_v46  ;;  %1594 = vmatprep.subr.bf16.mxu1 %v4714_v47 }
 0x183   : > { %1554 = vmatpush1.bf16.msra.mxu0 %v4709_v48  ;;  %1595 = vmatpush1.bf16.msra.mxu1 %v4712_v49 }
 0x184   : > { %1555 = vmatprep.subr.bf16.mxu0 %v4717_v50  ;;  %1596 = vmatprep.subr.bf16.mxu1 %v4720_v51  ;;  %v1726_v50 = vsel %vm1724_vm6, %v1725_v44, 0 }
 0x187   : > { %1556 = vmatpush1.bf16.msra.mxu0 %v4715_v52  ;;  %1597 = vmatpush1.bf16.msra.mxu1 %v4718_v53 }
 0x188   : > { %1557 = vmatprep.subr.bf16.mxu0 %v4723_v54  ;;  %1598 = vmatprep.subr.bf16.mxu1 %v4726_v55 }
 0x18b   : > { %1558 = vmatpush1.bf16.msra.mxu0 %v4721_v56  ;;  %1599 = vmatpush1.bf16.msra.mxu1 %v4724_v57 }
 0x18c   : > { %1559 = vmatprep.subr.bf16.mxu0 %v4729_v58  ;;  %1600 = vmatprep.subr.bf16.mxu1 %v4732_v59 }
 0x18f   : > { %1560 = vmatpush1.bf16.msra.mxu0 %v4727_v60  ;;  %1601 = vmatpush1.bf16.msra.mxu1 %v4730_v61  ;;  %v4161_v60 = vld [vmem:[%s5301_s14 + $0x8] ss:$0 sm:$0xff]  ;;  %s6004_s14 = scalar_lea.vmem %s5966_s6, %s5275_s20  ;;  %s6009_s20 = sld [smem:[#allocation3_spill]] }
 0x190   : > { %1561 = vmatprep.subr.bf16.mxu0 %v4735_v62  ;;  %1602 = vmatprep.subr.bf16.mxu1 %v4738_v63 }
 0x193   : > { %1562 = vmatpush1.bf16.msra.mxu0 %v4733_v0  ;;  %1603 = vmatpush1.bf16.msra.mxu1 %v4736_v1 }
 0x194   : > { %1563 = vmatprep.subr.bf16.mxu0 %v4741_v2  ;;  %1604 = vmatprep.subr.bf16.mxu1 %v4744_v3 }
 0x195   : > { %p4497_p8 = scmp.ne.s32.totalorder %s6009_s20, 1 }
 0x197   : > { %1564 = vmatpush1.bf16.msra.mxu0 %v4739_v4  ;;  %1605 = vmatpush1.bf16.msra.mxu1 %v4742_v5 }
 0x198   : > { %1623 = vmatprep.subr.bf16.mxu0 %v5163_v10  ;;  %4520 = vmatprep.subr.bf16.mxu1 %v5164_v21 }
 0x19a   : > { %1574 = vmatmul.mubr.bf16.vlgmr.msra.gmra.mrb[4].mxu0 %v5427_v25  ;;  %1615 = vmatmul.mubr.bf16.vlgmr.msra.gmra.mrb[4].mxu1 %v5427_v25 }
 0x19b   : > { %1624 = vmatpush1.bf16.msra.mxu0 %v4745_v9  ;;  %4274 = vmatprep.mubr.msk.bf16.mxu0 %vm1455_vm3, %v5423_v22  ;;  %v4756_v22 = vld [vmem:[%s5296_s11 + $0x338] ss:$36 sps:$4 sm:$0xff]  }
 0x19c   : > { %1625 = vmatprep.subr.bf16.mxu0 %v5163_v10  ;;  %4522 = vmatprep.mubr.msk.bf16.mxu1 %vm5165_vm4, %v5164_v21 }
 0x19f   : > { %1626 = vmatpush1.bf16.msra.mxu0 %v4746_v11 }
 0x1a0   : > { %1627 = vmatprep.subr.bf16.mxu0 %v5163_v10 }
 0x1a3   : > { %1628 = vmatpush1.bf16.msra.mxu0 %v4747_v12 }
 0x1a4   : > { %1629 = vmatprep.subr.bf16.mxu0 %v5163_v10 }
 0x1a7   : > { %1630 = vmatpush1.bf16.msra.mxu0 %v4748_v13 }
 0x1a8   : > { %1631 = vmatprep.subr.bf16.mxu0 %v5163_v10 }
 0x1ab   : > { %1632 = vmatpush1.bf16.msra.mxu0 %v4749_v14 }
 0x1ac   : > { %1633 = vmatprep.subr.bf16.mxu0 %v5163_v10 }
 0x1af   : > { %1634 = vmatpush1.bf16.msra.mxu0 %v4750_v15 }
 0x1b0   : > { %1635 = vmatprep.subr.bf16.mxu0 %v5163_v10 }
 0x1b3   : > { %1636 = vmatpush1.bf16.msra.mxu0 %v4751_v16 }
 0x1b4   : > { %1637 = vmatprep.subr.bf16.mxu0 %v5163_v10 }
 0x1b7   : > { %1638 = vmatpush1.bf16.msra.mxu0 %v4752_v17 }
 0x1b8   : > { %1639 = vmatprep.subr.bf16.mxu0 %v5163_v10 }
 0x1bb   : > { %1640 = vmatpush1.bf16.msra.mxu0 %v4753_v18 }
 0x1bc   : > { %1641 = vmatprep.subr.bf16.mxu0 %v5163_v10 }
 0x1bf   : > { %1642 = vmatpush1.bf16.msra.mxu0 %v4754_v19  ;;  %v876_v19 = vsub.s32 4, %v5399_v6 }
 0x1c0   : > { %1643 = vmatprep.subr.bf16.mxu0 %v5163_v10 }
 0x1c3   : > { %1644 = vmatpush1.bf16.msra.mxu0 %v4755_v20  ;;  %v877_v20 = vrot.slane %v5520_v24, %v876_v19 }
 0x1c4   : > { %1645 = vmatprep.subr.bf16.mxu0 %v5163_v10 }
 0x1c7   : > { %1646 = vmatpush1.bf16.msra.mxu0 %v4756_v22 }
 0x1c8   : > { %4514 = vmatprep.subr.bf16.mxu0 %v5164_v21 }
 0x1ca   : > { %1656 = vmatmul.mubr.bf16.vlgmr.msra.gmra.mrb[8].mxu0 %v5427_v25 }
 0x1cb   : > { %4516 = vmatprep.mubr.msk.bf16.mxu0 %vm5165_vm4, %v5164_v21 }
 0x23d   : > { %v1493_v27 = vpop.f32.mrb[0].mxu0  ;;  %v5525_v28 = vpop.f32.mrb[0].mxu1 }
 0x23e   : > { %v5527_v29 = vpop.f32.mrb[1].mxu0  ;;  %v1536_v30 = vpop.f32.mrb[1].mxu1  ;;  %v1494_v37 = vadd.f32 %v1493_v27, %v861_v33 }
 0x23f   : > { %v1537_v31 = vadd.f32 %v1536_v30, %v873_v26  ;;  %v1497_v32 = vpop.f32.mrb[2].mxu0  ;;  %v1538_v25 = vpop.f32.mrb[2].mxu1  ;;  %v865_v30 = vrot.slane %v5520_v24, %v5402_v7 }
 0x240   : > { %v1498_v34 = vpop.f32.mrb[3].mxu0  ;;  %v1539_v35 = vpop.f32.mrb[3].mxu1  ;;  %v1663_v38 = vpack.c.bf16 %v1494_v37, %v1494_v37 }
 0x241   : > { %v1664_v36 = vpack.c.bf16 %v1537_v31, %v1537_v31  ;;  %v1496_v25 = vadd.f32 %v5527_v29, %v865_v30  ;;  %v4793_v30 = vld [vmem:[%s5310_s27 + $0x40] ss:$8 sps:$4 sm:$0xff]  }
 0x243   : > { %4515 = vmatpush3.bf16.xpose.msra.mxu0 %v1664_v36  ;;  %v1787_v33 = vpack.c.bf16 %v1496_v25, %v1496_v25  ;;  %v4799_v25 = vld [vmem:[%s5310_s27 + $0x60] ss:$8 sps:$4 sm:$0xff]  }
 0x24a   : > { %4517 = vmatmul.mubr.bf16.vlgmr.msra.gmra.mrb[12].mxu0 %v1663_v38 }
 0x24b   : > { %2377 = vmatprep.mubr.bf16.mxu0 %v5163_v10 }
 0x26d   : > { %v1575_v45 = vpop.f32.mrb[4].mxu0  ;;  %v1616_v46 = vpop.f32.mrb[4].mxu1 }
 0x26e   : > { %v1617_v47 = vadd.f32 %v1616_v46, %v885_v41  ;;  %v5536_v48 = vpop.f32.mrb[5].mxu0  ;;  %v1618_v49 = vpop.f32.mrb[5].mxu1  ;;  %v1576_v26 = vadd.f32 %v1575_v45, %v877_v20  ;;  %v4787_v20 = vld [vmem:[%s5310_s27 + $0x20] ss:$8 sps:$4 sm:$0xff]  }
 0x26f   : > { %v1619_v51 = vadd.f32 %v1618_v49, %v889_v42  ;;  %v1579_v52 = vpop.f32.mrb[6].mxu0  ;;  %v1620_v53 = vpop.f32.mrb[6].mxu1 }
 0x270   : > { %v1665_v54 = vpack.c.bf16 %v1617_v47, %v1617_v47  ;;  %v1580_v55 = vpop.f32.mrb[7].mxu0  ;;  %v1621_v56 = vpop.f32.mrb[7].mxu1  ;;  %v1788_v32 = vpack.c.bf16 %v1576_v26, %v1576_v26  ;;  %v4759_v47 = vld [vmem:[%s5310_s27 + $0x84] ss:$8 sps:$4 sm:$0xff]   ;;  %v4757_v52 = vld [vmem:[%s5310_s27 + $0x80] ss:$8 sps:$4 sm:$0xff]  }
 0x271   : > { %v1789_v57 = vpack.c.bf16 %v1619_v51, %v1619_v51  ;;  %v4760_v55 = vld [vmem:[%s5310_s27 + $0x90] ss:$8 sps:$4 sm:$0xff]   ;;  %v4765_v56 = vld [vmem:[%s5310_s27 + $0xa4] ss:$8 sps:$4 sm:$0xff]  }
 0x272   : > { %v1728_v58 = vand.u32 %v1726_v50, %v1665_v54  ;;  %v4762_v54 = vld [vmem:[%s5310_s27 + $0x94] ss:$8 sps:$4 sm:$0xff]   ;;  %v4790_v26 = vld [vmem:[%s5310_s27 + $0x30] ss:$8 sps:$4 sm:$0xff]  }
 0x273   : > { %v1846_v59 = vand.u32 %v1789_v57, %v1726_v50  ;;  %v4763_v57 = vld [vmem:[%s5310_s27 + $0xa0] ss:$8 sps:$4 sm:$0xff]  }
 0x274   : > { %4521 = vmatpush3.bf16.msra.mxu1 %v1728_v58  ;;  %v4768_v58 = vld [vmem:[%s5310_s27 + $0xb4] ss:$8 sps:$4 sm:$0xff]  }
 0x275   : > { %4526 = vmatprep.subr.bf16.mxu1 %v5164_v21 }
 0x29d   : > { %v1657_v61 = vpop.f32.mrb[8].mxu0 }
 0x29e   : > { %v1658_v62 = vadd.f32 %v4161_v60, %v1657_v61  ;;  %v1659_v63 = vpop.f32.mrb[9].mxu0  ;;  %v4771_v60 = vld [vmem:[%s5310_s27 + $0xc4] ss:$8 sps:$4 sm:$0xff]   ;;  %v4769_v61 = vld [vmem:[%s5310_s27 + $0xc0] ss:$8 sps:$4 sm:$0xff]  }
 0x29f   : > { %v1660_v0 = vpop.f32.mrb[10].mxu0  ;;  %v4772_v63 = vld [vmem:[%s5310_s27 + $0xd0] ss:$8 sps:$4 sm:$0xff]  }
 0x2a0   : > { %v2149_v1 = vpack.c.bf16 %v1658_v62, %v1658_v62  ;;  %v1661_v2 = vpop.f32.mrb[11].mxu0  ;;  %v4774_v62 = vld [vmem:[%s5310_s27 + $0xd4] ss:$8 sps:$4 sm:$0xff]   ;;  %v4777_v0 = vld [vmem:[%s5310_s27 + $0xe4] ss:$8 sps:$4 sm:$0xff]  }
 0x2a1   : > { %v4780_v2 = vld [vmem:[%s5310_s27 + $0xf4] ss:$8 sps:$4 sm:$0xff]  }
 0x2a2   : > { %v5540_v3 = vand.u32 %v2149_v1, %v1726_v50  ;;  %v4775_v1 = vld [vmem:[%s5310_s27 + $0xe0] ss:$8 sps:$4 sm:$0xff]  }
 0x31d   : > { %v1700_v4 = vpop.f32.mrb[12].mxu0 }
 0x31e   : > { %v4518_v5 = vpop.f32.mrb[13].mxu0  ;;  %v1707_v9 = vsel %vm1706_vm7, %v1700_v4, -inf }
 0x31f   : > { %1708 = vmax.xlane.f32.xlu1 %v1707_v9  ;;  %v1703_v11 = vpop.f32.mrb[14].mxu0  ;;  %v4783_v5 = vld [vmem:[%s5310_s27 + $0x4] ss:$8 sps:$4 sm:$0xff]  }
 0x320   : > { %v4519_v12 = vpop.f32.mrb[15].mxu0  ;;  %v4781_v11 = vld [vmem:[%s5310_s27] ss:$8 sps:$4 sm:$0xff]  }
 0x3ac   : > { %v1709_v13 = vpop.xlane.xlu1 %1708 }
 0x3ad   : > { %v1710_v14 = vsub.f32 %v1700_v4, %v1709_v13  ;;  %v4778_v4 = vld [vmem:[%s5310_s27 + $0xf0] ss:$8 sps:$4 sm:$0xff]  }
 0x3af   : > { %v1711_v15 = vmul.f32 1.442695, %v1710_v14  ;;  %v4786_v14 = vld [vmem:[%s5310_s27 + $0x14] ss:$8 sps:$4 sm:$0xff]  }
 0x3b1   : > { %5083 = vpow2.f32 %v1711_v15 }
 0x3bb   : > { %v5084_v16 = vpop.eup %5083 }
 0x3bc   : > { %v1713_v17 = vsel %vm1706_vm7, %v5084_v16, 0.0 }
 0x3bd   : > { %1714 = vadd.xlane.f32.xlu1 %v1713_v17  ;;  %v4784_v17 = vld [vmem:[%s5310_s27 + $0x10] ss:$8 sps:$4 sm:$0xff]  }
 0x44a   : > { %v1715_v18 = vpop.xlane.xlu1 %1714 }
 0x44b   : > { %5085 = vrcp.f32 %v1715_v18  ;;  %v4789_v18 = vld [vmem:[%s5310_s27 + $0x24] ss:$8 sps:$4 sm:$0xff]  }
 0x455   : > { %v5086_v22 = vpop.eup %5085 }
 0x456   : > { %v1717_v27 = vmul.f32 %v5086_v22, %v5084_v16  ;;  %v4792_v22 = vld [vmem:[%s5310_s27 + $0x34] ss:$8 sps:$4 sm:$0xff]  }
 0x458   : > { %v1718_v31 = vpack.c.bf16 %v1717_v27, %v1717_v27  ;;  %v4795_v27 = vld [vmem:[%s5310_s27 + $0x44] ss:$8 sps:$4 sm:$0xff]  }
 0x45a   : > { %4523 = vmatmul.mubr.msk.bf16.vlgmr.msra.gmra.mrb[8].mxu1 %vm1719_vm8, %v1718_v31  ;;  %v4798_v31 = vld [vmem:[%s5310_s27 + $0x54] ss:$8 sps:$4 sm:$0xff]  }
 0x45b   : > { %4527 = vmatpush3.bf16.xpose.msra.mxu1 %v1788_v32  ;;  %4528 = vmatprep.mubr.msk.bf16.mxu1 %vm5165_vm4, %v5164_v21  ;;  %v4801_v32 = vld [vmem:[%s5310_s27 + $0x64] ss:$8 sps:$4 sm:$0xff]  }
 0x45c   : > { %4532 = vmatprep.subr.bf16.mxu1 %v5164_v21 }
 0x462   : > { %4529 = vmatmul.mubr.bf16.vlgmr.msra.gmra.mrb[12].mxu1 %v1787_v33  ;;  %v4804_v33 = vld [vmem:[%s5310_s27 + $0x74] ss:$8 sps:$4 sm:$0xff]  }
 0x463   : > { %4533 = vmatpush3.bf16.msra.mxu1 %v1846_v59  ;;  %4534 = vmatprep.mubr.msk.bf16.mxu1 %vm5165_vm4, %v5164_v21  ;;  %v4766_v59 = vld [vmem:[%s5310_s27 + $0xb0] ss:$8 sps:$4 sm:$0xff]  }
 0x464   : > { %1985 = vmatprep.subr.bf16.mxu1 %v4759_v47 }
 0x52d   : > { %v5557_v34 = vpop.f32.mrb[8].mxu1 }
 0x52e   : > { %v4524_v35 = vpop.f32.mrb[9].mxu1 }
 0x52f   : > { %v1767_v36 = vpop.f32.mrb[10].mxu1  ;;  %v880_v35 = vsub.s32 5, %v5399_v6 }
 0x530   : > { %v4525_v37 = vpop.f32.mrb[11].mxu1  ;;  %v4802_v36 = vld [vmem:[%s5310_s27 + $0x70] ss:$8 sps:$4 sm:$0xff]  }
 0x531   : > { %v881_v37 = vrot.slane %v5520_v24, %v880_v35 }
 0x535   : > { %v1824_v38 = vpop.f32.mrb[12].mxu1 }
 0x536   : > { %v4530_v39 = vpop.f32.mrb[13].mxu1  ;;  %v1830_v40 = vsel %vm1706_vm7, %v1824_v38, -inf }
 0x537   : > { %1831 = vmax.xlane.f32.xlu0 %v1830_v40  ;;  %v1827_v29 = vpop.f32.mrb[14].mxu1  ;;  %v868_v39 = vsub.s32 2, %v5399_v6  ;;  %v1578_v40 = vadd.f32 %v5536_v48, %v881_v37 }
 0x538   : > { %v4531_v41 = vpop.f32.mrb[15].mxu1 }
 0x539   : > { %v869_v29 = vrot.slane %v5520_v24, %v868_v39  ;;  %v2148_v41 = vpack.c.bf16 %v1578_v40, %v1578_v40 }
 0x5c4   : > { %v1832_v42 = vpop.xlane.xlu0 %1831 }
 0x5c5   : > { %v1833_v43 = vsub.f32 %v1824_v38, %v1832_v42  ;;  %v1786_v38 = vpack.c.bf16 %v5557_v34, %v5557_v34  ;;  %v1535_v42 = vadd.f32 %v5525_v28, %v869_v29  ;;  %v5121_v29 = vld [vmem:[#allocation2] sm:$0x1f] }
 0x5c7   : > { %v1834_v44 = vmul.f32 1.442695, %v1833_v43  ;;  %v2147_v34 = vpack.c.bf16 %v1535_v42, %v1535_v42 }
 0x5c9   : > { %5087 = vpow2.f32 %v1834_v44 }
 0x5d3   : > { %v5088_v45 = vpop.eup %5087 }
 0x5d4   : > { %v1836_v46 = vsel %vm1706_vm7, %v5088_v45, 0.0 }
 0x5d5   : > { %1837 = vadd.xlane.f32.xlu1 %v1836_v46 }
 0x662   : > { %v1838_v49 = vpop.xlane.xlu1 %1837 }
 0x663   : > { %5089 = vrcp.f32 %v1838_v49 }
 0x66d   : > { %v5090_v50 = vpop.eup %5089 }
 0x66e   : > { %v1840_v51 = vmul.f32 %v5090_v50, %v5088_v45 }
 0x670   : > { %v1841_v53 = vpack.c.bf16 %v1840_v51, %v1840_v51 }
 0x672   : > { %4535 = vmatmul.mubr.msk.bf16.vlgmr.msra.gmra.mrb[16].mxu1 %vm1719_vm8, %v1841_v53 }
 0x673   : > { %1986 = vmatpush1.bf16.msra.mxu1 %v4757_v52  ;;  %2017 = vmatprep.mubr.bf16.mxu1 %v5163_v10 }
 0x674   : > { %1987 = vmatprep.subr.bf16.mxu1 %v4762_v54 }
 0x677   : > { %1988 = vmatpush1.bf16.msra.mxu1 %v4760_v55 }
 0x678   : > { %1989 = vmatprep.subr.bf16.mxu1 %v4765_v56 }
 0x67b   : > { %1990 = vmatpush1.bf16.msra.mxu1 %v4763_v57 }
 0x67c   : > { %1991 = vmatprep.subr.bf16.mxu1 %v4768_v58 }
 0x67f   : > { %1992 = vmatpush1.bf16.msra.mxu1 %v4766_v59  ;;  %v4805_v59 = vld [vmem:[%s5310_s27 + $0x100] ss:$8 sps:$4 sm:$0xff]  }
 0x680   : > { %1993 = vmatprep.subr.bf16.mxu1 %v4771_v60  ;;  %v4807_v60 = vld [vmem:[%s5310_s27 + $0x104] ss:$8 sps:$4 sm:$0xff]  }
 0x681   : > { %2345 = vmatprep.subr.bf16.mxu0 %v4807_v60  ;;  %v4850_v60 = vld [vmem:[%s5319_s0 + $0x98] ss:$24 sps:$4 sm:$0xff]  }
 0x682   : > { %2346 = vmatpush1.bf16.msra.mxu0 %v4805_v59  ;;  %v4847_v59 = vld [vmem:[%s5319_s0 + $0x90] ss:$24 sps:$4 sm:$0xff]  }
 0x683   : > { %1994 = vmatpush1.bf16.msra.mxu1 %v4769_v61  ;;  %v4810_v61 = vld [vmem:[%s5310_s27 + $0x114] ss:$8 sps:$4 sm:$0xff]  }
 0x684   : > { %1995 = vmatprep.subr.bf16.mxu1 %v4774_v62  ;;  %v4808_v62 = vld [vmem:[%s5310_s27 + $0x110] ss:$8 sps:$4 sm:$0xff]   ;;  %2347 = vmatprep.subr.bf16.mxu0 %v4810_v61  ;;  %v4855_v61 = vld [vmem:[%s5319_s0 + $0xc4] ss:$24 sps:$4 sm:$0xff]  }
 0x686   : > { %2348 = vmatpush1.bf16.msra.mxu0 %v4808_v62  ;;  %v4858_v62 = vld [vmem:[%s5319_s0 + $0xcc] ss:$24 sps:$4 sm:$0xff]  }
 0x687   : > { %1996 = vmatpush1.bf16.msra.mxu1 %v4772_v63  ;;  %v4813_v63 = vld [vmem:[%s5310_s27 + $0x124] ss:$8 sps:$4 sm:$0xff]  }
 0x688   : > { %1997 = vmatprep.subr.bf16.mxu1 %v4777_v0  ;;  %v4811_v0 = vld [vmem:[%s5310_s27 + $0x120] ss:$8 sps:$4 sm:$0xff]   ;;  %2349 = vmatprep.subr.bf16.mxu0 %v4813_v63 }
 0x689   : > { %v4853_v63 = vld [vmem:[%s5319_s0 + $0xc0] ss:$24 sps:$4 sm:$0xff]  }
 0x68a   : > { %2350 = vmatpush1.bf16.msra.mxu0 %v4811_v0  ;;  %v4856_v0 = vld [vmem:[%s5319_s0 + $0xc8] ss:$24 sps:$4 sm:$0xff]  }
 0x68b   : > { %1998 = vmatpush1.bf16.msra.mxu1 %v4775_v1  ;;  %v4816_v1 = vld [vmem:[%s5310_s27 + $0x134] ss:$8 sps:$4 sm:$0xff]  }
 0x68c   : > { %1999 = vmatprep.subr.bf16.mxu1 %v4780_v2  ;;  %v4814_v2 = vld [vmem:[%s5310_s27 + $0x130] ss:$8 sps:$4 sm:$0xff]   ;;  %2351 = vmatprep.subr.bf16.mxu0 %v4816_v1  ;;  %v4861_v1 = vld [vmem:[%s5319_s0 + $0xf4] ss:$24 sps:$4 sm:$0xff]  }
 0x68e   : > { %2352 = vmatpush1.bf16.msra.mxu0 %v4814_v2  ;;  %v4864_v2 = vld [vmem:[%s5319_s0 + $0xfc] ss:$24 sps:$4 sm:$0xff]  }
 0x68f   : > { %2000 = vmatpush1.bf16.msra.mxu1 %v4778_v4  ;;  %v4819_v4 = vld [vmem:[%s5310_s27 + $0x144] ss:$8 sps:$4 sm:$0xff]  }
 0x690   : > { %2106 = vmatprep.subr.bf16.mxu1 %v4783_v5  ;;  %v4817_v5 = vld [vmem:[%s5310_s27 + $0x140] ss:$8 sps:$4 sm:$0xff]   ;;  %2353 = vmatprep.subr.bf16.mxu0 %v4819_v4 }
 0x691   : > { %v4859_v4 = vld [vmem:[%s5319_s0 + $0xf0] ss:$24 sps:$4 sm:$0xff]  }
 0x692   : > { %2354 = vmatpush1.bf16.msra.mxu0 %v4817_v5  ;;  %v4862_v5 = vld [vmem:[%s5319_s0 + $0xf8] ss:$24 sps:$4 sm:$0xff]  }
 0x745   : > { %v1882_v9 = vpop.f32.mrb[16].mxu1 }
 0x746   : > { %v1904_v12 = vpack.c.bf16 %v1882_v9, %v1882_v9  ;;  %v4536_v13 = vpop.f32.mrb[17].mxu1  ;;  %v4822_v9 = vld [vmem:[%s5310_s27 + $0x154] ss:$8 sps:$4 sm:$0xff]  }
 0x747   : > { %v1885_v15 = vpop.f32.mrb[18].mxu1  ;;  %2355 = vmatprep.subr.bf16.mxu0 %v4822_v9  ;;  %v4823_v13 = vld [vmem:[%s5310_s27 + $0x160] ss:$8 sps:$4 sm:$0xff]   ;;  %v4867_v9 = vld [vmem:[%s5319_s0 + $0x124] ss:$24 sps:$4 sm:$0xff]  }
 0x748   : > { %v4537_v16 = vpop.f32.mrb[19].mxu1  ;;  %2018 = vmatmul.mubr.bf16.vlgmr.msra.gmra.mrb[20].mxu1 %v1904_v12  ;;  %v4825_v12 = vld [vmem:[%s5310_s27 + $0x164] ss:$8 sps:$4 sm:$0xff]   ;;  %v4826_v15 = vld [vmem:[%s5310_s27 + $0x170] ss:$8 sps:$4 sm:$0xff]  }
 0x749   : > { %2107 = vmatpush1.bf16.msra.mxu1 %v4781_v11  ;;  %2138 = vmatprep.mubr.bf16.mxu1 %v5163_v10  ;;  %v4796_v10 = vld [vmem:[%s5310_s27 + $0x50] ss:$8 sps:$4 sm:$0xff]  }
 0x74a   : > { %2108 = vmatprep.subr.bf16.mxu1 %v4786_v14  ;;  %v4820_v11 = vld [vmem:[%s5310_s27 + $0x150] ss:$8 sps:$4 sm:$0xff]   ;;  %v4828_v14 = vld [vmem:[%s5310_s27 + $0x174] ss:$8 sps:$4 sm:$0xff]  }
 0x74b   : > { %2356 = vmatpush1.bf16.msra.mxu0 %v4820_v11  ;;  %v4865_v11 = vld [vmem:[%s5319_s0 + $0x120] ss:$24 sps:$4 sm:$0xff]  }
 0x74c   : > { %2357 = vmatprep.subr.bf16.mxu0 %v4825_v12 }
 0x74d   : > { %2109 = vmatpush1.bf16.msra.mxu1 %v4784_v17 }
 0x74e   : > { %2110 = vmatprep.subr.bf16.mxu1 %v4789_v18 }
 0x74f   : > { %2358 = vmatpush1.bf16.msra.mxu0 %v4823_v13 }
 0x750   : > { %2359 = vmatprep.subr.bf16.mxu0 %v4828_v14 }
 0x751   : > { %2111 = vmatpush1.bf16.msra.mxu1 %v4787_v20 }
 0x752   : > { %2112 = vmatprep.subr.bf16.mxu1 %v4792_v22 }
 0x753   : > { %2360 = vmatpush1.bf16.msra.mxu0 %v4826_v15 }
 0x755   : > { %2113 = vmatpush1.bf16.msra.mxu1 %v4790_v26 }
 0x756   : > { %2114 = vmatprep.subr.bf16.mxu1 %v4795_v27 }
 0x759   : > { %2115 = vmatpush1.bf16.msra.mxu1 %v4793_v30 }
 0x75a   : > { %2116 = vmatprep.subr.bf16.mxu1 %v4798_v31 }
 0x75d   : > { %2117 = vmatpush1.bf16.msra.mxu1 %v4796_v10  ;;  %v2390_v10 = vld [vmem:[%s6004_s14] sm:$0x3] }
 0x75e   : > { %2118 = vmatprep.subr.bf16.mxu1 %v4801_v32 }
 0x761   : > { %2119 = vmatpush1.bf16.msra.mxu1 %v4799_v25 }
 0x762   : > { %2120 = vmatprep.subr.bf16.mxu1 %v4804_v33  ;;  %v2395_v33 = vrot.slane %v2390_v10, %v5405_v8 }
 0x765   : > { %2121 = vmatpush1.bf16.msra.mxu1 %v4802_v36 }
 0x766   : > { %4538 = vmatprep.subr.bf16.mxu1 %v5164_v21 }
 0x768   : > { %2139 = vmatmul.mubr.bf16.vlgmr.msra.gmra.mrb[24].mxu1 %v1786_v38  ;;  %v2399_v38 = vrot.slane %v2390_v10, %v5402_v7  ;;  %v4876_v10 = vld [vmem:[%s5319_s0 + $0x15c] ss:$24 sps:$4 sm:$0xff]  }
 0x769   : > { %4540 = vmatprep.mubr.msk.bf16.mxu1 %vm5165_vm4, %v5164_v21 }
 0x76e   : > { %4539 = vmatpush3.bf16.xpose.msra.mxu1 %v2148_v41 }
 0x76f   : > { %4544 = vmatprep.subr.bf16.mxu1 %v5164_v21 }
 0x775   : > { %4541 = vmatmul.mubr.bf16.vlgmr.msra.gmra.mrb[28].mxu1 %v2147_v34  ;;  %v5122_v34 = vld [vmem:[#allocation2 + $0x8] sm:$0x1f] }
 0x776   : > { %4545 = vmatpush3.bf16.msra.mxu1 %v5540_v3  ;;  %4546 = vmatprep.mubr.msk.bf16.mxu1 %vm5165_vm4, %v5164_v21 }
 0x81b   : > { %v2019_v48 = vpop.f32.mrb[20].mxu1 }
 0x81c   : > { %v2021_v43 = vpop.f32.mrb[21].mxu1 }
 0x81d   : > { %v2023_v44 = vpop.f32.mrb[22].mxu1 }
 0x81e   : > { %v2024_v45 = vpop.f32.mrb[23].mxu1 }
 0x83b   : > { %v2140_v46 = vpop.f32.mrb[24].mxu1 }
 0x83c   : > { %v5615_v47 = vadd.f32 %v2140_v46, %v2019_v48  ;;  %v2142_v24 = vpop.f32.mrb[25].mxu1 }
 0x83d   : > { %v5617_v49 = vadd.f32 %v2142_v24, %v2021_v43  ;;  %v2144_v28 = vpop.f32.mrb[26].mxu1  ;;  %v4829_v24 = vld [vmem:[%s5319_s0] ss:$24 sps:$4 sm:$0xff]  }
 0x83e   : > { %v2145_v50 = vpop.f32.mrb[27].mxu1  ;;  %v4832_v28 = vld [vmem:[%s5319_s0 + $0x8] ss:$24 sps:$4 sm:$0xff]  }
 0x83f   : > { %v4834_v50 = vld [vmem:[%s5319_s0 + $0xc] ss:$24 sps:$4 sm:$0xff]  }
 0x840   : > { %2962 = vmatprep.subr.bf16.mxu0 %v4834_v50  ;;  %v4939_v50 = vld [vmem:[%s5334_s30 + $0x4] ss:$8 sps:$4 sm:$0xff]  }
 0x848   : > { %v2184_v51 = vpop.f32.mrb[28].mxu1 }
 0x849   : > { %v4542_v3 = vpop.f32.mrb[29].mxu1  ;;  %v2190_v52 = vsel %vm1706_vm7, %v2184_v51, -inf }
 0x84a   : > { %2191 = vmax.xlane.f32.xlu0 %v2190_v52  ;;  %v2187_v21 = vpop.f32.mrb[30].mxu1  ;;  %v4840_v3 = vld [vmem:[%s5319_s0 + $0x3c] ss:$24 sps:$4 sm:$0xff]   ;;  %v4835_v52 = vld [vmem:[%s5319_s0 + $0x30] ss:$24 sps:$4 sm:$0xff]  }
 0x84b   : > { %v4543_v53 = vpop.f32.mrb[31].mxu1  ;;  %v4838_v21 = vld [vmem:[%s5319_s0 + $0x38] ss:$24 sps:$4 sm:$0xff]  }
 0x84c   : > { %v4843_v53 = vld [vmem:[%s5319_s0 + $0x64] ss:$24 sps:$4 sm:$0xff]  }
 0x8d7   : > { %v2192_v54 = vpop.xlane.xlu0 %2191 }
 0x8d8   : > { %v2193_v55 = vsub.f32 %v2184_v51, %v2192_v54  ;;  %v4837_v51 = vld [vmem:[%s5319_s0 + $0x34] ss:$24 sps:$4 sm:$0xff]  }
 0x8d9   : > { %v4846_v54 = vld [vmem:[%s5319_s0 + $0x6c] ss:$24 sps:$4 sm:$0xff]  }
 0x8da   : > { %v2194_v56 = vmul.f32 1.442695, %v2193_v55  ;;  %v4841_v55 = vld [vmem:[%s5319_s0 + $0x60] ss:$24 sps:$4 sm:$0xff]  }
 0x8dc   : > { %5091 = vpow2.f32 %v2194_v56  ;;  %v4844_v56 = vld [vmem:[%s5319_s0 + $0x68] ss:$24 sps:$4 sm:$0xff]  }
 0x8e6   : > { %v5092_v57 = vpop.eup %5091 }
 0x8e7   : > { %v2196_v58 = vsel %vm1706_vm7, %v5092_v57, 0.0 }
 0x8e8   : > { %2197 = vadd.xlane.f32.xlu1 %v2196_v58  ;;  %v4852_v58 = vld [vmem:[%s5319_s0 + $0x9c] ss:$24 sps:$4 sm:$0xff]  }
 0x975   : > { %v2198_v16 = vpop.xlane.xlu1 %2197 }
 0x976   : > { %5093 = vrcp.f32 %v2198_v16 }
 0x980   : > { %v5094_v17 = vpop.eup %5093 }
 0x981   : > { %v2200_v18 = vmul.f32 %v5094_v17, %v5092_v57  ;;  %v4849_v57 = vld [vmem:[%s5319_s0 + $0x94] ss:$24 sps:$4 sm:$0xff]  }
 0x983   : > { %v2201_v20 = vpack.c.bf16 %v2200_v18, %v2200_v18 }
 0x985   : > { %4547 = vmatmul.mubr.msk.bf16.vlgmr.msra.gmra.mrb[32].mxu1 %vm1719_vm8, %v2201_v20 }
 0xa58   : > { %v2242_v22 = vpop.f32.mrb[32].mxu1 }
 0xa59   : > { %v2264_v26 = vpack.c.bf16 %v2242_v22, %v2242_v22  ;;  %v4548_v27 = vpop.f32.mrb[33].mxu1 }
 0xa5a   : > { %v2245_v30 = vpop.f32.mrb[34].mxu1  ;;  %v4868_v27 = vld [vmem:[%s5319_s0 + $0x128] ss:$24 sps:$4 sm:$0xff]  }
 0xa5b   : > { %v4549_v31 = vpop.f32.mrb[35].mxu1  ;;  %2378 = vmatmul.mubr.bf16.vlgmr.msra.gmra.mrb[16].mxu0 %v2264_v26  ;;  %v4870_v26 = vld [vmem:[%s5319_s0 + $0x12c] ss:$24 sps:$4 sm:$0xff]  }
 0xa5c   : > { %2963 = vmatpush1.bf16.msra.mxu0 %v4832_v28  ;;  %v4873_v30 = vld [vmem:[%s5319_s0 + $0x154] ss:$24 sps:$4 sm:$0xff]   ;;  %v4871_v31 = vld [vmem:[%s5319_s0 + $0x150] ss:$24 sps:$4 sm:$0xff]  }
 0xa5d   : > { %2964 = vmatprep.subr.bf16.mxu0 %v4840_v3  ;;  %v4903_v28 = vld [vmem:[%s5319_s0 + $0x14] ss:$24 sps:$4 sm:$0xff]  }
 0xa60   : > { %2965 = vmatpush1.bf16.msra.mxu0 %v4838_v21  ;;  %v2404_v21 = vld [vmem:[%s6006_s1] sm:$0x3] }
 0xa61   : > { %2966 = vmatprep.subr.bf16.mxu0 %v4846_v54  ;;  %v2434_v54 = vrot.slane %v2404_v21, %v5402_v7 }
 0xa64   : > { %2967 = vmatpush1.bf16.msra.mxu0 %v4844_v56 }
 0xa65   : > { %2968 = vmatprep.subr.bf16.mxu0 %v4852_v58 }
 0xa68   : > { %2969 = vmatpush1.bf16.msra.mxu0 %v4850_v60 }
 0xa69   : > { %2970 = vmatprep.subr.bf16.mxu0 %v4858_v62 }
 0xa6c   : > { %2971 = vmatpush1.bf16.msra.mxu0 %v4856_v0 }
 0xa6d   : > { %2972 = vmatprep.subr.bf16.mxu0 %v4864_v2  ;;  %v4901_v2 = vld [vmem:[%s5319_s0 + $0x10] ss:$24 sps:$4 sm:$0xff]  }
 0xa70   : > { %2973 = vmatpush1.bf16.msra.mxu0 %v4862_v5  ;;  %v4906_v5 = vld [vmem:[%s5319_s0 + $0x44] ss:$24 sps:$4 sm:$0xff]  }
 0xa71   : > { %2974 = vmatprep.subr.bf16.mxu0 %v4870_v26  ;;  %v4913_v26 = vld [vmem:[%s5319_s0 + $0xd0] ss:$24 sps:$4 sm:$0xff]  }
 0xa74   : > { %2975 = vmatpush1.bf16.msra.mxu0 %v4868_v27  ;;  %v4918_v27 = vld [vmem:[%s5319_s0 + $0x104] ss:$24 sps:$4 sm:$0xff]  }
 0xa75   : > { %2976 = vmatprep.subr.bf16.mxu0 %v4876_v10  ;;  %v4919_v10 = vld [vmem:[%s5319_s0 + $0x130] ss:$24 sps:$4 sm:$0xff]  }
 0xb2e   : > { %v2379_v32 = vpop.f32.mrb[16].mxu0 }
 0xb2f   : > { %v2386_v25 = vadd.f32 %v2379_v32, %v5615_v47  ;;  %v2381_v36 = vpop.f32.mrb[17].mxu0  ;;  %v4874_v32 = vld [vmem:[%s5319_s0 + $0x158] ss:$24 sps:$4 sm:$0xff]  }
 0xb30   : > { %v2387_v37 = vadd.f32 %v2381_v36, %v5617_v49  ;;  %v2383_v40 = vpop.f32.mrb[18].mxu0  ;;  %v4831_v49 = vld [vmem:[%s5319_s0 + $0x4] ss:$24 sps:$4 sm:$0xff]   ;;  %2977 = vmatpush1.bf16.msra.mxu0 %v4874_v32 }
 0xb31   : > { %v2388_v41 = vadd.f32 %v5121_v29, %v2386_v25  ;;  %v2384_v42 = vpop.f32.mrb[19].mxu0  ;;  %2921 = vmatprep.subr.bf16.mxu1 %v4831_v49  ;;  %v4879_v25 = vld [vmem:[%s5319_s0 + $0x184] ss:$24 sps:$4 sm:$0xff]   ;;  %v4883_v40 = vld [vmem:[%s5319_s0 + $0x1b0] ss:$24 sps:$4 sm:$0xff]  }
 0xb32   : > { %v2389_v48 = vadd.f32 %v5122_v34, %v2387_v37  ;;  %2922 = vmatpush1.bf16.msra.mxu1 %v4829_v24  ;;  %v4882_v36 = vld [vmem:[%s5319_s0 + $0x18c] ss:$24 sps:$4 sm:$0xff]   ;;  %v4880_v37 = vld [vmem:[%s5319_s0 + $0x188] ss:$24 sps:$4 sm:$0xff]   ;;  %v4888_v29 = vld [vmem:[%s5319_s0 + $0x1bc] ss:$24 sps:$4 sm:$0xff]  }
 0xb33   : > { %v5647_v43 = vadd.f32 %v2395_v33, %v2388_v41  ;;  %2923 = vmatprep.subr.bf16.mxu1 %v4837_v51  ;;  %v4877_v33 = vld [vmem:[%s5319_s0 + $0x180] ss:$24 sps:$4 sm:$0xff]   ;;  %2978 = vmatprep.subr.bf16.mxu0 %v4882_v36  ;;  %v4891_v42 = vld [vmem:[%s5319_s0 + $0x1e4] ss:$24 sps:$4 sm:$0xff]   ;;  %v4925_v36 = vld [vmem:[%s5319_s0 + $0x190] ss:$24 sps:$4 sm:$0xff]  }
 0xb34   : > { %v5649_v44 = vadd.f32 %v2399_v38, %v2389_v48  ;;  %2979 = vmatpush1.bf16.msra.mxu0 %v4880_v37  ;;  %v4885_v38 = vld [vmem:[%s5319_s0 + $0x1b4] ss:$24 sps:$4 sm:$0xff]   ;;  %v4886_v41 = vld [vmem:[%s5319_s0 + $0x1b8] ss:$24 sps:$4 sm:$0xff]   ;;  %v4924_v32 = vld [vmem:[%s5319_s0 + $0x164] ss:$24 sps:$4 sm:$0xff]  }
 0xb35   : > { %v2406_v45 = vsel %vm683_vm1, %v5647_v43, 0.0  ;;  %2980 = vmatprep.subr.bf16.mxu0 %v4888_v29  ;;  %v4889_v34 = vld [vmem:[%s5319_s0 + $0x1e0] ss:$24 sps:$4 sm:$0xff]   ;;  %v4894_v48 = vld [vmem:[%s5319_s0 + $0x1ec] ss:$24 sps:$4 sm:$0xff]  }
 0xb36   : > { %v2407_v46 = vsel %vm685_vm2, %v5649_v44, 0.0  ;;  %2924 = vmatpush1.bf16.msra.mxu1 %v4835_v52  ;;  %v4900_v24 = vld [vmem:[%s5319_s0 + $0x21c] ss:$24 sps:$4 sm:$0xff]   ;;  %v4898_v49 = vld [vmem:[%s5319_s0 + $0x218] ss:$24 sps:$4 sm:$0xff]  }
 0xb37   : > { %v2408_v47 = vadd.f32 %v2407_v46, %v2406_v45  ;;  %2925 = vmatprep.subr.bf16.mxu1 %v4843_v53  ;;  %v4892_v45 = vld [vmem:[%s5319_s0 + $0x1e8] ss:$24 sps:$4 sm:$0xff]   ;;  %v4897_v46 = vld [vmem:[%s5319_s0 + $0x214] ss:$24 sps:$4 sm:$0xff]   ;;  %v4930_v37 = vld [vmem:[%s5319_s0 + $0x1c4] ss:$24 sps:$4 sm:$0xff]  }
 0xb38   : > { %2981 = vmatpush1.bf16.msra.mxu0 %v4886_v41  ;;  %v2405_v53 = vld [vmem:[%s6007_s18] sm:$0x3]  ;;  %v4931_v29 = vld [vmem:[%s5319_s0 + $0x1f0] ss:$24 sps:$4 sm:$0xff]   ;;  %v4936_v41 = vld [vmem:[%s5319_s0 + $0x224] ss:$24 sps:$4 sm:$0xff]  }
 0xb39   : > { %2409 = vadd.xlane.f32.xlu0 %v2408_v47  ;;  %2982 = vmatprep.subr.bf16.mxu0 %v4894_v48  ;;  %v4895_v47 = vld [vmem:[%s5319_s0 + $0x210] ss:$24 sps:$4 sm:$0xff]   ;;  %v2443_v60 = vrot.slane %v2405_v53, %v5405_v8 }
 0xb3a   : > { %2926 = vmatpush1.bf16.msra.mxu1 %v4841_v55  ;;  %v2430_v55 = vrot.slane %v2404_v21, %v5405_v8  ;;  %v4940_v48 = vld [vmem:[%s5334_s30 + $0x100] ss:$8 sps:$4 sm:$0xff]   ;;  %v4966_v21 = vld [vmem:[%s5334_s30 + $0x144] ss:$8 sps:$4 sm:$0xff]  }
 0xb3b   : > { %2927 = vmatprep.subr.bf16.mxu1 %v4849_v57 }
 0xb3c   : > { %2983 = vmatpush1.bf16.msra.mxu0 %v4892_v45  ;;  %v4948_v45 = vld [vmem:[%s5334_s30 + $0x114] ss:$8 sps:$4 sm:$0xff]  }
 0xb3d   : > { %2984 = vmatprep.subr.bf16.mxu0 %v4900_v24  ;;  %v4952_v24 = vld [vmem:[%s5334_s30 + $0x120] ss:$8 sps:$4 sm:$0xff]  }
 0xb3e   : > { %2928 = vmatpush1.bf16.msra.mxu1 %v4847_v59  ;;  %v2447_v59 = vrot.slane %v2405_v53, %v5402_v7  ;;  %v4964_v53 = vld [vmem:[%s5334_s30 + $0x140] ss:$8 sps:$4 sm:$0xff]  }
 0xb3f   : > { %2929 = vmatprep.subr.bf16.mxu1 %v4855_v61 }
 0xb40   : > { %2985 = vmatpush1.bf16.msra.mxu0 %v4898_v49  ;;  %v4957_v49 = vld [vmem:[%s5334_s30 + $0x34] ss:$8 sps:$4 sm:$0xff]  }
 0xb41   : > { %3782 = vmatprep.subr.bf16.mxu0 %v4939_v50  ;;  %v4960_v50 = vld [vmem:[%s5334_s30 + $0x134] ss:$8 sps:$4 sm:$0xff]  }
 0xb42   : > { %2930 = vmatpush1.bf16.msra.mxu1 %v4853_v63 }
 0xb43   : > { %2931 = vmatprep.subr.bf16.mxu1 %v4861_v1 }
 0xb46   : > { %2932 = vmatpush1.bf16.msra.mxu1 %v4859_v4 }
 0xb47   : > { %2933 = vmatprep.subr.bf16.mxu1 %v4867_v9  ;;  %v4937_v9 = vld [vmem:[%s5334_s30] ss:$8 sps:$4 sm:$0xff]  }
 0xb4a   : > { %2934 = vmatpush1.bf16.msra.mxu1 %v4865_v11  ;;  %v4945_v11 = vld [vmem:[%s5334_s30 + $0x14] ss:$8 sps:$4 sm:$0xff]  }
 0xb4b   : > { %2935 = vmatprep.subr.bf16.mxu1 %v4873_v30  ;;  %v4916_v30 = vld [vmem:[%s5319_s0 + $0x100] ss:$24 sps:$4 sm:$0xff]  }
 0xb4e   : > { %2936 = vmatpush1.bf16.msra.mxu1 %v4871_v31  ;;  %v4921_v31 = vld [vmem:[%s5319_s0 + $0x134] ss:$24 sps:$4 sm:$0xff]  }
 0xb4f   : > { %2937 = vmatprep.subr.bf16.mxu1 %v4879_v25  ;;  %v4922_v25 = vld [vmem:[%s5319_s0 + $0x160] ss:$24 sps:$4 sm:$0xff]  }
 0xb52   : > { %2938 = vmatpush1.bf16.msra.mxu1 %v4877_v33  ;;  %v4927_v33 = vld [vmem:[%s5319_s0 + $0x194] ss:$24 sps:$4 sm:$0xff]  }
 0xb53   : > { %2939 = vmatprep.subr.bf16.mxu1 %v4885_v38  ;;  %v4928_v38 = vld [vmem:[%s5319_s0 + $0x1c0] ss:$24 sps:$4 sm:$0xff]  }
 0xb56   : > { %2940 = vmatpush1.bf16.msra.mxu1 %v4883_v40  ;;  %v4933_v40 = vld [vmem:[%s5319_s0 + $0x1f4] ss:$24 sps:$4 sm:$0xff]  }
 0xb57   : > { %2941 = vmatprep.subr.bf16.mxu1 %v4891_v42  ;;  %v4934_v42 = vld [vmem:[%s5319_s0 + $0x220] ss:$24 sps:$4 sm:$0xff]  }
 0xb5a   : > { %2942 = vmatpush1.bf16.msra.mxu1 %v4889_v34  ;;  %v4942_v34 = vld [vmem:[%s5334_s30 + $0x104] ss:$8 sps:$4 sm:$0xff]  }
 0xb5b   : > { %2943 = vmatprep.subr.bf16.mxu1 %v4897_v46  ;;  %v4946_v46 = vld [vmem:[%s5334_s30 + $0x110] ss:$8 sps:$4 sm:$0xff]  }
 0xb5e   : > { %2944 = vmatpush1.bf16.msra.mxu1 %v4895_v47  ;;  %v4954_v47 = vld [vmem:[%s5334_s30 + $0x124] ss:$8 sps:$4 sm:$0xff]  }
 0xb5f   : > { %3003 = vmatprep.subr.bf16.mxu1 %v4903_v28  ;;  %v4955_v28 = vld [vmem:[%s5334_s30 + $0x30] ss:$8 sps:$4 sm:$0xff]  }
 0xbc6   : > { %v2410_v12 = vpop.xlane.xlu0 %2409 }
 0xbc7   : > { %v2411_v13 = vmul.f32 0.0052083335, %v2410_v12  ;;  %v4904_v12 = vld [vmem:[%s5319_s0 + $0x40] ss:$24 sps:$4 sm:$0xff]  }
 0xbc9   : > { %v5682_v14 = vsub.f32 %v5647_v43, %v2411_v13  ;;  %v5685_v15 = vsub.f32 %v5649_v44, %v2411_v13  ;;  %v4909_v13 = vld [vmem:[%s5319_s0 + $0x74] ss:$24 sps:$4 sm:$0xff]  }
 0xbcb   : > { %v2414_v16 = vmul.f32 %v5682_v14, %v5682_v14  ;;  %v2415_v17 = vmul.f32 %v5685_v15, %v5685_v15 }
 0xbcd   : > { %v2416_v18 = vsel %vm683_vm1, %v2414_v16, 0.0  ;;  %v2417_v20 = vsel %vm685_vm2, %v2415_v17, 0.0  ;;  %v4907_v16 = vld [vmem:[%s5319_s0 + $0x70] ss:$24 sps:$4 sm:$0xff]   ;;  %v4912_v17 = vld [vmem:[%s5319_s0 + $0xa4] ss:$24 sps:$4 sm:$0xff]  }
 0xbce   : > { %v2418_v22 = vadd.f32 %v2417_v20, %v2416_v18  ;;  %v4949_v18 = vld [vmem:[%s5334_s30 + $0x20] ss:$8 sps:$4 sm:$0xff]  }
 0xbcf   : > { %v4910_v20 = vld [vmem:[%s5319_s0 + $0xa0] ss:$24 sps:$4 sm:$0xff]  }
 0xbd0   : > { %2419 = vadd.xlane.f32.xlu1 %v2418_v22  ;;  %v4915_v22 = vld [vmem:[%s5319_s0 + $0xd4] ss:$24 sps:$4 sm:$0xff]  }
 0xc5d   : > { %v2420_v51 = vpop.xlane.xlu1 %2419 }
 0xc5e   : > { %v2421_v3 = vmul.f32 0.0052083335, %v2420_v51  ;;  %v4958_v51 = vld [vmem:[%s5334_s30 + $0x130] ss:$8 sps:$4 sm:$0xff]  }
 0xc60   : > { %v2422_v52 = vadd.f32 1e-06, %v2421_v3  ;;  %v4963_v3 = vld [vmem:[%s5334_s30 + $0x44] ss:$8 sps:$4 sm:$0xff]  }
 0xc62   : > { %5095 = vrsqrt.f32 %v2422_v52  ;;  %v4961_v52 = vld [vmem:[%s5334_s30 + $0x40] ss:$8 sps:$4 sm:$0xff]  }
 0xc6c   : > { %v5096_v56 = vpop.eup %5095 }
 0xc6d   : > { %v2424_v57 = vmul.f32 %v5096_v56, %v5682_v14  ;;  %v2425_v58 = vmul.f32 %v5096_v56, %v5685_v15  ;;  %v4943_v14 = vld [vmem:[%s5334_s30 + $0x10] ss:$8 sps:$4 sm:$0xff]   ;;  %v4951_v15 = vld [vmem:[%s5334_s30 + $0x24] ss:$8 sps:$4 sm:$0xff]   ;;  %v4972_v56 = vld [vmem:[%s5334_s30 + $0x154] ss:$8 sps:$4 sm:$0xff]  }
 0xc6f   : > { %v2438_v61 = vmul.f32 %v2434_v54, %v2425_v58  ;;  %v2437_v62 = vmul.f32 %v2430_v55, %v2424_v57  ;;  %v4969_v54 = vld [vmem:[%s5334_s30 + $0x54] ss:$8 sps:$4 sm:$0xff]   ;;  %v4967_v55 = vld [vmem:[%s5334_s30 + $0x50] ss:$8 sps:$4 sm:$0xff]   ;;  %v4975_v58 = vld [vmem:[%s5334_s30 + $0x64] ss:$8 sps:$4 sm:$0xff]  }
 0xc70   : > { %v4970_v57 = vld [vmem:[%s5334_s30 + $0x150] ss:$8 sps:$4 sm:$0xff]  }
 0xc71   : > { %v2451_v63 = vadd.f32 %v2447_v59, %v2438_v61  ;;  %v2450_v0 = vadd.f32 %v2443_v60, %v2437_v62  ;;  %v4973_v59 = vld [vmem:[%s5334_s30 + $0x60] ss:$8 sps:$4 sm:$0xff]   ;;  %v4978_v60 = vld [vmem:[%s5334_s30 + $0x164] ss:$8 sps:$4 sm:$0xff]   ;;  %v4981_v62 = vld [vmem:[%s5334_s30 + $0x74] ss:$8 sps:$4 sm:$0xff]  }
 0xc72   : > { %v4976_v61 = vld [vmem:[%s5334_s30 + $0x160] ss:$8 sps:$4 sm:$0xff]  }
 0xc73   : > { %v2453_v1 = vpack.c.bf16 %v2451_v63, %v2451_v63  ;;  %v5734_v4 = vpack.c.bf16 %v2450_v0, %v2450_v0  ;;  %v4979_v63 = vld [vmem:[%s5334_s30 + $0x70] ss:$8 sps:$4 sm:$0xff]   ;;  %v4984_v0 = vld [vmem:[%s5334_s30 + $0x174] ss:$8 sps:$4 sm:$0xff]  }
 0xc75   : > { %4398 = vmatprep.mubr.msk.bf16.mxu1 %vm1455_vm3, %v2453_v1  ;;  %4399 = vmatprep.mubr.msk.bf16.mxu0 %vm1455_vm3, %v2453_v1 }
 0xc76   : > { %2954 = vmatmul.mubr.bf16.vlgmr.msra.gmra.mrb[36].mxu1 %v5734_v4  ;;  %2995 = vmatmul.mubr.bf16.vlgmr.msra.gmra.mrb[20].mxu0 %v5734_v4 }
 0xc77   : > { %3004 = vmatpush1.bf16.msra.mxu1 %v4901_v2  ;;  %4400 = vmatprep.mubr.msk.bf16.mxu1 %vm1455_vm3, %v2453_v1  ;;  %v4982_v1 = vld [vmem:[%s5334_s30 + $0x170] ss:$8 sps:$4 sm:$0xff]   ;;  %v4987_v2 = vld [vmem:[%s5334_s30 + $0x84] ss:$8 sps:$4 sm:$0xff]  }
 0xc78   : > { %3005 = vmatprep.subr.bf16.mxu1 %v4906_v5  ;;  %3783 = vmatpush1.bf16.msra.mxu0 %v4937_v9  ;;  %v4990_v5 = vld [vmem:[%s5334_s30 + $0x184] ss:$8 sps:$4 sm:$0xff]   ;;  %v4988_v9 = vld [vmem:[%s5334_s30 + $0x180] ss:$8 sps:$4 sm:$0xff]  }
 0xc79   : > { %3784 = vmatprep.subr.bf16.mxu0 %v4945_v11  ;;  %v4993_v11 = vld [vmem:[%s5334_s30 + $0x94] ss:$8 sps:$4 sm:$0xff]  }
 0xc7b   : > { %3006 = vmatpush1.bf16.msra.mxu1 %v4904_v12  ;;  %v4991_v12 = vld [vmem:[%s5334_s30 + $0x90] ss:$8 sps:$4 sm:$0xff]  }
 0xc7c   : > { %3007 = vmatprep.subr.bf16.mxu1 %v4909_v13  ;;  %3785 = vmatpush1.bf16.msra.mxu0 %v4943_v14  ;;  %v4996_v13 = vld [vmem:[%s5334_s30 + $0x194] ss:$8 sps:$4 sm:$0xff]   ;;  %v4994_v14 = vld [vmem:[%s5334_s30 + $0x190] ss:$8 sps:$4 sm:$0xff]  }
 0xc7d   : > { %3786 = vmatprep.subr.bf16.mxu0 %v4951_v15  ;;  %v4999_v15 = vld [vmem:[%s5334_s30 + $0xa4] ss:$8 sps:$4 sm:$0xff]  }
 0xc7f   : > { %3008 = vmatpush1.bf16.msra.mxu1 %v4907_v16  ;;  %v4997_v16 = vld [vmem:[%s5334_s30 + $0xa0] ss:$8 sps:$4 sm:$0xff]  }
 0xc80   : > { %3009 = vmatprep.subr.bf16.mxu1 %v4912_v17  ;;  %3787 = vmatpush1.bf16.msra.mxu0 %v4949_v18  ;;  %v5002_v17 = vld [vmem:[%s5334_s30 + $0x1a4] ss:$8 sps:$4 sm:$0xff]   ;;  %v5000_v18 = vld [vmem:[%s5334_s30 + $0x1a0] ss:$8 sps:$4 sm:$0xff]  }
 0xc81   : > { %3788 = vmatprep.subr.bf16.mxu0 %v4957_v49 }
 0xc83   : > { %3010 = vmatpush1.bf16.msra.mxu1 %v4910_v20  ;;  %v5005_v20 = vld [vmem:[%s5334_s30 + $0xb4] ss:$8 sps:$4 sm:$0xff]  }
 0xc84   : > { %3011 = vmatprep.subr.bf16.mxu1 %v4915_v22  ;;  %3789 = vmatpush1.bf16.msra.mxu0 %v4955_v28  ;;  %v5003_v22 = vld [vmem:[%s5334_s30 + $0xb0] ss:$8 sps:$4 sm:$0xff]  }
 0xc85   : > { %3790 = vmatprep.subr.bf16.mxu0 %v4963_v3 }
 0xc87   : > { %3012 = vmatpush1.bf16.msra.mxu1 %v4913_v26  ;;  %v5008_v26 = vld [vmem:[%s5334_s30 + $0x1b4] ss:$8 sps:$4 sm:$0xff]  }
 0xc88   : > { %3013 = vmatprep.subr.bf16.mxu1 %v4918_v27  ;;  %3791 = vmatpush1.bf16.msra.mxu0 %v4961_v52  ;;  %v5006_v27 = vld [vmem:[%s5334_s30 + $0x1b0] ss:$8 sps:$4 sm:$0xff]  }
 0xc89   : > { %3792 = vmatprep.subr.bf16.mxu0 %v4969_v54 }
 0xc8b   : > { %3014 = vmatpush1.bf16.msra.mxu1 %v4916_v30  ;;  %v5011_v30 = vld [vmem:[%s5334_s30 + $0xc4] ss:$8 sps:$4 sm:$0xff]  }
 0xc8c   : > { %3015 = vmatprep.subr.bf16.mxu1 %v4921_v31  ;;  %3793 = vmatpush1.bf16.msra.mxu0 %v4967_v55  ;;  %v5009_v31 = vld [vmem:[%s5334_s30 + $0xc0] ss:$8 sps:$4 sm:$0xff]  }
 0xc8d   : > { %3794 = vmatprep.subr.bf16.mxu0 %v4975_v58 }
 0xc8f   : > { %3016 = vmatpush1.bf16.msra.mxu1 %v4919_v10  ;;  %v5014_v10 = vld [vmem:[%s5334_s30 + $0x1c4] ss:$8 sps:$4 sm:$0xff]  }
 0xc90   : > { %3017 = vmatprep.subr.bf16.mxu1 %v4924_v32  ;;  %3795 = vmatpush1.bf16.msra.mxu0 %v4973_v59  ;;  %v5012_v32 = vld [vmem:[%s5334_s30 + $0x1c0] ss:$8 sps:$4 sm:$0xff]  }
 0xc91   : > { %3796 = vmatprep.subr.bf16.mxu0 %v4981_v62 }
 0xc93   : > { %3018 = vmatpush1.bf16.msra.mxu1 %v4922_v25  ;;  %v5017_v25 = vld [vmem:[%s5334_s30 + $0xd4] ss:$8 sps:$4 sm:$0xff]  }
 0xc94   : > { %3019 = vmatprep.subr.bf16.mxu1 %v4927_v33  ;;  %3797 = vmatpush1.bf16.msra.mxu0 %v4979_v63  ;;  %v5015_v33 = vld [vmem:[%s5334_s30 + $0xd0] ss:$8 sps:$4 sm:$0xff]  }
 0xc95   : > { %3798 = vmatprep.subr.bf16.mxu0 %v4987_v2 }
 0xc97   : > { %3020 = vmatpush1.bf16.msra.mxu1 %v4925_v36  ;;  %v5020_v36 = vld [vmem:[%s5334_s30 + $0x1d4] ss:$8 sps:$4 sm:$0xff]  }
 0xc98   : > { %3021 = vmatprep.subr.bf16.mxu1 %v4930_v37  ;;  %v5018_v37 = vld [vmem:[%s5334_s30 + $0x1d0] ss:$8 sps:$4 sm:$0xff]  }
 0xc9b   : > { %3022 = vmatpush1.bf16.msra.mxu1 %v4928_v38  ;;  %v5023_v38 = vld [vmem:[%s5334_s30 + $0xe4] ss:$8 sps:$4 sm:$0xff]  }
 0xc9c   : > { %3023 = vmatprep.subr.bf16.mxu1 %v4933_v40  ;;  %v5021_v40 = vld [vmem:[%s5334_s30 + $0xe0] ss:$8 sps:$4 sm:$0xff]  }
 0xc9f   : > { %3024 = vmatpush1.bf16.msra.mxu1 %v4931_v29  ;;  %v5026_v29 = vld [vmem:[%s5334_s30 + $0x1e4] ss:$8 sps:$4 sm:$0xff]  }
 0xca0   : > { %3025 = vmatprep.subr.bf16.mxu1 %v4936_v41  ;;  %v5024_v41 = vld [vmem:[%s5334_s30 + $0x1e0] ss:$8 sps:$4 sm:$0xff]  }
 0xca3   : > { %3026 = vmatpush1.bf16.msra.mxu1 %v4934_v42  ;;  %v5029_v42 = vld [vmem:[%s5334_s30 + $0xf4] ss:$8 sps:$4 sm:$0xff]  }
 0xca4   : > { %3823 = vmatprep.subr.bf16.mxu1 %v4942_v34  ;;  %v5027_v34 = vld [vmem:[%s5334_s30 + $0xf0] ss:$8 sps:$4 sm:$0xff]  }
 0xca6   : > { %3036 = vmatmul.mubr.bf16.vlgmr.msra.gmra.mrb[40].mxu1 %v5734_v4  ;;  %v4985_v4 = vld [vmem:[%s5334_s30 + $0x80] ss:$8 sps:$4 sm:$0xff]  }
 0xca7   : > { %3824 = vmatpush1.bf16.msra.mxu1 %v4940_v48  ;;  %3799 = vmatpush1.bf16.msra.mxu0 %v4985_v4  ;;  %v5032_v48 = vld [vmem:[%s5334_s30 + $0x1f4] ss:$8 sps:$4 sm:$0xff]  }
 0xca8   : > { %3825 = vmatprep.subr.bf16.mxu1 %v4948_v45  ;;  %3800 = vmatprep.subr.bf16.mxu0 %v4993_v11  ;;  %v5030_v45 = vld [vmem:[%s5334_s30 + $0x1f0] ss:$8 sps:$4 sm:$0xff]  }
 0xcab   : > { %3826 = vmatpush1.bf16.msra.mxu1 %v4946_v46  ;;  %3801 = vmatpush1.bf16.msra.mxu0 %v4991_v12  ;;  %v5035_v46 = vld [vmem:[%s5334_s30 + $0x204] ss:$8 sps:$4 sm:$0xff]  }
 0xcac   : > { %3827 = vmatprep.subr.bf16.mxu1 %v4954_v47  ;;  %3802 = vmatprep.subr.bf16.mxu0 %v4999_v15  ;;  %v5829_v47 = vld [vmem:[%s5324_s24] sm:$0x3f] }
 0xcad   : > { %v2539_v49 = vrot.slane %v5829_v47, %v868_v39  ;;  %v2535_v28 = vrot.slane %v5829_v47, %v5402_v7 }
 0xcaf   : > { %3828 = vmatpush1.bf16.msra.mxu1 %v4952_v24  ;;  %3803 = vmatpush1.bf16.msra.mxu0 %v4997_v16  ;;  %v2531_v24 = vrot.slane %v5829_v47, %v5405_v8 }
 0xcb0   : > { %3829 = vmatprep.subr.bf16.mxu1 %v4960_v50  ;;  %3804 = vmatprep.subr.bf16.mxu0 %v5005_v20  ;;  %v2543_v50 = vrot.slane %v5829_v47, %v872_v23 }
 0xcb3   : > { %3830 = vmatpush1.bf16.msra.mxu1 %v4958_v51  ;;  %3805 = vmatpush1.bf16.msra.mxu0 %v5003_v22 }
 0xcb4   : > { %3831 = vmatprep.subr.bf16.mxu1 %v4966_v21  ;;  %3806 = vmatprep.subr.bf16.mxu0 %v5011_v30 }
 0xcb7   : > { %3832 = vmatpush1.bf16.msra.mxu1 %v4964_v53  ;;  %3807 = vmatpush1.bf16.msra.mxu0 %v5009_v31 }
 0xcb8   : > { %3833 = vmatprep.subr.bf16.mxu1 %v4972_v56  ;;  %3808 = vmatprep.subr.bf16.mxu0 %v5017_v25 }
 0xcbb   : > { %3834 = vmatpush1.bf16.msra.mxu1 %v4970_v57  ;;  %3809 = vmatpush1.bf16.msra.mxu0 %v5015_v33 }
 0xcbc   : > { %3835 = vmatprep.subr.bf16.mxu1 %v4978_v60  ;;  %3810 = vmatprep.subr.bf16.mxu0 %v5023_v38 }
 0xcbf   : > { %3836 = vmatpush1.bf16.msra.mxu1 %v4976_v61  ;;  %3811 = vmatpush1.bf16.msra.mxu0 %v5021_v40 }
 0xcc0   : > { %3837 = vmatprep.subr.bf16.mxu1 %v4984_v0  ;;  %3812 = vmatprep.subr.bf16.mxu0 %v5029_v42 }
 0xcc3   : > { %3838 = vmatpush1.bf16.msra.mxu1 %v4982_v1  ;;  %3813 = vmatpush1.bf16.msra.mxu0 %v5027_v34 }
 0xcc4   : > { %3839 = vmatprep.subr.bf16.mxu1 %v4990_v5  ;;  %3864 = vmatprep.subr.bf16.mxu0 %v5035_v46 }
 0xcc7   : > { %3840 = vmatpush1.bf16.msra.mxu1 %v4988_v9 }
 0xcc8   : > { %3841 = vmatprep.subr.bf16.mxu1 %v4996_v13 }
 0xccb   : > { %3842 = vmatpush1.bf16.msra.mxu1 %v4994_v14 }
 0xccc   : > { %3843 = vmatprep.subr.bf16.mxu1 %v5002_v17 }
 0xccf   : > { %3844 = vmatpush1.bf16.msra.mxu1 %v5000_v18 }
 0xcd0   : > { %3845 = vmatprep.subr.bf16.mxu1 %v5008_v26 }
 0xcd3   : > { %3846 = vmatpush1.bf16.msra.mxu1 %v5006_v27 }
 0xcd4   : > { %3847 = vmatprep.subr.bf16.mxu1 %v5014_v10 }
 0xcd7   : > { %3848 = vmatpush1.bf16.msra.mxu1 %v5012_v32 }
 0xcd8   : > { %3849 = vmatprep.subr.bf16.mxu1 %v5020_v36 }
 0xcdb   : > { %3850 = vmatpush1.bf16.msra.mxu1 %v5018_v37 }
 0xcdc   : > { %3851 = vmatprep.subr.bf16.mxu1 %v5026_v29 }
 0xcdf   : > { %3852 = vmatpush1.bf16.msra.mxu1 %v5024_v41 }
 0xce0   : > { %3853 = vmatprep.subr.bf16.mxu1 %v5032_v48 }
 0xce3   : > { %3854 = vmatpush1.bf16.msra.mxu1 %v5030_v45 }
 0xd49   : > { %v2955_v51 = vpop.f32.mrb[36].mxu1  ;;  %v2996_v3 = vpop.f32.mrb[20].mxu0 }
 0xd4a   : > { %v5841_v52 = vadd.f32 %v2955_v51, %v2531_v24  ;;  %v5843_v21 = vadd.f32 %v2996_v3, %v2539_v49  ;;  %v2957_v53 = vpop.f32.mrb[37].mxu1  ;;  %v2998_v54 = vpop.f32.mrb[21].mxu0 }
 0xd4b   : > { %v5845_v55 = vadd.f32 %v2957_v53, %v2535_v28  ;;  %v5847_v56 = vadd.f32 %v2998_v54, %v2543_v50  ;;  %v2959_v39 = vpop.f32.mrb[38].mxu1  ;;  %v3000_v57 = vpop.f32.mrb[22].mxu0 }
 0xd4c   : > { %v5850_v58 = vmul.f32 0.70710677, %v5841_v52  ;;  %v5853_v59 = vmul.f32 0.70710677, %v5843_v21  ;;  %v2960_v0 = vpop.f32.mrb[39].mxu1  ;;  %v3001_v5 = vpop.f32.mrb[23].mxu0 }
 0xd4d   : > { %v5856_v23 = vmul.f32 0.70710677, %v5845_v55  ;;  %v5862_v63 = vmul.f32 0.70710677, %v5847_v56 }
 0xd4e   : > { %v3068_v60 = vand.u32 2147483647, %v5850_v58  ;;  %v3070_v61 = vand.u32 2147483647, %v5853_v59  ;;  %vm3056_vm9 = vcmp.ge.f32.partialorder %v5850_v58, 0.0  ;;  %vm3058_vm10 = vcmp.ge.f32.partialorder %v5853_v59, 0.0 }
 0xd4f   : > { %v3069_v62 = vand.u32 2147483647, %v5856_v23  ;;  %v3071_v12 = vand.u32 2147483647, %v5862_v63  ;;  %vm3057_vm11 = vcmp.ge.f32.partialorder %v5856_v23, 0.0  ;;  %v2551_v59 = vrot.slane %v5829_v47, %v880_v35 }
 0xd50   : > { %v3074_v1 = vmul.f32 0.3275911, %v3068_v60  ;;  %v3076_v2 = vmul.f32 0.3275911, %v3070_v61  ;;  %v3146_v16 = vsub.f32 0.0, %v3068_v60  ;;  %v3148_v17 = vsub.f32 0.0, %v3070_v61 }
 0xd51   : > { %v3075_v4 = vmul.f32 0.3275911, %v3069_v62  ;;  %v3077_v14 = vmul.f32 0.3275911, %v3071_v12  ;;  %v3147_v22 = vsub.f32 0.0, %v3069_v62  ;;  %v3149_v10 = vsub.f32 0.0, %v3071_v12 }
 0xd52   : > { %v3080_v9 = vadd.f32 1.0, %v3074_v1  ;;  %v3082_v11 = vadd.f32 1.0, %v3076_v2  ;;  %v3152_v20 = vmul.f32 %v3146_v16, %v3068_v60  ;;  %v3154_v30 = vmul.f32 %v3148_v17, %v3070_v61 }
 0xd53   : > { %v3081_v13 = vadd.f32 1.0, %v3075_v4  ;;  %v3083_v15 = vadd.f32 1.0, %v3077_v14  ;;  %v3153_v37 = vmul.f32 %v3147_v22, %v3069_v62  ;;  %v3155_v34 = vmul.f32 %v3149_v10, %v3071_v12 }
 0xd54   : > { %5097 = vrcp.f32 %v3080_v9  ;;  %v3158_v33 = vmul.f32 1.442695, %v3152_v20  ;;  %v3162_v40 = vmul.f32 1.442695, %v3154_v30  ;;  %vm3059_vm12 = vcmp.ge.f32.partialorder %v5862_v63, 0.0 }
 0xd55   : > { %5099 = vrcp.f32 %v3082_v11  ;;  %v3160_v49 = vmul.f32 1.442695, %v3153_v37  ;;  %v3164_v53 = vmul.f32 1.442695, %v3155_v34 }
 0xd56   : > { %5101 = vrcp.f32 %v3081_v13 }
 0xd57   : > { %5103 = vrcp.f32 %v3083_v15 }
 0xd58   : > { %5105 = vpow2.f32 %v3158_v33  ;;  %v5167_v33 = vmov -1.0  }
 0xd59   : > { %5107 = vpow2.f32 %v3162_v40  ;;  %v3064_v40 = vsel %vm3058_vm10, 1.0, %v5167_v33  ;;  %v3063_v23 = vsel %vm3057_vm11, 1.0, %v5167_v33 }
 0xd5a   : > { %5109 = vpow2.f32 %v3160_v49  ;;  %v3045_v49 = vmul.f32 0.5, %v5845_v55 }
 0xd5b   : > { %5111 = vpow2.f32 %v3164_v53 }
 0xd5e   : > { %v5098_v18 = vpop.eup %5097 }
 0xd5f   : > { %v5100_v26 = vpop.eup %5099  ;;  %v3092_v27 = vmul.f32 1.0614054, %v5098_v18 }
 0xd60   : > { %v3094_v31 = vmul.f32 1.0614054, %v5100_v26  ;;  %v5102_v25 = vpop.eup %5101 }
 0xd61   : > { %v3098_v32 = vadd.f32 -1.4531521, %v3092_v27  ;;  %v3093_v29 = vmul.f32 1.0614054, %v5102_v25  ;;  %v5104_v41 = vpop.eup %5103 }
 0xd62   : > { %v3100_v36 = vadd.f32 -1.4531521, %v3094_v31  ;;  %v3095_v46 = vmul.f32 1.0614054, %v5104_v41  ;;  %v5106_v14 = vpop.eup %5105 }
 0xd63   : > { %v3104_v38 = vmul.f32 %v5098_v18, %v3098_v32  ;;  %v3099_v45 = vadd.f32 -1.4531521, %v3093_v29  ;;  %v5108_v16 = vpop.eup %5107  ;;  %v2547_v29 = vrot.slane %v5829_v47, %v876_v19  ;;  %v3065_v19 = vsel %vm3059_vm12, 1.0, %v5167_v33 }
 0xd64   : > { %v3106_v42 = vmul.f32 %v5100_v26, %v3100_v36  ;;  %v3101_v51 = vadd.f32 -1.4531521, %v3095_v46  ;;  %v5110_v32 = vpop.eup %5109 }
 0xd65   : > { %v3110_v48 = vadd.f32 1.4214138, %v3104_v38  ;;  %v3105_v50 = vmul.f32 %v5102_v25, %v3099_v45  ;;  %v5112_v58 = vpop.eup %5111 }
 0xd66   : > { %v3112_v24 = vadd.f32 1.4214138, %v3106_v42  ;;  %v3107_v57 = vmul.f32 %v5104_v41, %v3101_v51 }
 0xd67   : > { %v3116_v28 = vmul.f32 %v5098_v18, %v3110_v48  ;;  %v3111_v39 = vadd.f32 1.4214138, %v3105_v50 }
 0xd68   : > { %v3118_v3 = vmul.f32 %v5100_v26, %v3112_v24  ;;  %v3113_v0 = vadd.f32 1.4214138, %v3107_v57  ;;  %v3044_v24 = vmul.f32 0.5, %v5841_v52  ;;  %v3046_v52 = vmul.f32 0.5, %v5843_v21 }
 0xd69   : > { %v3122_v54 = vadd.f32 -0.28449672, %v3116_v28  ;;  %v3117_v62 = vmul.f32 %v5102_v25, %v3111_v39 }
 0xd6a   : > { %v3124_v60 = vadd.f32 -0.28449672, %v3118_v3  ;;  %v3119_v5 = vmul.f32 %v5104_v41, %v3113_v0 }
 0xd6b   : > { %v3128_v61 = vmul.f32 %v5098_v18, %v3122_v54  ;;  %v3123_v4 = vadd.f32 -0.28449672, %v3117_v62 }
 0xd6c   : > { %v3130_v1 = vmul.f32 %v5100_v26, %v3124_v60  ;;  %v3125_v13 = vadd.f32 -0.28449672, %v3119_v5  ;;  %v3047_v60 = vmul.f32 0.5, %v5847_v56 }
 0xd6d   : > { %v3134_v2 = vadd.f32 0.2548296, %v3128_v61  ;;  %v3129_v12 = vmul.f32 %v5102_v25, %v3123_v4  ;;  %v5033_v4 = vld [vmem:[%s5334_s30 + $0x200] ss:$8 sps:$4 sm:$0xff]  }
 0xd6e   : > { %v3136_v9 = vadd.f32 0.2548296, %v3130_v1  ;;  %v3131_v22 = vmul.f32 %v5104_v41, %v3125_v13 }
 0xd6f   : > { %v3140_v11 = vmul.f32 %v5098_v18, %v3134_v2  ;;  %v3135_v20 = vadd.f32 0.2548296, %v3129_v12  ;;  %v3062_v18 = vsel %vm3056_vm9, 1.0, %v5167_v33 }
 0xd70   : > { %v3142_v15 = vmul.f32 %v5100_v26, %v3136_v9  ;;  %v3137_v10 = vadd.f32 0.2548296, %v3131_v22  ;;  %v5044_v22 = vld [vmem:[%s5334_s30 + $0x234] ss:$8 sps:$4 sm:$0xff]  }
 0xd71   : > { %v3170_v17 = vmul.f32 %v5106_v14, %v3140_v11  ;;  %v3141_v31 = vmul.f32 %v5102_v25, %v3135_v20  ;;  %v5038_v11 = vld [vmem:[%s5334_s30 + $0x214] ss:$8 sps:$4 sm:$0xff]   ;;  %v5039_v20 = vld [vmem:[%s5334_s30 + $0x220] ss:$8 sps:$4 sm:$0xff]  }
 0xd72   : > { %v3172_v27 = vmul.f32 %v5108_v16, %v3142_v15  ;;  %v3143_v38 = vmul.f32 %v5104_v41, %v3137_v10  ;;  %v5036_v16 = vld [vmem:[%s5334_s30 + $0x210] ss:$8 sps:$4 sm:$0xff]   ;;  %v5047_v10 = vld [vmem:[%s5334_s30 + $0x244] ss:$8 sps:$4 sm:$0xff]  }
 0xd73   : > { %v3176_v30 = vsub.f32 1.0, %v3170_v17  ;;  %v3171_v26 = vmul.f32 %v5110_v32, %v3141_v31  ;;  %v5041_v17 = vld [vmem:[%s5334_s30 + $0x224] ss:$8 sps:$4 sm:$0xff]   ;;  %v5042_v31 = vld [vmem:[%s5334_s30 + $0x230] ss:$8 sps:$4 sm:$0xff]  }
 0xd74   : > { %v3178_v36 = vsub.f32 1.0, %v3172_v27  ;;  %v3173_v34 = vmul.f32 %v5112_v58, %v3143_v38  ;;  %v5045_v38 = vld [vmem:[%s5334_s30 + $0x240] ss:$8 sps:$4 sm:$0xff]  }
 0xd75   : > { %v3182_v37 = vmul.f32 %v3176_v30, %v3062_v18  ;;  %v3177_v42 = vsub.f32 1.0, %v3171_v26 }
 0xd76   : > { %v3184_v25 = vmul.f32 %v3178_v36, %v3064_v40  ;;  %v3179_v45 = vsub.f32 1.0, %v3173_v34  ;;  %v5050_v40 = vld [vmem:[%s5334_s30 + $0x254] ss:$8 sps:$4 sm:$0xff]  }
 0xd77   : > { %v3188_v48 = vadd.f32 1.0, %v3182_v37  ;;  %v3183_v41 = vmul.f32 %v3177_v42, %v3063_v23 }
 0xd78   : > { %v3190_v47 = vadd.f32 1.0, %v3184_v25  ;;  %v3185_v28 = vmul.f32 %v3179_v45, %v3065_v19 }
 0xd79   : > { %v3037_v46 = vpop.f32.mrb[40].mxu1  ;;  %v3189_v51 = vadd.f32 1.0, %v3183_v41  ;;  %v3194_v3 = vmul.f32 %v3188_v48, %v3044_v24  ;;  %v5048_v48 = vld [vmem:[%s5334_s30 + $0x250] ss:$8 sps:$4 sm:$0xff]   ;;  %v5053_v41 = vld [vmem:[%s5334_s30 + $0x264] ss:$8 sps:$4 sm:$0xff]  }
 0xd7a   : > { %v5881_v6 = vadd.f32 %v3037_v46, %v2547_v29  ;;  %v3039_v35 = vpop.f32.mrb[41].mxu1  ;;  %v3191_v57 = vadd.f32 1.0, %v3185_v28  ;;  %v3196_v62 = vmul.f32 %v3190_v47, %v3046_v52 }
 0xd7b   : > { %v5883_v50 = vadd.f32 %v3039_v35, %v2551_v59  ;;  %v3041_v63 = vpop.f32.mrb[42].mxu1  ;;  %v3195_v39 = vmul.f32 %v3189_v51, %v3045_v49  ;;  %v3200_v5 = vpack.c.bf16 %v3194_v3, %v3194_v3  ;;  %v5051_v49 = vld [vmem:[%s5334_s30 + $0x260] ss:$8 sps:$4 sm:$0xff]   ;;  %v5056_v35 = vld [vmem:[%s5334_s30 + $0x274] ss:$8 sps:$4 sm:$0xff]  }
 0xd7c   : > { %v3054_v53 = vmul.f32 0.70710677, %v5881_v6  ;;  %v3042_v54 = vpop.f32.mrb[43].mxu1  ;;  %v3197_v9 = vmul.f32 %v3191_v57, %v3047_v60  ;;  %v3202_v14 = vpack.c.bf16 %v3196_v62, %v3196_v62  ;;  %v5054_v51 = vld [vmem:[%s5334_s30 + $0x270] ss:$8 sps:$4 sm:$0xff]  }
 0xd7d   : > { %v5888_v55 = vmul.f32 0.70710677, %v5883_v50  ;;  %v3201_v2 = vpack.c.bf16 %v3195_v39, %v3195_v39  ;;  %v5057_v57 = vld [vmem:[%s5334_s30 + $0x280] ss:$8 sps:$4 sm:$0xff]   ;;  %v5062_v62 = vld [vmem:[%s5334_s30 + $0x294] ss:$8 sps:$4 sm:$0xff]  }
 0xd7e   : > { %vm3060_vm13 = vcmp.ge.f32.partialorder %v3054_v53, 0.0  ;;  %v3072_v61 = vand.u32 2147483647, %v3054_v53  ;;  %v3203_v13 = vpack.c.bf16 %v3197_v9, %v3197_v9  ;;  %v5059_v53 = vld [vmem:[%s5334_s30 + $0x284] ss:$8 sps:$4 sm:$0xff]  }
 0xd7f   : > { %v5892_v0 = vsel %vm3060_vm13, 1.0, %v5167_v33  ;;  %v3073_v1 = vand.u32 2147483647, %v5888_v55  ;;  %3814 = vmatprep.mubr.bf16.mxu0 %v3201_v2  ;;  %vm3061_vm14 = vcmp.ge.f32.partialorder %v5888_v55, 0.0  ;;  %v5063_v55 = vld [vmem:[%s5334_s30 + $0x2a0] ss:$8 sps:$4 sm:$0xff]  }
 0xd80   : > { %v3078_v21 = vmul.f32 0.3275911, %v3072_v61  ;;  %3815 = vmatmul.mubr.bf16.vlgmr.msra.gmra.mrb[24].mxu0 %v3200_v5  ;;  %3855 = vmatprep.mubr.bf16.mxu1 %v3203_v13  ;;  %v3150_v27 = vsub.f32 0.0, %v3072_v61 }
 0xd81   : > { %v3079_v12 = vmul.f32 0.3275911, %v3073_v1  ;;  %3865 = vmatpush1.bf16.msra.mxu0 %v5033_v4  ;;  %3856 = vmatmul.mubr.bf16.vlgmr.msra.gmra.mrb[44].mxu1 %v3202_v14  ;;  %v3151_v30 = vsub.f32 0.0, %v3073_v1  ;;  %v3048_v14 = vmul.f32 0.5, %v5881_v6 }
 0xd82   : > { %v3084_v56 = vadd.f32 1.0, %v3078_v21  ;;  %3866 = vmatprep.subr.bf16.mxu0 %v5038_v11  ;;  %v3156_v18 = vmul.f32 %v3150_v27, %v3072_v61  ;;  %v5060_v21 = vld [vmem:[%s5334_s30 + $0x290] ss:$8 sps:$4 sm:$0xff]   ;;  %v5065_v11 = vld [vmem:[%s5334_s30 + $0x2a4] ss:$8 sps:$4 sm:$0xff]  }
 0xd83   : > { %v3085_v15 = vadd.f32 1.0, %v3079_v12  ;;  %v3157_v26 = vmul.f32 %v3151_v30, %v3073_v1  ;;  %v5071_v27 = vld [vmem:[%s5334_s30 + $0x2c4] ss:$8 sps:$4 sm:$0xff]   ;;  %v5069_v30 = vld [vmem:[%s5334_s30 + $0x2c0] ss:$8 sps:$4 sm:$0xff]  }
 0xd84   : > { %5113 = vrcp.f32 %v3084_v56  ;;  %v3166_v59 = vmul.f32 1.442695, %v3156_v18  ;;  %v3067_v56 = vsel %vm3061_vm14, 1.0, %v5167_v33  ;;  %v5066_v33 = vld [vmem:[%s5334_s30 + $0x2b0] ss:$8 sps:$4 sm:$0xff]  }
 0xd85   : > { %5115 = vrcp.f32 %v3085_v15  ;;  %3867 = vmatpush1.bf16.msra.mxu0 %v5036_v16  ;;  %v3168_v34 = vmul.f32 1.442695, %v3157_v26  ;;  %v3049_v16 = vmul.f32 0.5, %v5883_v50  ;;  %v5074_v50 = vld [vmem:[%s5334_s30 + $0x2d4] ss:$8 sps:$4 sm:$0xff]  }
 0xd86   : > { %3868 = vmatprep.subr.bf16.mxu0 %v5041_v17  ;;  %5117 = vpow2.f32 %v3166_v59  ;;  %v5068_v17 = vld [vmem:[%s5334_s30 + $0x2b4] ss:$8 sps:$4 sm:$0xff]  }
 0xd87   : > { %5119 = vpow2.f32 %v3168_v34  ;;  %v5080_v18 = vld [vmem:[%s5334_s30 + $0x2f4] ss:$8 sps:$4 sm:$0xff]  }
 0xd89   : > { %3869 = vmatpush1.bf16.msra.mxu0 %v5039_v20 }
 0xd8a   : > { %3870 = vmatprep.subr.bf16.mxu0 %v5044_v22 }
 0xd8d   : > { %3871 = vmatpush1.bf16.msra.mxu0 %v5042_v31  ;;  %v5072_v31 = vld [vmem:[%s5334_s30 + $0x2d0] ss:$8 sps:$4 sm:$0xff]  }
 0xd8e   : > { %v5114_v32 = vpop.eup %5113  ;;  %3872 = vmatprep.subr.bf16.mxu0 %v5047_v10  ;;  %v5077_v10 = vld [vmem:[%s5334_s30 + $0x2e4] ss:$8 sps:$4 sm:$0xff]  }
 0xd8f   : > { %v5116_v36 = vpop.eup %5115  ;;  %v3096_v37 = vmul.f32 1.0614054, %v5114_v32 }
 0xd90   : > { %v3097_v58 = vmul.f32 1.0614054, %v5116_v36  ;;  %v5118_v60 = vpop.eup %5117 }
 0xd91   : > { %v3102_v29 = vadd.f32 -1.4531521, %v3096_v37  ;;  %3873 = vmatpush1.bf16.msra.mxu0 %v5045_v38  ;;  %v5120_v1 = vpop.eup %5119 }
 0xd92   : > { %v3103_v25 = vadd.f32 -1.4531521, %v3097_v58  ;;  %3874 = vmatprep.subr.bf16.mxu0 %v5050_v40 }
 0xd93   : > { %v3108_v42 = vmul.f32 %v5114_v32, %v3102_v29 }
 0xd94   : > { %v3109_v23 = vmul.f32 %v5116_v36, %v3103_v25 }
 0xd95   : > { %v3114_v45 = vadd.f32 1.4214138, %v3108_v42  ;;  %3875 = vmatpush1.bf16.msra.mxu0 %v5048_v48 }
 0xd96   : > { %v3115_v46 = vadd.f32 1.4214138, %v3109_v23  ;;  %3876 = vmatprep.subr.bf16.mxu0 %v5053_v41  ;;  %v3907_v23 = vld [vmem:[%s6008_s23] sm:$0x3] }
 0xd97   : > { %v3120_v24 = vmul.f32 %v5114_v32, %v3114_v45 }
 0xd98   : > { %v3121_v19 = vmul.f32 %v5116_v36, %v3115_v46  ;;  %v3912_v46 = vrot.slane %v3907_v23, %v5405_v8 }
 0xd99   : > { %v3126_v47 = vadd.f32 -0.28449672, %v3120_v24  ;;  %3877 = vmatpush1.bf16.msra.mxu0 %v5051_v49 }
 0xd9a   : > { %v3127_v28 = vadd.f32 -0.28449672, %v3121_v19  ;;  %3878 = vmatprep.subr.bf16.mxu0 %v5056_v35  ;;  %v3916_v19 = vrot.slane %v3907_v23, %v5402_v7 }
 0xd9b   : > { %v3132_v63 = vmul.f32 %v5114_v32, %v3126_v47 }
 0xd9c   : > { %v3133_v3 = vmul.f32 %v5116_v36, %v3127_v28 }
 0xd9d   : > { %v3138_v54 = vadd.f32 0.2548296, %v3132_v63  ;;  %3879 = vmatpush1.bf16.msra.mxu0 %v5054_v51 }
 0xd9e   : > { %v3139_v52 = vadd.f32 0.2548296, %v3133_v3  ;;  %3880 = vmatprep.subr.bf16.mxu0 %v5059_v53 }
 0xd9f   : > { %v3144_v39 = vmul.f32 %v5114_v32, %v3138_v54  ;;  %v5075_v32 = vld [vmem:[%s5334_s30 + $0x2e0] ss:$8 sps:$4 sm:$0xff]  }
 0xda0   : > { %v3145_v61 = vmul.f32 %v5116_v36, %v3139_v52  ;;  %v5078_v36 = vld [vmem:[%s5334_s30 + $0x2f0] ss:$8 sps:$4 sm:$0xff]  }
 0xda1   : > { %v3174_v2 = vmul.f32 %v5118_v60, %v3144_v39  ;;  %3881 = vmatpush1.bf16.msra.mxu0 %v5057_v57 }
 0xda2   : > { %v3175_v4 = vmul.f32 %v5120_v1, %v3145_v61  ;;  %3882 = vmatprep.subr.bf16.mxu0 %v5062_v62 }
 0xda3   : > { %v3180_v5 = vsub.f32 1.0, %v3174_v2 }
 0xda4   : > { %v3181_v9 = vsub.f32 1.0, %v3175_v4 }
 0xda5   : > { %v3186_v12 = vmul.f32 %v3180_v5, %v5892_v0  ;;  %3883 = vmatpush1.bf16.msra.mxu0 %v5060_v21 }
 0xda6   : > { %v3187_v13 = vmul.f32 %v3181_v9, %v3067_v56  ;;  %3884 = vmatprep.subr.bf16.mxu0 %v5065_v11 }
 0xda7   : > { %v3192_v15 = vadd.f32 1.0, %v3186_v12 }
 0xda8   : > { %v3193_v20 = vadd.f32 1.0, %v3187_v13 }
 0xda9   : > { %v3198_v22 = vmul.f32 %v3192_v15, %v3048_v14  ;;  %3885 = vmatpush1.bf16.msra.mxu0 %v5063_v55 }
 0xdaa   : > { %v3199_v0 = vmul.f32 %v3193_v20, %v3049_v16  ;;  %3886 = vmatprep.subr.bf16.mxu0 %v5068_v17 }
 0xdab   : > { %v3204_v37 = vpack.c.bf16 %v3198_v22, %v3198_v22 }
 0xdac   : > { %v3205_v6 = vpack.c.bf16 %v3199_v0, %v3199_v0 }
 0xdad   : > { %3887 = vmatpush1.bf16.msra.mxu0 %v5066_v33 }
 0xdae   : > { %3896 = vmatprep.mubr.bf16.mxu0 %v3205_v6  ;;  %3888 = vmatprep.subr.bf16.mxu0 %v5071_v27 }
 0xdb1   : > { %3889 = vmatpush1.bf16.msra.mxu0 %v5069_v30 }
 0xdb2   : > { %3890 = vmatprep.subr.bf16.mxu0 %v5074_v50 }
 0xdb5   : > { %3891 = vmatpush1.bf16.msra.mxu0 %v5072_v31 }
 0xdb6   : > { %3892 = vmatprep.subr.bf16.mxu0 %v5077_v10 }
 0xdb9   : > { %3893 = vmatpush1.bf16.msra.mxu0 %v5075_v32 }
 0xdba   : > { %3894 = vmatprep.subr.bf16.mxu0 %v5080_v18 }
 0xdbd   : > { %3895 = vmatpush1.bf16.msra.mxu0 %v5078_v36 }
 0xdc0   : > { %3897 = vmatmul.mubr.bf16.vlgmr.msra.gmra.mrb[28].mxu0 %v3204_v37 }
 0xe53   : > { %v3816_v26 = vpop.f32.mrb[24].mxu0 }
 0xe54   : > { %v3818_v38 = vpop.f32.mrb[25].mxu0  ;;  %v3857_v40 = vpop.f32.mrb[44].mxu1 }
 0xe55   : > { %v3820_v58 = vpop.f32.mrb[26].mxu0  ;;  %v3858_v59 = vadd.f32 %v3857_v40, %v3816_v26  ;;  %v3859_v25 = vpop.f32.mrb[45].mxu1 }
 0xe56   : > { %v3821_v29 = vpop.f32.mrb[27].mxu0  ;;  %v3860_v42 = vadd.f32 %v3859_v25, %v3818_v38  ;;  %v3861_v34 = vpop.f32.mrb[46].mxu1 }
 0xe57   : > { %v3862_v48 = vpop.f32.mrb[47].mxu1 }
 0xe93   : > { %v3898_v41 = vpop.f32.mrb[28].mxu0 }
 0xe94   : > { %v3899_v45 = vadd.f32 %v3898_v41, %v3858_v59  ;;  %v3900_v24 = vpop.f32.mrb[29].mxu0 }
 0xe95   : > { %v3901_v49 = vadd.f32 %v3900_v24, %v3860_v42  ;;  %v3902_v35 = vpop.f32.mrb[30].mxu0  ;;  %3926 = sbr.rel (%p4497_p8) target bundleno = 3748 (0xea4), region = 80 }
 0xe96   : > { %v3905_v47 = vadd.f32 %v3899_v45, %v5647_v43  ;;  %v3903_v28 = vpop.f32.mrb[31].mxu0 }
 0xe97   : > { %v3906_v63 = vadd.f32 %v3901_v49, %v5649_v44 }
 0xe98   : > { %v3919_v51 = vadd.f32 %v3912_v46, %v3905_v47 }
 0xe99   : > { %v3920_v3 = vadd.f32 %v3916_v19, %v3906_v63 }
 0xe9a   : > { %3921 = vst [vmem:[#allocation2] sm:$0x1f] %v3919_v51 }
 0xe9b   : > { %3922 = vst.msk [vmem:[#allocation2 + $0x8] sm:$0x1f] %vm685_vm2, %v3920_v3 }
 0xea1   : > { %v3927_v53 = vld [vmem:[#allocation2] sm:$0x1f] }
 0xea2   : > { %v3928_v8 = vld [vmem:[#allocation2 + $0x8] sm:$0x1f]  ;;  %3929 = vst [vmem:[%s5329_s28] sm:$0x1f] %v3927_v53 }
 0xea3   : > { %3930 = vst.msk [vmem:[%s5329_s28 + $0x8] sm:$0x1f] %vm685_vm2, %v3928_v8 }
 0xea4 PF: > { %s6010_s17 = sld [smem:[#allocation6_spill]]  ;;  %s6011_s25 = sld [smem:[#allocation4_spill]] }
 0xea5   : > { %s6012_s26 = sld [smem:[#allocation5_spill]]  ;;  %s6013_s27 = sld [smem:[#allocation7_spill]] }
 0xea6   : > { %s6014_s28 = sld [smem:[#allocation8_spill]] }
 0xeaa   : > { %s23_s29 = sadd.s32 1, %s6010_s17  }
 0xeab   : > { %p20_p9 = scmp.ge.s32.totalorder %s23_s29, 6  }
 0xead   :  { %22 = sbr.rel (!%p20_p9) target bundleno = 9 (0x9), region = 146 }

</bundles_post_ra>
